<compile_context>
chip_gen: v7x
topology: tpu7x:2x2x1
jax: 0.10.0
libtpu: 0.0.40
codegen_flags: <defaults>
</compile_context>

<pallas_src>
import functools

import jax
import jax.numpy as jnp
from jax.experimental import pallas as pl
from jax.experimental.pallas import tpu as pltpu

BN_EPS = 1e-5  # torch.nn.BatchNorm2d default

# --------------------------------------------------------------------------- #
# VMEM budget / BlockSpec helpers
# --------------------------------------------------------------------------- #
_VMEM_LIMIT_CACHE = [None]


def _vmem_limit():
    """Per-generation VMEM cap (bytes) used for tile sizing and vmem_limit_bytes."""
    if _VMEM_LIMIT_CACHE[0] is None:
        cap = 64 * 1024 * 1024  # conservative fallback (v7x physical VMEM)
        try:
            cap = int(pltpu.get_tpu_info().vmem_capacity_bytes)
        except Exception:
            pass
        cap = max(32 * 1024 * 1024, min(cap, 128 * 1024 * 1024))
        _VMEM_LIMIT_CACHE[0] = int(cap * 0.8)
    return _VMEM_LIMIT_CACHE[0]


def _spec(block_shape, index_map, buffers=None):
    """BlockSpec; single-buffer constant-index operands (weights/bias) when asked."""
    if buffers is not None:
        try:
            return pl.BlockSpec(block_shape, index_map,
                                pipeline_mode=pl.Buffered(buffers))
        except (TypeError, AttributeError):
            pass  # older API without pipeline_mode: fall back to default buffering
    return pl.BlockSpec(block_shape, index_map)


# --------------------------------------------------------------------------- #
# Kernels
# --------------------------------------------------------------------------- #
def _conv1x1_bn_kernel(x_ref, w_ref, b_ref, o_ref, acc_ref, *, relu):
    """1x1-conv-as-matmul with folded BN.  Grid = (M tiles, K tiles)."""
    @pl.when(pl.program_id(1) == 0)
    def _():
        acc_ref[...] = jnp.zeros_like(acc_ref)

    acc_ref[...] += jnp.dot(x_ref[...], w_ref[...],
                            preferred_element_type=jnp.float32)

    @pl.when(pl.program_id(1) == pl.num_programs(1) - 1)
    def _():
        y = acc_ref[...] + b_ref[...]            # BN scale folded into weights
        if relu:
            y = jnp.maximum(y, 0.0)
        o_ref[...] = y.astype(o_ref.dtype)


def _conv1x1_bn_res_relu_kernel(x_ref, w_ref, b_ref, id_ref, o_ref, acc_ref):
    """Bottleneck tail: conv3 + bn3 + residual add + final ReLU, fused."""
    @pl.when(pl.program_id(1) == 0)
    def _():
        acc_ref[...] = jnp.zeros_like(acc_ref)

    acc_ref[...] += jnp.dot(x_ref[...], w_ref[...],
                            preferred_element_type=jnp.float32)

    @pl.when(pl.program_id(1) == pl.num_programs(1) - 1)
    def _():
        y = acc_ref[...] + b_ref[...] + id_ref[...].astype(jnp.float32)
        o_ref[...] = jnp.maximum(y, 0.0).astype(o_ref.dtype)


def _conv3x3_bn_relu_kernel(x_ref, w_ref, b_ref, o_ref, *, h, w):
    """3x3 conv (pad=1) + folded BN + ReLU for one image.

    x_ref : (H+2, W+2, Cin)   padded activation (bf16/fp32), read once
    w_ref : (9, Cin, Cout)    per-tap weight matrices, BN scale folded in
    b_ref : (1, Cout)
    o_ref : (H*W, Cout)
    """
    cin = x_ref.shape[-1]
    cout = o_ref.shape[-1]
    acc = jnp.zeros((h * w, cout), jnp.float32)
    for t in range(9):                      # static unroll over the 9 taps
        dy, dx = t // 3, t % 3
        slab = x_ref[dy:dy + h, dx:dx + w, :].reshape(h * w, cin)
        acc = acc + jnp.dot(slab, w_ref[t], preferred_element_type=jnp.float32)
    y = jnp.maximum(acc + b_ref[...], 0.0)
    o_ref[...] = y.astype(o_ref.dtype)


# --------------------------------------------------------------------------- #
# pallas_call wrappers
# --------------------------------------------------------------------------- #
def _run_conv1x1(x, w, bias, *, relu=False, identity=None, out_dtype=jnp.float32):
    """x: (M, K) -> (M, Cout).  M tiles 'parallel', K tiles 'arbitrary'."""
    m, k = x.shape
    cout = w.shape[1]
    limit = _vmem_limit()
    budget = int(limit * 0.7)

    # K streaming for deep layers so per-step VMEM stays bounded (nk == 1 here).
    tk = k
    if k > 1024:
        for cand in (512, 256, 128):
            if k % cand == 0:
                tk = cand
                break
    nk = k // tk
    w_buffers = 1 if nk == 1 else None      # single-buffer a resident weight

    out_bytes = jnp.dtype(out_dtype).itemsize

    def fits(tm):
        need = (2 * tm * tk * x.dtype.itemsize            # activation, double-buffered
                + (1 if nk == 1 else 2) * tk * cout * w.dtype.itemsize
                + 2 * cout * 4                             # bias
                + 2 * tm * cout * out_bytes                # output
                + tm * cout * 4)                           # fp32 accumulator scratch
        if identity is not None:
            need += 2 * tm * cout * identity.dtype.itemsize
        return need <= budget

    cands = [t for t in (512, 256, 128, 64, 32, 16, 8)
             if t <= m and m % t == 0 and fits(t)]
    tm = m
    for t in cands:
        if m // t >= 2:                     # keep >= 2 M steps for megacore
            tm = t
            break
    else:
        if cands:
            tm = cands[0]

    grid = (m // tm, nk)

    in_specs = [
        _spec((tm, tk), lambda i, j: (i, j)),
        _spec((tk, cout), lambda i, j: (j, 0), buffers=w_buffers),
        _spec((1, cout), lambda i, j: (0, 0), buffers=1),
    ]
    args = [x, w, bias]
    if identity is None:
        kern = functools.partial(_conv1x1_bn_kernel, relu=relu)
    else:
        kern = _conv1x1_bn_res_relu_kernel
        in_specs.append(_spec((tm, cout), lambda i, j: (i, 0)))
        args.append(identity)

    return pl.pallas_call(
        kern,
        out_shape=jax.ShapeDtypeStruct((m, cout), out_dtype),
        grid=grid,
        in_specs=in_specs,
        out_specs=pl.BlockSpec((tm, cout), lambda i, j: (i, 0)),
        scratch_shapes=[pltpu.VMEM((tm, cout), jnp.float32)],
        compiler_params=pltpu.CompilerParams(
            dimension_semantics=("parallel", "arbitrary"),
            vmem_limit_bytes=limit),
    )(*args)


def _run_conv3x3(x1_pad, w2, b2, *, h, w, out_dtype):
    """x1_pad: (N, H+2, W+2, C) -> (N, H*W, Cout).  Grid over images ('parallel')."""
    n, _, _, c = x1_pad.shape
    cout = w2.shape[-1]
    kern = functools.partial(_conv3x3_bn_relu_kernel, h=h, w=w)
    return pl.pallas_call(
        kern,
        out_shape=jax.ShapeDtypeStruct((n, h * w, cout), out_dtype),
        grid=(n,),
        in_specs=[
            _spec((None, h + 2, w + 2, c), lambda i: (i, 0, 0, 0)),
            _spec((9, c, cout), lambda i: (0, 0, 0), buffers=1),
            _spec((1, cout), lambda i: (0, 0), buffers=1),
        ],
        out_specs=pl.BlockSpec((None, h * w, cout), lambda i: (i, 0, 0)),
        compiler_params=pltpu.CompilerParams(
            dimension_semantics=("parallel",),
            vmem_limit_bytes=_vmem_limit()),
    )(x1_pad, w2, b2)


# --------------------------------------------------------------------------- #
# Host-side glue (cheap fused XLA ops: transpose to NHWC, pad, window mean)
# --------------------------------------------------------------------------- #
def _avg_pool_nhwc(x, s):
    """Fused reshape+mean avgpool (no (s*s, M, C) transpose materialization)."""
    if s == 1:
        return x
    n, h, w, c = x.shape
    xr = x.reshape(n, h // s, s, w // s, s, c).astype(jnp.float32)
    return xr.mean(axis=(2, 4)).astype(x.dtype)


def bottleneck_forward(x_nchw, kp, stride, compute_dtype=jnp.bfloat16):
    """Bottleneck.forward. x_nchw: (N, Cin, H, W) like the PyTorch module."""
    n, cin, h, w = x_nchw.shape
    act_dtype = compute_dtype
    xh = jnp.transpose(x_nchw, (0, 2, 3, 1)).astype(act_dtype)   # NHWC, lane-dense C
    planes = kp['w1'].shape[1]
    cout = kp['w3'].shape[1]
    m = n * h * w

    # conv1 (1x1) + bn1 + relu
    x1 = _run_conv1x1(xh.reshape(m, cin), kp['w1'], kp['b1'],
                      relu=True, out_dtype=act_dtype)

    # conv2 (3x3, pad=1) + bn2 + relu: pad once, 9 taps accumulated in-kernel.
    x1p = jnp.pad(x1.reshape(n, h, w, planes), ((0, 0), (1, 1), (1, 1), (0, 0)))
    x2 = _run_conv3x3(x1p, kp['w2'], kp['b2'], h=h, w=w, out_dtype=act_dtype)
    x2 = x2.reshape(n, h, w, planes)

    ho, wo = h // stride, w // stride
    mo = n * ho * wo

    # AvgPool2d(stride) on the main branch (fused XLA mean, bf16 intermediate).
    x2p = _avg_pool_nhwc(x2, stride).reshape(mo, planes)

    # downsample / identity branch
    if 'wd' in kp:
        xp = _avg_pool_nhwc(xh, stride).reshape(mo, cin)
        identity = _run_conv1x1(xp, kp['wd'], kp['bd'], out_dtype=act_dtype)
    else:
        assert stride == 1 and cin == cout
        identity = xh.reshape(mo, cin)

    # conv3 (1x1) + bn3 + residual add + relu, fused; final output in fp32.
    out = _run_conv1x1(x2p, kp['w3'], kp['b3'], identity=identity,
                       out_dtype=jnp.float32)
    return jnp.transpose(out.reshape(n, ho, wo, cout), (0, 3, 1, 2))   # NCHW


# --------------------------------------------------------------------------- #
# Parameters (PyTorch layouts) + host-side preparation (BN fold, transpose, cast)
# --------------------------------------------------------------------------- #
def init_raw_params(key, inplanes, planes, stride):
    expansion = 4
    cout = planes * expansion
    ks = jax.random.split(key, 8)

    def conv_w(k, co, ci, kh, kw):
        fan_in = ci * kh * kw
        return jax.random.normal(k, (co, ci, kh, kw), jnp.float32) * (fan_in ** -0.5)

    def bn_p(k, c):
        k1, k2, k3, k4 = jax.random.split(k, 4)
        gamma = 1.0 + 0.1 * jax.random.normal(k1, (c,), jnp.float32)
        beta = 0.1 * jax.random.normal(k2, (c,), jnp.float32)
        mean = 0.1 * jax.random.normal(k3, (c,), jnp.float32)
        var = 0.5 + jnp.abs(jax.random.normal(k4, (c,), jnp.float32))
        return gamma, beta, mean, var

    raw = {
        'w1': conv_w(ks[0], planes, inplanes, 1, 1), 'bn1': bn_p(ks[1], planes),
        'w2': conv_w(ks[2], planes, planes, 3, 3),   'bn2': bn_p(ks[3], planes),
        'w3': conv_w(ks[4], cout, planes, 1, 1),     'bn3': bn_p(ks[5], cout),
    }
    if stride > 1 or inplanes != cout:
        raw['wd'] = conv_w(ks[6], cout, inplanes, 1, 1)
        raw['bnd'] = bn_p(ks[7], cout)
    return raw


def prepare_params(raw, compute_dtype=jnp.bfloat16):
    """Fold eval-mode BN: scale into the weight columns, bias kept fp32; cast weights."""
    def fold(p):
        g, b, m, v = p
        s = g * jax.lax.rsqrt(v + BN_EPS)
        return s, (b - m * s).reshape(1, -1).astype(jnp.float32)

    kp = {}
    s1, kp['b1'] = fold(raw['bn1'])
    kp['w1'] = (jnp.transpose(raw['w1'][:, :, 0, 0]) * s1[None, :]).astype(compute_dtype)

    s2, kp['b2'] = fold(raw['bn2'])
    w2 = jnp.transpose(raw['w2'], (2, 3, 1, 0))            # (3, 3, Cin, Cout)
    ci2, co2 = w2.shape[2], w2.shape[3]
    kp['w2'] = (w2 * s2[None, None, None, :]).reshape(9, ci2, co2).astype(compute_dtype)

    s3, kp['b3'] = fold(raw['bn3'])
    kp['w3'] = (jnp.transpose(raw['w3'][:, :, 0, 0]) * s3[None, :]).astype(compute_dtype)

    if 'wd' in raw:
        sd, kp['bd'] = fold(raw['bnd'])
        kp['wd'] = (jnp.transpose(raw['wd'][:, :, 0, 0]) * sd[None, :]).astype(compute_dtype)
    return kp


# --------------------------------------------------------------------------- #
# Pure-JAX reference (mirrors the PyTorch forward, eval-mode BN) for verification
# --------------------------------------------------------------------------- #
def reference_forward(x_nchw, raw, stride):
    x = jnp.transpose(x_nchw, (0, 2, 3, 1)).astype(jnp.float32)

    def bn(y, p):
        g, b, m, v = p
        return (y - m) * jax.lax.rsqrt(v + BN_EPS) * g + b

    def conv1x1(y, w):                          # w: (Cout, Cin) torch layout
        return jnp.einsum('nhwc,oc->nhwo', y, w)

    def pool(y):
        if stride == 1:
            return y
        n, h, w, c = y.shape
        return y.reshape(n, h // stride, stride, w // stride, stride, c).mean(axis=(2, 4))

    y = jax.nn.relu(bn(conv1x1(x, raw['w1'][:, :, 0, 0]), raw['bn1']))
    h, w = y.shape[1], y.shape[2]
    yp = jnp.pad(y, ((0, 0), (1, 1), (1, 1), (0, 0)))
    acc = jnp.zeros(y.shape[:3] + (raw['w2'].shape[0],), jnp.float32)
    for dy in range(3):
        for dx in range(3):
            acc = acc + jnp.einsum('nhwc,oc->nhwo',
                                   yp[:, dy:dy + h, dx:dx + w, :],
                                   raw['w2'][:, :, dy, dx])
    y = jax.nn.relu(bn(acc, raw['bn2']))
    y = bn(conv1x1(pool(y), raw['w3'][:, :, 0, 0]), raw['bn3'])
    if 'wd' in raw:
        identity = bn(conv1x1(pool(x), raw['wd'][:, :, 0, 0]), raw['bnd'])
    else:
        identity = x
    out = jax.nn.relu(y + identity)
    return jnp.transpose(out, (0, 3, 1, 2))


# --------------------------------------------------------------------------- #
if __name__ == "__main__":
    # N=2, inplanes=16, planes=8, spatial 16x16, stride=2 -> downsample branch
    # exercised; output (2, 32, 8, 8).
    N, INPLANES, PLANES, H, W, STRIDE = 2, 16, 8, 16, 16, 2

    key = jax.random.PRNGKey(0)
    kx, kw = jax.random.split(key)
    x = jax.random.normal(kx, (N, INPLANES, H, W), jnp.float32)

    raw = init_raw_params(kw, INPLANES, PLANES, STRIDE)
    ref = reference_forward(x, raw, STRIDE)

    def run(compute_dtype):
        kp = prepare_params(raw, compute_dtype)
        fwd = jax.jit(lambda xx, pp: bottleneck_forward(xx, pp, STRIDE, compute_dtype))
        out = fwd(x, kp)
        jax.block_until_ready(out)
        return out

    # strict fp32 path: tight check of the kernel structure / indexing
    out_f32 = run(jnp.float32)
    assert out_f32.shape == (N, PLANES * 4, H // STRIDE, W // STRIDE)
    err32 = float(jnp.max(jnp.abs(out_f32 - ref)))
    assert err32 < 2e-3, f"fp32 path max abs err {err32}"

    # performance path: bf16 matmul operands + bf16 intermediates, fp32 accumulation
    out_bf16 = run(jnp.bfloat16)
    err16 = float(jnp.max(jnp.abs(out_bf16 - ref)))
    ref_max = float(jnp.max(jnp.abs(ref)))
    assert err16 <= 0.05 * ref_max + 0.05, (
        f"bf16 path max abs err {err16} (ref max {ref_max})")

    print("KERNEL_OK")
</pallas_src>

<mosaic_0001>
module attributes {stable_mosaic.version = 11 : i64} {
  func.func @_conv1x1_bn_kernel(%arg0: i32, %arg1: i32, %arg2: memref<64x16xf32, #tpu.memory_space<vmem>>, %arg3: memref<16x32xf32, #tpu.memory_space<vmem>>, %arg4: memref<1x32xf32, #tpu.memory_space<vmem>>, %arg5: memref<64x32xf32, #tpu.memory_space<vmem>>, %arg6: memref<64x32xf32, #tpu.memory_space<vmem>>) attributes {dimension_semantics = [#tpu.dimension_semantics<parallel>, #tpu.dimension_semantics<arbitrary>], iteration_bounds = array<i64: 2, 1>, scalar_prefetch = 0 : i64, scratch_operands = 1 : i64, tpu.core_type = #tpu.core_type<tc>, window_params = [{transform_indices = @transform_0, window_bounds = array<i64: 64, 16>}, {pipeline_mode = #tpu.pipeline_mode<synchronous>, transform_indices = @transform_1, window_bounds = array<i64: 16, 32>}, {pipeline_mode = #tpu.pipeline_mode<synchronous>, transform_indices = @transform_2, window_bounds = array<i64: 1, 32>}, {transform_indices = @transform_3, window_bounds = array<i64: 64, 32>}]} {
    %c0_i32 = arith.constant 0 : i32
    %0 = arith.cmpi eq, %arg1, %c0_i32 : i32
    %1 = arith.extui %0 : i1 to i32
    %c0_i32_0 = arith.constant 0 : i32
    %2 = arith.cmpi ne, %1, %c0_i32_0 : i32
    scf.if %2 {
      %cst_10 = arith.constant 0.000000e+00 : f32
      %12 = vector.broadcast %cst_10 : f32 to vector<64x32xf32>
      %c0_11 = arith.constant 0 : index
      %c0_12 = arith.constant 0 : index
      %13 = vector.load %arg6[%c0_11, %c0_12] : memref<64x32xf32, #tpu.memory_space<vmem>>, vector<64x32xf32>
      tpu.vector_store %arg6[%c0_11, %c0_12], %12 {strides = array<i32>} : memref<64x32xf32, #tpu.memory_space<vmem>>, vector<64x32xf32>,
    } else {
    }
    %c0 = arith.constant 0 : index
    %c0_1 = arith.constant 0 : index
    %3 = vector.load %arg6[%c0, %c0_1] : memref<64x32xf32, #tpu.memory_space<vmem>>, vector<64x32xf32>
    %c0_2 = arith.constant 0 : index
    %c0_3 = arith.constant 0 : index
    %4 = vector.load %arg2[%c0_2, %c0_3] : memref<64x16xf32, #tpu.memory_space<vmem>>, vector<64x16xf32>
    %c0_4 = arith.constant 0 : index
    %c0_5 = arith.constant 0 : index
    %5 = vector.load %arg3[%c0_4, %c0_5] : memref<16x32xf32, #tpu.memory_space<vmem>>, vector<16x32xf32>
    %cst = arith.constant dense<0.000000e+00> : vector<64x32xf32>
    %6 = tpu.matmul %4, %5, %cst {dimension_numbers = #tpu.dot_dimension_numbers<[1], [0], [0], [1], [0, 0, 1, 1], [], []>} : vector<64x16xf32>, vector<16x32xf32>, vector<64x32xf32> -> vector<64x32xf32>
    %7 = arith.addf %3, %6 : vector<64x32xf32>
    %c0_6 = arith.constant 0 : index
    %c0_7 = arith.constant 0 : index
    %8 = vector.load %arg6[%c0_6, %c0_7] : memref<64x32xf32, #tpu.memory_space<vmem>>, vector<64x32xf32>
    tpu.vector_store %arg6[%c0_6, %c0_7], %7 {strides = array<i32>} : memref<64x32xf32, #tpu.memory_space<vmem>>, vector<64x32xf32>,
    %c0_i32_8 = arith.constant 0 : i32
    %9 = arith.cmpi eq, %arg1, %c0_i32_8 : i32
    %10 = arith.extui %9 : i1 to i32
    %c0_i32_9 = arith.constant 0 : i32
    %11 = arith.cmpi ne, %10, %c0_i32_9 : i32
    scf.if %11 {
      %c0_10 = arith.constant 0 : index
      %c0_11 = arith.constant 0 : index
      %12 = vector.load %arg6[%c0_10, %c0_11] : memref<64x32xf32, #tpu.memory_space<vmem>>, vector<64x32xf32>
      %c0_12 = arith.constant 0 : index
      %c0_13 = arith.constant 0 : index
      %13 = vector.load %arg4[%c0_12, %c0_13] : memref<1x32xf32, #tpu.memory_space<vmem>>, vector<1x32xf32>
      %14 = vector.broadcast %13 : vector<1x32xf32> to vector<64x32xf32>
      %15 = arith.addf %12, %14 : vector<64x32xf32>
      %c0_14 = arith.constant 0 : index
      %c0_15 = arith.constant 0 : index
      %16 = vector.load %arg5[%c0_14, %c0_15] : memref<64x32xf32, #tpu.memory_space<vmem>>, vector<64x32xf32>
      tpu.vector_store %arg5[%c0_14, %c0_15], %15 {strides = array<i32>} : memref<64x32xf32, #tpu.memory_space<vmem>>, vector<64x32xf32>,
    } else {
    }
    return
  }
  func.func @transform_0(%arg0: i32, %arg1: i32) -> (i32, i32) {
    %c0_i32 = arith.constant 0 : i32
    return %arg0, %arg1 : i32, i32
  }
  func.func @transform_1(%arg0: i32, %arg1: i32) -> (i32, i32) {
    %c0_i32 = arith.constant 0 : i32
    %c0_i32_0 = arith.constant 0 : i32
    return %arg1, %c0_i32 : i32, i32
  }
  func.func @transform_2(%arg0: i32, %arg1: i32) -> (i32, i32) {
    %c0_i32 = arith.constant 0 : i32
    %c0_i32_0 = arith.constant 0 : i32
    %c0_i32_1 = arith.constant 0 : i32
    return %c0_i32, %c0_i32_0 : i32, i32
  }
  func.func @transform_3(%arg0: i32, %arg1: i32) -> (i32, i32) {
    %c0_i32 = arith.constant 0 : i32
    %c0_i32_0 = arith.constant 0 : i32
    return %arg0, %c0_i32 : i32, i32
  }
}

module attributes {stable_mosaic.version = 11 : i64} {
  func.func @_conv1x1_bn_kernel(%arg0: i32, %arg1: i32, %arg2: memref<256x16xf32, #tpu.memory_space<vmem>>, %arg3: memref<16x8xf32, #tpu.memory_space<vmem>>, %arg4: memref<1x8xf32, #tpu.memory_space<vmem>>, %arg5: memref<256x8xf32, #tpu.memory_space<vmem>>, %arg6: memref<256x8xf32, #tpu.memory_space<vmem>>) attributes {dimension_semantics = [#tpu.dimension_semantics<parallel>, #tpu.dimension_semantics<arbitrary>], iteration_bounds = array<i64: 2, 1>, scalar_prefetch = 0 : i64, scratch_operands = 1 : i64, tpu.core_type = #tpu.core_type<tc>, window_params = [{transform_indices = @transform_0, window_bounds = array<i64: 256, 16>}, {pipeline_mode = #tpu.pipeline_mode<synchronous>, transform_indices = @transform_1, window_bounds = array<i64: 16, 8>}, {pipeline_mode = #tpu.pipeline_mode<synchronous>, transform_indices = @transform_2, window_bounds = array<i64: 1, 8>}, {transform_indices = @transform_3, window_bounds = array<i64: 256, 8>}]} {
    %c0_i32 = arith.constant 0 : i32
    %0 = arith.cmpi eq, %arg1, %c0_i32 : i32
    %1 = arith.extui %0 : i1 to i32
    %c0_i32_0 = arith.constant 0 : i32
    %2 = arith.cmpi ne, %1, %c0_i32_0 : i32
    scf.if %2 {
      %cst_10 = arith.constant 0.000000e+00 : f32
      %12 = vector.broadcast %cst_10 : f32 to vector<256x8xf32>
      %c0_11 = arith.constant 0 : index
      %c0_12 = arith.constant 0 : index
      %13 = vector.load %arg6[%c0_11, %c0_12] : memref<256x8xf32, #tpu.memory_space<vmem>>, vector<256x8xf32>
      tpu.vector_store %arg6[%c0_11, %c0_12], %12 {strides = array<i32>} : memref<256x8xf32, #tpu.memory_space<vmem>>, vector<256x8xf32>,
    } else {
    }
    %c0 = arith.constant 0 : index
    %c0_1 = arith.constant 0 : index
    %3 = vector.load %arg6[%c0, %c0_1] : memref<256x8xf32, #tpu.memory_space<vmem>>, vector<256x8xf32>
    %c0_2 = arith.constant 0 : index
    %c0_3 = arith.constant 0 : index
    %4 = vector.load %arg2[%c0_2, %c0_3] : memref<256x16xf32, #tpu.memory_space<vmem>>, vector<256x16xf32>
    %c0_4 = arith.constant 0 : index
    %c0_5 = arith.constant 0 : index
    %5 = vector.load %arg3[%c0_4, %c0_5] : memref<16x8xf32, #tpu.memory_space<vmem>>, vector<16x8xf32>
    %cst = arith.constant dense<0.000000e+00> : vector<256x8xf32>
    %6 = tpu.matmul %4, %5, %cst {dimension_numbers = #tpu.dot_dimension_numbers<[1], [0], [0], [1], [0, 0, 1, 1], [], []>} : vector<256x16xf32>, vector<16x8xf32>, vector<256x8xf32> -> vector<256x8xf32>
    %7 = arith.addf %3, %6 : vector<256x8xf32>
    %c0_6 = arith.constant 0 : index
    %c0_7 = arith.constant 0 : index
    %8 = vector.load %arg6[%c0_6, %c0_7] : memref<256x8xf32, #tpu.memory_space<vmem>>, vector<256x8xf32>
    tpu.vector_store %arg6[%c0_6, %c0_7], %7 {strides = array<i32>} : memref<256x8xf32, #tpu.memory_space<vmem>>, vector<256x8xf32>,
    %c0_i32_8 = arith.constant 0 : i32
    %9 = arith.cmpi eq, %arg1, %c0_i32_8 : i32
    %10 = arith.extui %9 : i1 to i32
    %c0_i32_9 = arith.constant 0 : i32
    %11 = arith.cmpi ne, %10, %c0_i32_9 : i32
    scf.if %11 {
      %c0_10 = arith.constant 0 : index
      %c0_11 = arith.constant 0 : index
      %12 = vector.load %arg6[%c0_10, %c0_11] : memref<256x8xf32, #tpu.memory_space<vmem>>, vector<256x8xf32>
      %c0_12 = arith.constant 0 : index
      %c0_13 = arith.constant 0 : index
      %13 = vector.load %arg4[%c0_12, %c0_13] : memref<1x8xf32, #tpu.memory_space<vmem>>, vector<1x8xf32>
      %14 = vector.broadcast %13 : vector<1x8xf32> to vector<256x8xf32>
      %15 = arith.addf %12, %14 : vector<256x8xf32>
      %cst_14 = arith.constant 0.000000e+00 : f32
      %16 = vector.broadcast %cst_14 : f32 to vector<256x8xf32>
      %17 = arith.maximumf %15, %16 : vector<256x8xf32>
      %c0_15 = arith.constant 0 : index
      %c0_16 = arith.constant 0 : index
      %18 = vector.load %arg5[%c0_15, %c0_16] : memref<256x8xf32, #tpu.memory_space<vmem>>, vector<256x8xf32>
      tpu.vector_store %arg5[%c0_15, %c0_16], %17 {strides = array<i32>} : memref<256x8xf32, #tpu.memory_space<vmem>>, vector<256x8xf32>,
    } else {
    }
    return
  }
  func.func @transform_0(%arg0: i32, %arg1: i32) -> (i32, i32) {
    %c0_i32 = arith.constant 0 : i32
    return %arg0, %arg1 : i32, i32
  }
  func.func @transform_1(%arg0: i32, %arg1: i32) -> (i32, i32) {
    %c0_i32 = arith.constant 0 : i32
    %c0_i32_0 = arith.constant 0 : i32
    return %arg1, %c0_i32 : i32, i32
  }
  func.func @transform_2(%arg0: i32, %arg1: i32) -> (i32, i32) {
    %c0_i32 = arith.constant 0 : i32
    %c0_i32_0 = arith.constant 0 : i32
    %c0_i32_1 = arith.constant 0 : i32
    return %c0_i32, %c0_i32_0 : i32, i32
  }
  func.func @transform_3(%arg0: i32, %arg1: i32) -> (i32, i32) {
    %c0_i32 = arith.constant 0 : i32
    %c0_i32_0 = arith.constant 0 : i32
    return %arg0, %c0_i32 : i32, i32
  }
}

module attributes {stable_mosaic.version = 11 : i64} {
  func.func @_conv3x3_bn_relu_kernel(%arg0: i32, %arg1: memref<1x18x18x8xf32, #tpu.memory_space<vmem>>, %arg2: memref<9x8x8xf32, #tpu.memory_space<vmem>>, %arg3: memref<1x8xf32, #tpu.memory_space<vmem>>, %arg4: memref<1x256x8xf32, #tpu.memory_space<vmem>>) attributes {dimension_semantics = [#tpu.dimension_semantics<parallel>], iteration_bounds = array<i64: 2>, scalar_prefetch = 0 : i64, scratch_operands = 0 : i64, tpu.core_type = #tpu.core_type<tc>, window_params = [{transform_indices = @transform_0, window_bounds = array<i64: 1, 18, 18, 8>}, {pipeline_mode = #tpu.pipeline_mode<synchronous>, transform_indices = @transform_1, window_bounds = array<i64: 9, 8, 8>}, {pipeline_mode = #tpu.pipeline_mode<synchronous>, transform_indices = @transform_2, window_bounds = array<i64: 1, 8>}, {transform_indices = @transform_3, window_bounds = array<i64: 1, 256, 8>}]} {
    %cst = arith.constant 0.000000e+00 : f32
    %0 = vector.broadcast %cst : f32 to vector<256x8xf32>
    %c0 = arith.constant 0 : index
    %c0_0 = arith.constant 0 : index
    %c0_1 = arith.constant 0 : index
    %c0_2 = arith.constant 0 : index
    %1 = vector.load %arg1[%c0, %c0_0, %c0_1, %c0_2] : memref<1x18x18x8xf32, #tpu.memory_space<vmem>>, vector<1x16x16x8xf32>
    %2 = vector.shape_cast %1 : vector<1x16x16x8xf32> to vector<16x16x8xf32>
    %3 = vector.shape_cast %2 : vector<16x16x8xf32> to vector<256x8xf32>
    %c0_3 = arith.constant 0 : index
    %c0_4 = arith.constant 0 : index
    %c0_5 = arith.constant 0 : index
    %4 = vector.load %arg2[%c0_3, %c0_4, %c0_5] : memref<9x8x8xf32, #tpu.memory_space<vmem>>, vector<1x8x8xf32>
    %5 = vector.shape_cast %4 : vector<1x8x8xf32> to vector<8x8xf32>
    %cst_6 = arith.constant dense<0.000000e+00> : vector<256x8xf32>
    %6 = tpu.matmul %3, %5, %cst_6 {dimension_numbers = #tpu.dot_dimension_numbers<[1], [0], [0], [1], [0, 0, 1, 1], [], []>} : vector<256x8xf32>, vector<8x8xf32>, vector<256x8xf32> -> vector<256x8xf32>
    %7 = arith.addf %0, %6 : vector<256x8xf32>
    %c0_7 = arith.constant 0 : index
    %c0_8 = arith.constant 0 : index
    %c1 = arith.constant 1 : index
    %c0_9 = arith.constant 0 : index
    %8 = vector.load %arg1[%c0_7, %c0_8, %c1, %c0_9] : memref<1x18x18x8xf32, #tpu.memory_space<vmem>>, vector<1x16x16x8xf32>
    %9 = vector.shape_cast %8 : vector<1x16x16x8xf32> to vector<16x16x8xf32>
    %10 = vector.shape_cast %9 : vector<16x16x8xf32> to vector<256x8xf32>
    %c1_10 = arith.constant 1 : index
    %c0_11 = arith.constant 0 : index
    %c0_12 = arith.constant 0 : index
    %11 = vector.load %arg2[%c1_10, %c0_11, %c0_12] : memref<9x8x8xf32, #tpu.memory_space<vmem>>, vector<1x8x8xf32>
    %12 = vector.shape_cast %11 : vector<1x8x8xf32> to vector<8x8xf32>
    %cst_13 = arith.constant dense<0.000000e+00> : vector<256x8xf32>
    %13 = tpu.matmul %10, %12, %cst_13 {dimension_numbers = #tpu.dot_dimension_numbers<[1], [0], [0], [1], [0, 0, 1, 1], [], []>} : vector<256x8xf32>, vector<8x8xf32>, vector<256x8xf32> -> vector<256x8xf32>
    %14 = arith.addf %7, %13 : vector<256x8xf32>
    %c0_14 = arith.constant 0 : index
    %c0_15 = arith.constant 0 : index
    %c2 = arith.constant 2 : index
    %c0_16 = arith.constant 0 : index
    %15 = vector.load %arg1[%c0_14, %c0_15, %c2, %c0_16] : memref<1x18x18x8xf32, #tpu.memory_space<vmem>>, vector<1x16x16x8xf32>
    %16 = vector.shape_cast %15 : vector<1x16x16x8xf32> to vector<16x16x8xf32>
    %17 = vector.shape_cast %16 : vector<16x16x8xf32> to vector<256x8xf32>
    %c2_17 = arith.constant 2 : index
    %c0_18 = arith.constant 0 : index
    %c0_19 = arith.constant 0 : index
    %18 = vector.load %arg2[%c2_17, %c0_18, %c0_19] : memref<9x8x8xf32, #tpu.memory_space<vmem>>, vector<1x8x8xf32>
    %19 = vector.shape_cast %18 : vector<1x8x8xf32> to vector<8x8xf32>
    %cst_20 = arith.constant dense<0.000000e+00> : vector<256x8xf32>
    %20 = tpu.matmul %17, %19, %cst_20 {dimension_numbers = #tpu.dot_dimension_numbers<[1], [0], [0], [1], [0, 0, 1, 1], [], []>} : vector<256x8xf32>, vector<8x8xf32>, vector<256x8xf32> -> vector<256x8xf32>
    %21 = arith.addf %14, %20 : vector<256x8xf32>
    %c0_21 = arith.constant 0 : index
    %c1_22 = arith.constant 1 : index
    %c0_23 = arith.constant 0 : index
    %c0_24 = arith.constant 0 : index
    %22 = vector.load %arg1[%c0_21, %c1_22, %c0_23, %c0_24] : memref<1x18x18x8xf32, #tpu.memory_space<vmem>>, vector<1x16x16x8xf32>
    %23 = vector.shape_cast %22 : vector<1x16x16x8xf32> to vector<16x16x8xf32>
    %24 = vector.shape_cast %23 : vector<16x16x8xf32> to vector<256x8xf32>
    %c3 = arith.constant 3 : index
    %c0_25 = arith.constant 0 : index
    %c0_26 = arith.constant 0 : index
    %25 = vector.load %arg2[%c3, %c0_25, %c0_26] : memref<9x8x8xf32, #tpu.memory_space<vmem>>, vector<1x8x8xf32>
    %26 = vector.shape_cast %25 : vector<1x8x8xf32> to vector<8x8xf32>
    %cst_27 = arith.constant dense<0.000000e+00> : vector<256x8xf32>
    %27 = tpu.matmul %24, %26, %cst_27 {dimension_numbers = #tpu.dot_dimension_numbers<[1], [0], [0], [1], [0, 0, 1, 1], [], []>} : vector<256x8xf32>, vector<8x8xf32>, vector<256x8xf32> -> vector<256x8xf32>
    %28 = arith.addf %21, %27 : vector<256x8xf32>
    %c0_28 = arith.constant 0 : index
    %c1_29 = arith.constant 1 : index
    %c1_30 = arith.constant 1 : index
    %c0_31 = arith.constant 0 : index
    %29 = vector.load %arg1[%c0_28, %c1_29, %c1_30, %c0_31] : memref<1x18x18x8xf32, #tpu.memory_space<vmem>>, vector<1x16x16x8xf32>
    %30 = vector.shape_cast %29 : vector<1x16x16x8xf32> to vector<16x16x8xf32>
    %31 = vector.shape_cast %30 : vector<16x16x8xf32> to vector<256x8xf32>
    %c4 = arith.constant 4 : index
    %c0_32 = arith.constant 0 : index
    %c0_33 = arith.constant 0 : index
    %32 = vector.load %arg2[%c4, %c0_32, %c0_33] : memref<9x8x8xf32, #tpu.memory_space<vmem>>, vector<1x8x8xf32>
    %33 = vector.shape_cast %32 : vector<1x8x8xf32> to vector<8x8xf32>
    %cst_34 = arith.constant dense<0.000000e+00> : vector<256x8xf32>
    %34 = tpu.matmul %31, %33, %cst_34 {dimension_numbers = #tpu.dot_dimension_numbers<[1], [0], [0], [1], [0, 0, 1, 1], [], []>} : vector<256x8xf32>, vector<8x8xf32>, vector<256x8xf32> -> vector<256x8xf32>
    %35 = arith.addf %28, %34 : vector<256x8xf32>
    %c0_35 = arith.constant 0 : index
    %c1_36 = arith.constant 1 : index
    %c2_37 = arith.constant 2 : index
    %c0_38 = arith.constant 0 : index
    %36 = vector.load %arg1[%c0_35, %c1_36, %c2_37, %c0_38] : memref<1x18x18x8xf32, #tpu.memory_space<vmem>>, vector<1x16x16x8xf32>
    %37 = vector.shape_cast %36 : vector<1x16x16x8xf32> to vector<16x16x8xf32>
    %38 = vector.shape_cast %37 : vector<16x16x8xf32> to vector<256x8xf32>
    %c5 = arith.constant 5 : index
    %c0_39 = arith.constant 0 : index
    %c0_40 = arith.constant 0 : index
    %39 = vector.load %arg2[%c5, %c0_39, %c0_40] : memref<9x8x8xf32, #tpu.memory_space<vmem>>, vector<1x8x8xf32>
    %40 = vector.shape_cast %39 : vector<1x8x8xf32> to vector<8x8xf32>
    %cst_41 = arith.constant dense<0.000000e+00> : vector<256x8xf32>
    %41 = tpu.matmul %38, %40, %cst_41 {dimension_numbers = #tpu.dot_dimension_numbers<[1], [0], [0], [1], [0, 0, 1, 1], [], []>} : vector<256x8xf32>, vector<8x8xf32>, vector<256x8xf32> -> vector<256x8xf32>
    %42 = arith.addf %35, %41 : vector<256x8xf32>
    %c0_42 = arith.constant 0 : index
    %c2_43 = arith.constant 2 : index
    %c0_44 = arith.constant 0 : index
    %c0_45 = arith.constant 0 : index
    %43 = vector.load %arg1[%c0_42, %c2_43, %c0_44, %c0_45] : memref<1x18x18x8xf32, #tpu.memory_space<vmem>>, vector<1x16x16x8xf32>
    %44 = vector.shape_cast %43 : vector<1x16x16x8xf32> to vector<16x16x8xf32>
    %45 = vector.shape_cast %44 : vector<16x16x8xf32> to vector<256x8xf32>
    %c6 = arith.constant 6 : index
    %c0_46 = arith.constant 0 : index
    %c0_47 = arith.constant 0 : index
    %46 = vector.load %arg2[%c6, %c0_46, %c0_47] : memref<9x8x8xf32, #tpu.memory_space<vmem>>, vector<1x8x8xf32>
    %47 = vector.shape_cast %46 : vector<1x8x8xf32> to vector<8x8xf32>
    %cst_48 = arith.constant dense<0.000000e+00> : vector<256x8xf32>
    %48 = tpu.matmul %45, %47, %cst_48 {dimension_numbers = #tpu.dot_dimension_numbers<[1], [0], [0], [1], [0, 0, 1, 1], [], []>} : vector<256x8xf32>, vector<8x8xf32>, vector<256x8xf32> -> vector<256x8xf32>
    %49 = arith.addf %42, %48 : vector<256x8xf32>
    %c0_49 = arith.constant 0 : index
    %c2_50 = arith.constant 2 : index
    %c1_51 = arith.constant 1 : index
    %c0_52 = arith.constant 0 : index
    %50 = vector.load %arg1[%c0_49, %c2_50, %c1_51, %c0_52] : memref<1x18x18x8xf32, #tpu.memory_space<vmem>>, vector<1x16x16x8xf32>
    %51 = vector.shape_cast %50 : vector<1x16x16x8xf32> to vector<16x16x8xf32>
    %52 = vector.shape_cast %51 : vector<16x16x8xf32> to vector<256x8xf32>
    %c7 = arith.constant 7 : index
    %c0_53 = arith.constant 0 : index
    %c0_54 = arith.constant 0 : index
    %53 = vector.load %arg2[%c7, %c0_53, %c0_54] : memref<9x8x8xf32, #tpu.memory_space<vmem>>, vector<1x8x8xf32>
    %54 = vector.shape_cast %53 : vector<1x8x8xf32> to vector<8x8xf32>
    %cst_55 = arith.constant dense<0.000000e+00> : vector<256x8xf32>
    %55 = tpu.matmul %52, %54, %cst_55 {dimension_numbers = #tpu.dot_dimension_numbers<[1], [0], [0], [1], [0, 0, 1, 1], [], []>} : vector<256x8xf32>, vector<8x8xf32>, vector<256x8xf32> -> vector<256x8xf32>
    %56 = arith.addf %49, %55 : vector<256x8xf32>
    %c0_56 = arith.constant 0 : index
    %c2_57 = arith.constant 2 : index
    %c2_58 = arith.constant 2 : index
    %c0_59 = arith.constant 0 : index
    %57 = vector.load %arg1[%c0_56, %c2_57, %c2_58, %c0_59] : memref<1x18x18x8xf32, #tpu.memory_space<vmem>>, vector<1x16x16x8xf32>
    %58 = vector.shape_cast %57 : vector<1x16x16x8xf32> to vector<16x16x8xf32>
    %59 = vector.shape_cast %58 : vector<16x16x8xf32> to vector<256x8xf32>
    %c8 = arith.constant 8 : index
    %c0_60 = arith.constant 0 : index
    %c0_61 = arith.constant 0 : index
    %60 = vector.load %arg2[%c8, %c0_60, %c0_61] : memref<9x8x8xf32, #tpu.memory_space<vmem>>, vector<1x8x8xf32>
    %61 = vector.shape_cast %60 : vector<1x8x8xf32> to vector<8x8xf32>
    %cst_62 = arith.constant dense<0.000000e+00> : vector<256x8xf32>
    %62 = tpu.matmul %59, %61, %cst_62 {dimension_numbers = #tpu.dot_dimension_numbers<[1], [0], [0], [1], [0, 0, 1, 1], [], []>} : vector<256x8xf32>, vector<8x8xf32>, vector<256x8xf32> -> vector<256x8xf32>
    %63 = arith.addf %56, %62 : vector<256x8xf32>
    %c0_63 = arith.constant 0 : index
    %c0_64 = arith.constant 0 : index
    %64 = vector.load %arg3[%c0_63, %c0_64] : memref<1x8xf32, #tpu.memory_space<vmem>>, vector<1x8xf32>
    %65 = vector.broadcast %64 : vector<1x8xf32> to vector<256x8xf32>
    %66 = arith.addf %63, %65 : vector<256x8xf32>
    %cst_65 = arith.constant 0.000000e+00 : f32
    %67 = vector.broadcast %cst_65 : f32 to vector<256x8xf32>
    %68 = arith.maximumf %66, %67 : vector<256x8xf32>
    %c0_66 = arith.constant 0 : index
    %c0_67 = arith.constant 0 : index
    %c0_68 = arith.constant 0 : index
    %69 = vector.load %arg4[%c0_66, %c0_67, %c0_68] : memref<1x256x8xf32, #tpu.memory_space<vmem>>, vector<1x256x8xf32>
    %70 = vector.shape_cast %69 : vector<1x256x8xf32> to vector<256x8xf32>
    %71 = vector.shape_cast %68 : vector<256x8xf32> to vector<1x256x8xf32>
    tpu.vector_store %arg4[%c0_66, %c0_67, %c0_68], %71 {strides = array<i32>} : memref<1x256x8xf32, #tpu.memory_space<vmem>>, vector<1x256x8xf32>,
    return
  }
  func.func @transform_0(%arg0: i32) -> (i32, i32, i32, i32) {
    %c0_i32 = arith.constant 0 : i32
    %c0_i32_0 = arith.constant 0 : i32
    %c0_i32_1 = arith.constant 0 : i32
    %c0_i32_2 = arith.constant 0 : i32
    return %arg0, %c0_i32, %c0_i32_0, %c0_i32_1 : i32, i32, i32, i32
  }
  func.func @transform_1(%arg0: i32) -> (i32, i32, i32) {
    %c0_i32 = arith.constant 0 : i32
    %c0_i32_0 = arith.constant 0 : i32
    %c0_i32_1 = arith.constant 0 : i32
    %c0_i32_2 = arith.constant 0 : i32
    return %c0_i32, %c0_i32_0, %c0_i32_1 : i32, i32, i32
  }
  func.func @transform_2(%arg0: i32) -> (i32, i32) {
    %c0_i32 = arith.constant 0 : i32
    %c0_i32_0 = arith.constant 0 : i32
    %c0_i32_1 = arith.constant 0 : i32
    return %c0_i32, %c0_i32_0 : i32, i32
  }
  func.func @transform_3(%arg0: i32) -> (i32, i32, i32) {
    %c0_i32 = arith.constant 0 : i32
    %c0_i32_0 = arith.constant 0 : i32
    %c0_i32_1 = arith.constant 0 : i32
    return %arg0, %c0_i32, %c0_i32_0 : i32, i32, i32
  }
}

module attributes {stable_mosaic.version = 11 : i64} {
  func.func @_conv1x1_bn_res_relu_kernel(%arg0: i32, %arg1: i32, %arg2: memref<64x8xf32, #tpu.memory_space<vmem>>, %arg3: memref<8x32xf32, #tpu.memory_space<vmem>>, %arg4: memref<1x32xf32, #tpu.memory_space<vmem>>, %arg5: memref<64x32xf32, #tpu.memory_space<vmem>>, %arg6: memref<64x32xf32, #tpu.memory_space<vmem>>, %arg7: memref<64x32xf32, #tpu.memory_space<vmem>>) attributes {dimension_semantics = [#tpu.dimension_semantics<parallel>, #tpu.dimension_semantics<arbitrary>], iteration_bounds = array<i64: 2, 1>, scalar_prefetch = 0 : i64, scratch_operands = 1 : i64, tpu.core_type = #tpu.core_type<tc>, window_params = [{transform_indices = @transform_0, window_bounds = array<i64: 64, 8>}, {pipeline_mode = #tpu.pipeline_mode<synchronous>, transform_indices = @transform_1, window_bounds = array<i64: 8, 32>}, {pipeline_mode = #tpu.pipeline_mode<synchronous>, transform_indices = @transform_2, window_bounds = array<i64: 1, 32>}, {transform_indices = @transform_3, window_bounds = array<i64: 64, 32>}, {transform_indices = @transform_4, window_bounds = array<i64: 64, 32>}]} {
    %c0_i32 = arith.constant 0 : i32
    %0 = arith.cmpi eq, %arg1, %c0_i32 : i32
    %1 = arith.extui %0 : i1 to i32
    %c0_i32_0 = arith.constant 0 : i32
    %2 = arith.cmpi ne, %1, %c0_i32_0 : i32
    scf.if %2 {
      %cst_10 = arith.constant 0.000000e+00 : f32
      %12 = vector.broadcast %cst_10 : f32 to vector<64x32xf32>
      %c0_11 = arith.constant 0 : index
      %c0_12 = arith.constant 0 : index
      %13 = vector.load %arg7[%c0_11, %c0_12] : memref<64x32xf32, #tpu.memory_space<vmem>>, vector<64x32xf32>
      tpu.vector_store %arg7[%c0_11, %c0_12], %12 {strides = array<i32>} : memref<64x32xf32, #tpu.memory_space<vmem>>, vector<64x32xf32>,
    } else {
    }
    %c0 = arith.constant 0 : index
    %c0_1 = arith.constant 0 : index
    %3 = vector.load %arg7[%c0, %c0_1] : memref<64x32xf32, #tpu.memory_space<vmem>>, vector<64x32xf32>
    %c0_2 = arith.constant 0 : index
    %c0_3 = arith.constant 0 : index
    %4 = vector.load %arg2[%c0_2, %c0_3] : memref<64x8xf32, #tpu.memory_space<vmem>>, vector<64x8xf32>
    %c0_4 = arith.constant 0 : index
    %c0_5 = arith.constant 0 : index
    %5 = vector.load %arg3[%c0_4, %c0_5] : memref<8x32xf32, #tpu.memory_space<vmem>>, vector<8x32xf32>
    %cst = arith.constant dense<0.000000e+00> : vector<64x32xf32>
    %6 = tpu.matmul %4, %5, %cst {dimension_numbers = #tpu.dot_dimension_numbers<[1], [0], [0], [1], [0, 0, 1, 1], [], []>} : vector<64x8xf32>, vector<8x32xf32>, vector<64x32xf32> -> vector<64x32xf32>
    %7 = arith.addf %3, %6 : vector<64x32xf32>
    %c0_6 = arith.constant 0 : index
    %c0_7 = arith.constant 0 : index
    %8 = vector.load %arg7[%c0_6, %c0_7] : memref<64x32xf32, #tpu.memory_space<vmem>>, vector<64x32xf32>
    tpu.vector_store %arg7[%c0_6, %c0_7], %7 {strides = array<i32>} : memref<64x32xf32, #tpu.memory_space<vmem>>, vector<64x32xf32>,
    %c0_i32_8 = arith.constant 0 : i32
    %9 = arith.cmpi eq, %arg1, %c0_i32_8 : i32
    %10 = arith.extui %9 : i1 to i32
    %c0_i32_9 = arith.constant 0 : i32
    %11 = arith.cmpi ne, %10, %c0_i32_9 : i32
    scf.if %11 {
      %c0_10 = arith.constant 0 : index
      %c0_11 = arith.constant 0 : index
      %12 = vector.load %arg7[%c0_10, %c0_11] : memref<64x32xf32, #tpu.memory_space<vmem>>, vector<64x32xf32>
      %c0_12 = arith.constant 0 : index
      %c0_13 = arith.constant 0 : index
      %13 = vector.load %arg4[%c0_12, %c0_13] : memref<1x32xf32, #tpu.memory_space<vmem>>, vector<1x32xf32>
      %14 = vector.broadcast %13 : vector<1x32xf32> to vector<64x32xf32>
      %15 = arith.addf %12, %14 : vector<64x32xf32>
      %c0_14 = arith.constant 0 : index
      %c0_15 = arith.constant 0 : index
      %16 = vector.load %arg5[%c0_14, %c0_15] : memref<64x32xf32, #tpu.memory_space<vmem>>, vector<64x32xf32>
      %17 = arith.addf %15, %16 : vector<64x32xf32>
      %cst_16 = arith.constant 0.000000e+00 : f32
      %18 = vector.broadcast %cst_16 : f32 to vector<64x32xf32>
      %19 = arith.maximumf %17, %18 : vector<64x32xf32>
      %c0_17 = arith.constant 0 : index
      %c0_18 = arith.constant 0 : index
      %20 = vector.load %arg6[%c0_17, %c0_18] : memref<64x32xf32, #tpu.memory_space<vmem>>, vector<64x32xf32>
      tpu.vector_store %arg6[%c0_17, %c0_18], %19 {strides = array<i32>} : memref<64x32xf32, #tpu.memory_space<vmem>>, vector<64x32xf32>,
    } else {
    }
    return
  }
  func.func @transform_0(%arg0: i32, %arg1: i32) -> (i32, i32) {
    %c0_i32 = arith.constant 0 : i32
    return %arg0, %arg1 : i32, i32
  }
  func.func @transform_1(%arg0: i32, %arg1: i32) -> (i32, i32) {
    %c0_i32 = arith.constant 0 : i32
    %c0_i32_0 = arith.constant 0 : i32
    return %arg1, %c0_i32 : i32, i32
  }
  func.func @transform_2(%arg0: i32, %arg1: i32) -> (i32, i32) {
    %c0_i32 = arith.constant 0 : i32
    %c0_i32_0 = arith.constant 0 : i32
    %c0_i32_1 = arith.constant 0 : i32
    return %c0_i32, %c0_i32_0 : i32, i32
  }
  func.func @transform_3(%arg0: i32, %arg1: i32) -> (i32, i32) {
    %c0_i32 = arith.constant 0 : i32
    %c0_i32_0 = arith.constant 0 : i32
    return %arg0, %c0_i32 : i32, i32
  }
  func.func @transform_4(%arg0: i32, %arg1: i32) -> (i32, i32) {
    %c0_i32 = arith.constant 0 : i32
    %c0_i32_0 = arith.constant 0 : i32
    return %arg0, %c0_i32 : i32, i32
  }
}

</mosaic_0001>

<bundles_post_ra>
// kernel: _lambda_.6
= control target key start
LH: loop header
LB: loop body
LE: loop exit
PB: predicated region body
PF: predicated region fallthrough
CT: control target
= control target key end

     0   :  { %s637_s12 = smov 0   ;;  %s639_s13 = smov 0   ;;  %s718_s0 = inlined_call_operand.vmem [shape: f32[128,16], index: 0, kind: input, shape index: {}]   ;;  %s719_s1 = inlined_call_operand.vmem [shape: f32[16,32], index: 1, kind: input, shape index: {}]   ;;  %s720_s2 = inlined_call_operand.vmem [shape: f32[1,32], index: 2, kind: input, shape index: {}]   ;;  %s721_s3 = inlined_call_operand.vmem [shape: f32[128,32], index: 3, kind: output, shape index: {}]  }
   0x1   :  { %s641_s14 = smov 0  }
   0x2 LB: > { %s25_s15 = sadd.s32 1, %s610_s13  ;;  %p519_p0 = scmp.ge.s32.totalorder %s614_s14, 1  ;;  %s614_s14 = sphi %s641_s14, %s13_s14   ;;  %s610_s13 = sphi %s639_s13, %s723_s13   ;;  %s606_s12 = sphi %s637_s12, %s722_s12  }
   0x3   : > { %p27_p1 = scmp.ge.s32.totalorder %s25_s15, 2  ;;  %p166_p2 = scmp.lt.s32.totalorder %s614_s14, 3 }
   0x5   : > { %s725_s15 = smov (%p27_p1, %s25_s15), 0  ;;  %p167_p3 = pnand %p519_p0, %p166_p2 }
   0x6   : > { %v248_v0 = vld [vmem:[%s719_s1] sm:$0xff] (!%p167_p3)  ;;  %v249_v1 = vld [vmem:[%s719_s1 + $0x8] sm:$0xff] (!%p167_p3)  ;;  %s520_s20 = sshll.u32 (!%p167_p3), %s606_s12, 3  ;;  %vm223_vm0 = vcmask (!%p167_p3), 261120   ;;  %v616_v3 = vmov (!%p167_p3), 0.0   ;;  %vm250_vm1 = vcmask (!%p167_p3), 130048  }
   0x7   : > { %170 = sbr.rel (%p167_p3) target bundleno = 250 (0xfa), region = 32  ;;  %v561_v2 = vpack.c.bf16 (!%p167_p3), %v249_v1, %v248_v0  ;;  %p199_p4 = scmp.lt.s32.totalorder (!%p167_p3), %s520_s20, 15  ;;  %225 = vst.msk [vmem:[#allocation2 + $0x8] sm:$0xff] (!%p167_p3), %vm223_vm0, %v616_v3  ;;  %224 = vst.msk [vmem:[#allocation2] sm:$0xff] (!%p167_p3), %vm223_vm0, %v616_v3  ;;  %v532_v36 = vld [vmem:[%s720_s2] ss:$0 sm:$0xff] (!%p167_p3) }
   0x8   : > { %226 = vst.msk [vmem:[#allocation2 + $0x10] sm:$0xff] (!%p167_p3), %vm223_vm0, %v616_v3  ;;  %227 = vst.msk [vmem:[#allocation2 + $0x18] sm:$0xff] (!%p167_p3), %vm223_vm0, %v616_v3 }
   0x9   : > { %228 = vst.msk [vmem:[#allocation2 + $0x20] sm:$0xff] (!%p167_p3), %vm223_vm0, %v616_v3  ;;  %229 = vst.msk [vmem:[#allocation2 + $0x28] sm:$0xff] (!%p167_p3), %vm223_vm0, %v616_v3  ;;  %562 = vmatprep.subr.bf16.mxu0 (!%p167_p3), %v561_v2  ;;  %565 = vmatprep.subr.bf16.mxu1 (!%p167_p3), %v561_v2 }
   0xa   : > { %230 = vst.msk [vmem:[#allocation2 + $0x30] sm:$0xff] (!%p167_p3), %vm223_vm0, %v616_v3  ;;  %231 = vst.msk [vmem:[#allocation2 + $0x38] sm:$0xff] (!%p167_p3), %vm223_vm0, %v616_v3  ;;  %564 = vmatpush3.bf16.msra.mxu0 (!%p167_p3), %v561_v2  ;;  %566 = vmatpush3.bf16.msra.mxu1 (!%p167_p3), %v561_v2 }
   0xe   : > { %s727_s20 = smov (!%p199_p4, %s520_s20), 15  ;;  %v233_v12 = vld [vmem:[#allocation2 + $0x8] sm:$0xff]  ;;  %v232_v14 = vld [vmem:[#allocation2] sm:$0xff] }
   0xf   : > { %s521_s21 = sshll.u32 %s727_s20, 3  ;;  %v235_v24 = vld [vmem:[#allocation2 + $0x18] sm:$0xff]  ;;  %v234_v26 = vld [vmem:[#allocation2 + $0x10] sm:$0xff] }
  0x10   : > { %s205_s24 = scalar_lea.vmem %s718_s0, %s521_s21  ;;  %v237_v13 = vld [vmem:[#allocation2 + $0x28] sm:$0xff]  ;;  %v236_v15 = vld [vmem:[#allocation2 + $0x20] sm:$0xff]  ;;  %s217_s29 = scalar_lea.vmem %s721_s3, %s521_s21 }
  0x11   : > { %v240_v4 = vld [vmem:[%s205_s24] sm:$0xff]  ;;  %v241_v6 = vld [vmem:[%s205_s24 + $0x8] sm:$0xff]  ;;  %v242_v8 = vld [vmem:[%s205_s24 + $0x10] sm:$0xff] }
  0x12   : > { %v244_v5 = vld [vmem:[%s205_s24 + $0x20] sm:$0xff]  ;;  %549 = vmatprep.mubr.msk.f32.mxu0 %vm250_vm1, %v240_v4  ;;  %v245_v7 = vld [vmem:[%s205_s24 + $0x28] sm:$0xff]  ;;  %v246_v9 = vld [vmem:[%s205_s24 + $0x30] sm:$0xff] }
  0x13   : > { %555 = vmatprep.mubr.msk.f32.mxu1 %vm250_vm1, %v244_v5  ;;  %550 = vmatmul.mubr.msk.f32.vlgmr.msra.gmra.mrb[0].mxu0 %vm250_vm1, %v241_v6  ;;  %v243_v10 = vld [vmem:[%s205_s24 + $0x18] sm:$0xff]  ;;  %v238_v27 = vld [vmem:[#allocation2 + $0x30] sm:$0xff] }
  0x14   : > { %556 = vmatmul.mubr.msk.f32.vlgmr.msra.gmra.mrb[0].mxu1 %vm250_vm1, %v245_v7  ;;  %552 = vmatprep.mubr.msk.f32.mxu0 %vm250_vm1, %v242_v8  ;;  %v247_v11 = vld [vmem:[%s205_s24 + $0x38] sm:$0xff] }
  0x15   : > { %558 = vmatprep.mubr.msk.f32.mxu1 %vm250_vm1, %v246_v9  ;;  %v239_v25 = vld [vmem:[#allocation2 + $0x38] sm:$0xff] }
  0x17   : > { %553 = vmatmul.mubr.msk.f32.gmra.mrb[2].mxu0 %vm250_vm1, %v243_v10 }
  0x18   : > { %559 = vmatmul.mubr.msk.f32.gmra.mrb[2].mxu1 %vm250_vm1, %v247_v11 }
  0xe6   : > { %v551_v16 = vpop.f32.mrb[0].mxu0 }
  0xe7   : > { %v557_v17 = vpop.f32.mrb[0].mxu1  ;;  %v381_v18 = vadd.f32 %v551_v16, %v233_v12  ;;  %v341_v20 = vpop.f32.mrb[1].mxu0 }
  0xe8   : > { %v385_v19 = vadd.f32 %v557_v17, %v237_v13  ;;  %v361_v21 = vpop.f32.mrb[1].mxu1  ;;  %v380_v22 = vadd.f32 %v341_v20, %v232_v14 }
  0xe9   : > { %v384_v23 = vadd.f32 %v361_v21, %v236_v15  ;;  %390 = vst.msk [vmem:[#allocation2 + $0x8] sm:$0xff] %vm223_vm0, %v381_v18 }
  0xea   : > { %394 = vst.msk [vmem:[#allocation2 + $0x28] sm:$0xff] %vm223_vm0, %v385_v19  ;;  %389 = vst.msk [vmem:[#allocation2] sm:$0xff] %vm223_vm0, %v380_v22  ;;  %v554_v28 = vpop.f32.mrb[2].mxu0 }
  0xeb   : > { %393 = vst.msk [vmem:[#allocation2 + $0x20] sm:$0xff] %vm223_vm0, %v384_v23  ;;  %v560_v29 = vpop.f32.mrb[2].mxu1  ;;  %v383_v30 = vadd.f32 %v554_v28, %v235_v24  ;;  %v351_v32 = vpop.f32.mrb[3].mxu0 }
  0xec   : > { %v387_v31 = vadd.f32 %v560_v29, %v239_v25  ;;  %v371_v33 = vpop.f32.mrb[3].mxu1  ;;  %v382_v34 = vadd.f32 %v351_v32, %v234_v26 }
  0xed   : > { %v386_v35 = vadd.f32 %v371_v33, %v238_v27  ;;  %392 = vst.msk [vmem:[#allocation2 + $0x18] sm:$0xff] %vm223_vm0, %v383_v30 }
  0xee   : > { %396 = vst.msk [vmem:[#allocation2 + $0x38] sm:$0xff] %vm223_vm0, %v387_v31  ;;  %391 = vst.msk [vmem:[#allocation2 + $0x10] sm:$0xff] %vm223_vm0, %v382_v34 }
  0xef   : > { %395 = vst.msk [vmem:[#allocation2 + $0x30] sm:$0xff] %vm223_vm0, %v386_v35 }
  0xf0   : > { %v401_v37 = vld [vmem:[#allocation2 + $0x8] sm:$0xff] }
  0xf1   : > { %v405_v38 = vld [vmem:[#allocation2 + $0x28] sm:$0xff]  ;;  %v416_v39 = vadd.f32 %v532_v36, %v401_v37  ;;  %v400_v41 = vld [vmem:[#allocation2] sm:$0xff] }
  0xf2   : > { %v420_v40 = vadd.f32 %v532_v36, %v405_v38  ;;  %v404_v42 = vld [vmem:[#allocation2 + $0x20] sm:$0xff]  ;;  %v415_v43 = vadd.f32 %v532_v36, %v400_v41 }
  0xf3   : > { %v419_v44 = vadd.f32 %v532_v36, %v404_v42  ;;  %424 = vst.msk [vmem:[%s217_s29 + $0x8] sm:$0xff] %vm223_vm0, %v416_v39 }
  0xf4   : > { %428 = vst.msk [vmem:[%s217_s29 + $0x28] sm:$0xff] %vm223_vm0, %v420_v40  ;;  %423 = vst.msk [vmem:[%s217_s29] sm:$0xff] %vm223_vm0, %v415_v43  ;;  %v403_v45 = vld [vmem:[#allocation2 + $0x18] sm:$0xff] }
  0xf5   : > { %427 = vst.msk [vmem:[%s217_s29 + $0x20] sm:$0xff] %vm223_vm0, %v419_v44  ;;  %v407_v46 = vld [vmem:[#allocation2 + $0x38] sm:$0xff]  ;;  %v418_v47 = vadd.f32 %v532_v36, %v403_v45  ;;  %v402_v49 = vld [vmem:[#allocation2 + $0x10] sm:$0xff] }
  0xf6   : > { %v422_v48 = vadd.f32 %v532_v36, %v407_v46  ;;  %v406_v50 = vld [vmem:[#allocation2 + $0x30] sm:$0xff]  ;;  %v417_v51 = vadd.f32 %v532_v36, %v402_v49 }
  0xf7   : > { %v421_v52 = vadd.f32 %v532_v36, %v406_v50  ;;  %426 = vst.msk [vmem:[%s217_s29 + $0x18] sm:$0xff] %vm223_vm0, %v418_v47 }
  0xf8   : > { %430 = vst.msk [vmem:[%s217_s29 + $0x38] sm:$0xff] %vm223_vm0, %v422_v48  ;;  %425 = vst.msk [vmem:[%s217_s29 + $0x10] sm:$0xff] %vm223_vm0, %v417_v51 }
  0xf9   : > { %429 = vst.msk [vmem:[%s217_s29 + $0x30] sm:$0xff] %vm223_vm0, %v421_v52 }
  0xfa PF: > { %s13_s14 = sadd.s32 1, %s614_s14   ;;  %s722_s12 = smov %s610_s13 }
  0xfb   : > { %p10_p5 = scmp.ge.s32.totalorder %s13_s14, 4   ;;  %s723_s13 = smov %s725_s15 }
  0xfd   :  { %12 = sbr.rel (!%p10_p5) target bundleno = 2 (0x2), region = 73 }

// kernel: _lambda_.4
= control target key start
LH: loop header
LB: loop body
LE: loop exit
PB: predicated region body
PF: predicated region fallthrough
CT: control target
= control target key end

     0   :  { %s1137_s12 = smov 0   ;;  %s1139_s13 = smov 0   ;;  %s1429_s0 = inlined_call_operand.vmem [shape: f32[512,16], index: 0, kind: input, shape index: {}]   ;;  %s1430_s1 = inlined_call_operand.vmem [shape: f32[16,8], index: 1, kind: input, shape index: {}]   ;;  %s1431_s2 = inlined_call_operand.vmem [shape: f32[1,8], index: 2, kind: input, shape index: {}]   ;;  %s1432_s3 = inlined_call_operand.vmem [shape: f32[512,8], index: 3, kind: output, shape index: {}]  }
   0x1   :  { %s1141_s14 = smov 0  }
   0x2 LB: > { %s25_s15 = sadd.s32 1, %s1110_s13  ;;  %p935_p0 = scmp.ge.s32.totalorder %s1114_s14, 1  ;;  %s1114_s14 = sphi %s1141_s14, %s13_s14   ;;  %s1110_s13 = sphi %s1139_s13, %s1435_s13   ;;  %s1106_s12 = sphi %s1137_s12, %s1434_s12  }
   0x3   : > { %p27_p1 = scmp.ge.s32.totalorder %s25_s15, 2  ;;  %p166_p2 = scmp.lt.s32.totalorder %s1114_s14, 3 }
   0x5   : > { %s1437_s15 = smov (%p27_p1, %s25_s15), 0  ;;  %p167_p3 = pnand %p935_p0, %p166_p2 }
   0x6   : > { %v320_v0 = vld [vmem:[%s1430_s1] sm:$0xff] (!%p167_p3)  ;;  %v321_v1 = vld [vmem:[%s1430_s1 + $0x8] sm:$0xff] (!%p167_p3)  ;;  %s936_s20 = sshll.u32 (!%p167_p3), %s1106_s12, 5  ;;  %vm223_vm0 = vcmask (!%p167_p3), 64512   ;;  %v1116_v3 = vmov (!%p167_p3), 0.0   ;;  %vm322_vm1 = vcmask (!%p167_p3), 130048  }
   0x7   : > { %170 = sbr.rel (%p167_p3) target bundleno = 277 (0x115), region = 32  ;;  %v1061_v2 = vpack.c.bf16 (!%p167_p3), %v321_v1, %v320_v0  ;;  %p1166_p4 = scmp.lt.s32.totalorder (!%p167_p3), %s936_s20, 63  ;;  %225 = vst.msk [vmem:[#allocation2 + $0x8] sm:$0xff] (!%p167_p3), %vm223_vm0, %v1116_v3  ;;  %224 = vst.msk [vmem:[#allocation2] sm:$0xff] (!%p167_p3), %vm223_vm0, %v1116_v3  ;;  %v1289_v0 = vld [vmem:[%s1431_s2] ss:$0 sm:$0xff] (!%p167_p3) }
   0x8   : > { %226 = vst.msk [vmem:[#allocation2 + $0x10] sm:$0xff] (!%p167_p3), %vm223_vm0, %v1116_v3  ;;  %227 = vst.msk [vmem:[#allocation2 + $0x18] sm:$0xff] (!%p167_p3), %vm223_vm0, %v1116_v3 }
   0x9   : > { %228 = vst.msk [vmem:[#allocation2 + $0x20] sm:$0xff] (!%p167_p3), %vm223_vm0, %v1116_v3  ;;  %229 = vst.msk [vmem:[#allocation2 + $0x28] sm:$0xff] (!%p167_p3), %vm223_vm0, %v1116_v3  ;;  %1062 = vmatprep.subr.bf16.mxu0 (!%p167_p3), %v1061_v2  ;;  %1065 = vmatprep.subr.bf16.mxu1 (!%p167_p3), %v1061_v2 }
   0xa   : > { %230 = vst.msk [vmem:[#allocation2 + $0x30] sm:$0xff] (!%p167_p3), %vm223_vm0, %v1116_v3  ;;  %231 = vst.msk [vmem:[#allocation2 + $0x38] sm:$0xff] (!%p167_p3), %vm223_vm0, %v1116_v3  ;;  %1064 = vmatpush3.bf16.msra.mxu0 (!%p167_p3), %v1061_v2  ;;  %1066 = vmatpush3.bf16.msra.mxu1 (!%p167_p3), %v1061_v2 }
   0xb   : > { %232 = vst.msk [vmem:[#allocation2 + $0x40] sm:$0xff] (!%p167_p3), %vm223_vm0, %v1116_v3  ;;  %233 = vst.msk [vmem:[#allocation2 + $0x48] sm:$0xff] (!%p167_p3), %vm223_vm0, %v1116_v3 }
   0xc   : > { %234 = vst.msk [vmem:[#allocation2 + $0x50] sm:$0xff] (!%p167_p3), %vm223_vm0, %v1116_v3  ;;  %235 = vst.msk [vmem:[#allocation2 + $0x58] sm:$0xff] (!%p167_p3), %vm223_vm0, %v1116_v3 }
   0xd   : > { %236 = vst.msk [vmem:[#allocation2 + $0x60] sm:$0xff] (!%p167_p3), %vm223_vm0, %v1116_v3  ;;  %237 = vst.msk [vmem:[#allocation2 + $0x68] sm:$0xff] (!%p167_p3), %vm223_vm0, %v1116_v3 }
   0xe   : > { %238 = vst.msk [vmem:[#allocation2 + $0x70] sm:$0xff] %vm223_vm0, %v1116_v3  ;;  %239 = vst.msk [vmem:[#allocation2 + $0x78] sm:$0xff] %vm223_vm0, %v1116_v3  ;;  %s1439_s20 = smov (!%p1166_p4, %s936_s20), 63  ;;  %v257_v36 = vld [vmem:[#allocation2 + $0x8] sm:$0xff]  ;;  %v256_v38 = vld [vmem:[#allocation2] sm:$0xff] }
   0xf   : > { %240 = vst.msk [vmem:[#allocation2 + $0x80] sm:$0xff] %vm223_vm0, %v1116_v3  ;;  %241 = vst.msk [vmem:[#allocation2 + $0x88] sm:$0xff] %vm223_vm0, %v1116_v3  ;;  %s937_s22 = sshll.u32 %s1439_s20, 3  ;;  %v259_v48 = vld [vmem:[#allocation2 + $0x18] sm:$0xff]  ;;  %v258_v50 = vld [vmem:[#allocation2 + $0x10] sm:$0xff] }
  0x10   : > { %242 = vst.msk [vmem:[#allocation2 + $0x90] sm:$0xff] %vm223_vm0, %v1116_v3  ;;  %243 = vst.msk [vmem:[#allocation2 + $0x98] sm:$0xff] %vm223_vm0, %v1116_v3  ;;  %s1214_s25 = scalar_lea.vmem %s1429_s0, %s937_s22  ;;  %v261_v60 = vld [vmem:[#allocation2 + $0x28] sm:$0xff]  ;;  %v260_v62 = vld [vmem:[#allocation2 + $0x20] sm:$0xff]  ;;  %s1302_s30 = scalar_lea.vmem %s1432_s3, %s937_s22 }
  0x11   : > { %244 = vst.msk [vmem:[#allocation2 + $0xa0] sm:$0xff] %vm223_vm0, %v1116_v3  ;;  %245 = vst.msk [vmem:[#allocation2 + $0xa8] sm:$0xff] %vm223_vm0, %v1116_v3  ;;  %v288_v4 = vld [vmem:[%s1214_s25] sm:$0xff]  ;;  %v289_v6 = vld [vmem:[%s1214_s25 + $0x8] sm:$0xff] }
  0x12   : > { %246 = vst.msk [vmem:[#allocation2 + $0xb0] sm:$0xff] %vm223_vm0, %v1116_v3  ;;  %247 = vst.msk [vmem:[#allocation2 + $0xb8] sm:$0xff] %vm223_vm0, %v1116_v3  ;;  %v304_v5 = vld [vmem:[%s1214_s25 + $0x80] sm:$0xff]  ;;  %1013 = vmatprep.mubr.msk.f32.mxu0 %vm322_vm1, %v288_v4  ;;  %v305_v7 = vld [vmem:[%s1214_s25 + $0x88] sm:$0xff] }
  0x13   : > { %248 = vst.msk [vmem:[#allocation2 + $0xc0] sm:$0xff] %vm223_vm0, %v1116_v3  ;;  %249 = vst.msk [vmem:[#allocation2 + $0xc8] sm:$0xff] %vm223_vm0, %v1116_v3  ;;  %1037 = vmatprep.mubr.msk.f32.mxu1 %vm322_vm1, %v304_v5  ;;  %v290_v8 = vld [vmem:[%s1214_s25 + $0x10] sm:$0xff]  ;;  %1014 = vmatmul.mubr.msk.f32.vlgmr.msra.gmra.mrb[0].mxu0 %vm322_vm1, %v289_v6  ;;  %v291_v10 = vld [vmem:[%s1214_s25 + $0x18] sm:$0xff] }
  0x14   : > { %250 = vst.msk [vmem:[#allocation2 + $0xd0] sm:$0xff] %vm223_vm0, %v1116_v3  ;;  %251 = vst.msk [vmem:[#allocation2 + $0xd8] sm:$0xff] %vm223_vm0, %v1116_v3  ;;  %v306_v9 = vld [vmem:[%s1214_s25 + $0x90] sm:$0xff]  ;;  %1038 = vmatmul.mubr.msk.f32.vlgmr.msra.gmra.mrb[0].mxu1 %vm322_vm1, %v305_v7  ;;  %1016 = vmatprep.mubr.msk.f32.mxu0 %vm322_vm1, %v290_v8  ;;  %v307_v11 = vld [vmem:[%s1214_s25 + $0x98] sm:$0xff] }
  0x15   : > { %252 = vst.msk [vmem:[#allocation2 + $0xe0] sm:$0xff] %vm223_vm0, %v1116_v3  ;;  %253 = vst.msk [vmem:[#allocation2 + $0xe8] sm:$0xff] %vm223_vm0, %v1116_v3  ;;  %1040 = vmatprep.mubr.msk.f32.mxu1 %vm322_vm1, %v306_v9  ;;  %v292_v12 = vld [vmem:[%s1214_s25 + $0x20] sm:$0xff]  ;;  %v293_v14 = vld [vmem:[%s1214_s25 + $0x28] sm:$0xff] }
  0x16   : > { %254 = vst.msk [vmem:[#allocation2 + $0xf0] sm:$0xff] %vm223_vm0, %v1116_v3  ;;  %255 = vst.msk [vmem:[#allocation2 + $0xf8] sm:$0xff] %vm223_vm0, %v1116_v3  ;;  %v308_v13 = vld [vmem:[%s1214_s25 + $0xa0] sm:$0xff]  ;;  %v309_v15 = vld [vmem:[%s1214_s25 + $0xa8] sm:$0xff] }
  0x17   : > { %1017 = vmatmul.mubr.msk.f32.gmra.mrb[2].mxu0 %vm322_vm1, %v291_v10  ;;  %v294_v16 = vld [vmem:[%s1214_s25 + $0x30] sm:$0xff]  ;;  %v295_v18 = vld [vmem:[%s1214_s25 + $0x38] sm:$0xff]  ;;  %v296_v20 = vld [vmem:[%s1214_s25 + $0x40] sm:$0xff] }
  0x18   : > { %1041 = vmatmul.mubr.msk.f32.gmra.mrb[2].mxu1 %vm322_vm1, %v307_v11  ;;  %1019 = vmatprep.mubr.msk.f32.mxu0 %vm322_vm1, %v292_v12  ;;  %v310_v17 = vld [vmem:[%s1214_s25 + $0xb0] sm:$0xff]  ;;  %v311_v19 = vld [vmem:[%s1214_s25 + $0xb8] sm:$0xff]  ;;  %v312_v21 = vld [vmem:[%s1214_s25 + $0xc0] sm:$0xff] }
  0x19   : > { %1043 = vmatprep.mubr.msk.f32.mxu1 %vm322_vm1, %v308_v13  ;;  %v297_v22 = vld [vmem:[%s1214_s25 + $0x48] sm:$0xff]  ;;  %v298_v24 = vld [vmem:[%s1214_s25 + $0x50] sm:$0xff]  ;;  %v299_v26 = vld [vmem:[%s1214_s25 + $0x58] sm:$0xff] }
  0x1a   : > { %v313_v23 = vld [vmem:[%s1214_s25 + $0xc8] sm:$0xff]  ;;  %v314_v25 = vld [vmem:[%s1214_s25 + $0xd0] sm:$0xff]  ;;  %v315_v27 = vld [vmem:[%s1214_s25 + $0xd8] sm:$0xff] }
  0x1b   : > { %1020 = vmatmul.mubr.msk.f32.gmra.mrb[4].mxu0 %vm322_vm1, %v293_v14  ;;  %v300_v28 = vld [vmem:[%s1214_s25 + $0x60] sm:$0xff]  ;;  %v301_v30 = vld [vmem:[%s1214_s25 + $0x68] sm:$0xff]  ;;  %v302_v32 = vld [vmem:[%s1214_s25 + $0x70] sm:$0xff] }
  0x1c   : > { %1044 = vmatmul.mubr.msk.f32.gmra.mrb[4].mxu1 %vm322_vm1, %v309_v15  ;;  %1022 = vmatprep.mubr.msk.f32.mxu0 %vm322_vm1, %v294_v16  ;;  %v316_v29 = vld [vmem:[%s1214_s25 + $0xe0] sm:$0xff]  ;;  %v317_v31 = vld [vmem:[%s1214_s25 + $0xe8] sm:$0xff]  ;;  %v318_v33 = vld [vmem:[%s1214_s25 + $0xf0] sm:$0xff] }
  0x1d   : > { %1046 = vmatprep.mubr.msk.f32.mxu1 %vm322_vm1, %v310_v17  ;;  %v303_v34 = vld [vmem:[%s1214_s25 + $0x78] sm:$0xff]  ;;  %v273_v37 = vld [vmem:[#allocation2 + $0x88] sm:$0xff]  ;;  %v272_v39 = vld [vmem:[#allocation2 + $0x80] sm:$0xff] }
  0x1e   : > { %v319_v35 = vld [vmem:[%s1214_s25 + $0xf8] sm:$0xff]  ;;  %v274_v51 = vld [vmem:[#allocation2 + $0x90] sm:$0xff]  ;;  %v277_v61 = vld [vmem:[#allocation2 + $0xa8] sm:$0xff] }
  0x1f   : > { %1023 = vmatmul.mubr.msk.f32.gmra.mrb[6].mxu0 %vm322_vm1, %v295_v18  ;;  %v275_v49 = vld [vmem:[#allocation2 + $0x98] sm:$0xff]  ;;  %v276_v63 = vld [vmem:[#allocation2 + $0xa0] sm:$0xff]  ;;  %v262_v13 = vld [vmem:[#allocation2 + $0x30] sm:$0xff] }
  0x20   : > { %1047 = vmatmul.mubr.msk.f32.gmra.mrb[6].mxu1 %vm322_vm1, %v311_v19  ;;  %1025 = vmatprep.mubr.msk.f32.mxu0 %vm322_vm1, %v296_v20  ;;  %v263_v7 = vld [vmem:[#allocation2 + $0x38] sm:$0xff]  ;;  %v278_v18 = vld [vmem:[#allocation2 + $0xb0] sm:$0xff] }
  0x21   : > { %1049 = vmatprep.mubr.msk.f32.mxu1 %vm322_vm1, %v312_v21  ;;  %v279_v8 = vld [vmem:[#allocation2 + $0xb8] sm:$0xff] }
  0x23   : > { %1026 = vmatmul.mubr.msk.f32.gmra.mrb[8].mxu0 %vm322_vm1, %v297_v22 }
  0x24   : > { %1050 = vmatmul.mubr.msk.f32.gmra.mrb[8].mxu1 %vm322_vm1, %v313_v23  ;;  %1028 = vmatprep.mubr.msk.f32.mxu0 %vm322_vm1, %v298_v24 }
  0x25   : > { %1052 = vmatprep.mubr.msk.f32.mxu1 %vm322_vm1, %v314_v25 }
  0x27   : > { %1029 = vmatmul.mubr.msk.f32.gmra.mrb[10].mxu0 %vm322_vm1, %v299_v26 }
  0x28   : > { %1053 = vmatmul.mubr.msk.f32.gmra.mrb[10].mxu1 %vm322_vm1, %v315_v27  ;;  %1031 = vmatprep.mubr.msk.f32.mxu0 %vm322_vm1, %v300_v28 }
  0x29   : > { %1055 = vmatprep.mubr.msk.f32.mxu1 %vm322_vm1, %v316_v29  ;;  %v265_v29 = vld [vmem:[#allocation2 + $0x48] sm:$0xff] }
  0x2b   : > { %1032 = vmatmul.mubr.msk.f32.gmra.mrb[12].mxu0 %vm322_vm1, %v301_v30  ;;  %v281_v30 = vld [vmem:[#allocation2 + $0xc8] sm:$0xff] }
  0x2c   : > { %1056 = vmatmul.mubr.msk.f32.gmra.mrb[12].mxu1 %vm322_vm1, %v317_v31  ;;  %1034 = vmatprep.mubr.msk.f32.mxu0 %vm322_vm1, %v302_v32 }
  0x2d   : > { %1058 = vmatprep.mubr.msk.f32.mxu1 %vm322_vm1, %v318_v33 }
  0x2f   : > { %1035 = vmatmul.mubr.msk.f32.gmra.mrb[14].mxu0 %vm322_vm1, %v303_v34 }
  0x30   : > { %1059 = vmatmul.mubr.msk.f32.gmra.mrb[14].mxu1 %vm322_vm1, %v319_v35 }
  0xe6   : > { %v1015_v40 = vpop.f32.mrb[0].mxu0 }
  0xe7   : > { %v1039_v41 = vpop.f32.mrb[0].mxu1  ;;  %v645_v42 = vadd.f32 %v1015_v40, %v257_v36  ;;  %v485_v44 = vpop.f32.mrb[1].mxu0 }
  0xe8   : > { %v661_v43 = vadd.f32 %v1039_v41, %v273_v37  ;;  %v565_v45 = vpop.f32.mrb[1].mxu1  ;;  %v644_v46 = vadd.f32 %v485_v44, %v256_v38  ;;  %v264_v37 = vld [vmem:[#allocation2 + $0x40] sm:$0xff] }
  0xe9   : > { %v660_v47 = vadd.f32 %v565_v45, %v272_v39  ;;  %678 = vst.msk [vmem:[#allocation2 + $0x8] sm:$0xff] %vm223_vm0, %v645_v42  ;;  %v280_v42 = vld [vmem:[#allocation2 + $0xc0] sm:$0xff] }
  0xea   : > { %694 = vst.msk [vmem:[#allocation2 + $0x88] sm:$0xff] %vm223_vm0, %v661_v43  ;;  %677 = vst.msk [vmem:[#allocation2] sm:$0xff] %vm223_vm0, %v644_v46  ;;  %v1018_v52 = vpop.f32.mrb[2].mxu0 }
  0xeb   : > { %693 = vst.msk [vmem:[#allocation2 + $0x80] sm:$0xff] %vm223_vm0, %v660_v47  ;;  %v1042_v53 = vpop.f32.mrb[2].mxu1  ;;  %v647_v54 = vadd.f32 %v1018_v52, %v259_v48  ;;  %v495_v56 = vpop.f32.mrb[3].mxu0 }
  0xec   : > { %v663_v55 = vadd.f32 %v1042_v53, %v275_v49  ;;  %v575_v57 = vpop.f32.mrb[3].mxu1  ;;  %v646_v58 = vadd.f32 %v495_v56, %v258_v50  ;;  %v267_v53 = vld [vmem:[#allocation2 + $0x58] sm:$0xff] }
  0xed   : > { %v662_v59 = vadd.f32 %v575_v57, %v274_v51  ;;  %680 = vst.msk [vmem:[#allocation2 + $0x18] sm:$0xff] %vm223_vm0, %v647_v54  ;;  %v283_v54 = vld [vmem:[#allocation2 + $0xd8] sm:$0xff] }
  0xee   : > { %696 = vst.msk [vmem:[#allocation2 + $0x98] sm:$0xff] %vm223_vm0, %v663_v55  ;;  %679 = vst.msk [vmem:[#allocation2 + $0x10] sm:$0xff] %vm223_vm0, %v646_v58  ;;  %v1021_v1 = vpop.f32.mrb[4].mxu0 }
  0xef   : > { %695 = vst.msk [vmem:[#allocation2 + $0x90] sm:$0xff] %vm223_vm0, %v662_v59  ;;  %v1045_v2 = vpop.f32.mrb[4].mxu1  ;;  %v649_v3 = vadd.f32 %v1021_v1, %v261_v60  ;;  %v505_v5 = vpop.f32.mrb[5].mxu0 }
  0xf0   : > { %v665_v4 = vadd.f32 %v1045_v2, %v277_v61  ;;  %v585_v6 = vpop.f32.mrb[5].mxu1  ;;  %v713_v9 = vld [vmem:[#allocation2 + $0x8] sm:$0xff]  ;;  %v648_v11 = vadd.f32 %v505_v5, %v260_v62  ;;  %v266_v61 = vld [vmem:[#allocation2 + $0x50] sm:$0xff] }
  0xf1   : > { %v729_v10 = vld [vmem:[#allocation2 + $0x88] sm:$0xff]  ;;  %v664_v12 = vadd.f32 %v585_v6, %v276_v63  ;;  %v752_v14 = vadd.f32 %v1289_v0, %v713_v9  ;;  %v712_v16 = vld [vmem:[#allocation2] sm:$0xff]  ;;  %682 = vst.msk [vmem:[#allocation2 + $0x28] sm:$0xff] %vm223_vm0, %v649_v3  ;;  %v282_v3 = vld [vmem:[#allocation2 + $0xd0] sm:$0xff] }
  0xf2   : > { %v768_v15 = vadd.f32 %v1289_v0, %v729_v10  ;;  %v728_v17 = vld [vmem:[#allocation2 + $0x80] sm:$0xff]  ;;  %698 = vst.msk [vmem:[#allocation2 + $0xa8] sm:$0xff] %vm223_vm0, %v665_v4  ;;  %v751_v19 = vadd.f32 %v1289_v0, %v712_v16  ;;  %681 = vst.msk [vmem:[#allocation2 + $0x20] sm:$0xff] %vm223_vm0, %v648_v11  ;;  %v1024_v21 = vpop.f32.mrb[6].mxu0 }
  0xf3   : > { %v767_v20 = vadd.f32 %v1289_v0, %v728_v17  ;;  %697 = vst.msk [vmem:[#allocation2 + $0xa0] sm:$0xff] %vm223_vm0, %v664_v12  ;;  %v1048_v22 = vpop.f32.mrb[6].mxu1  ;;  %v784_v23 = vmax.f32 %v752_v14, 0.0  ;;  %v651_v25 = vadd.f32 %v1024_v21, %v263_v7  ;;  %v515_v27 = vpop.f32.mrb[7].mxu0  ;;  %v269_v14 = vld [vmem:[#allocation2 + $0x68] sm:$0xff] }
  0xf4   : > { %v800_v24 = vmax.f32 %v768_v15, 0.0  ;;  %v667_v26 = vadd.f32 %v1048_v22, %v279_v8  ;;  %v595_v28 = vpop.f32.mrb[7].mxu1  ;;  %v783_v31 = vmax.f32 %v751_v19, 0.0  ;;  %v715_v33 = vld [vmem:[#allocation2 + $0x18] sm:$0xff]  ;;  %v650_v35 = vadd.f32 %v515_v27, %v262_v13  ;;  %v285_v15 = vld [vmem:[#allocation2 + $0xe8] sm:$0xff]  ;;  %v268_v22 = vld [vmem:[#allocation2 + $0x60] sm:$0xff] }
  0xf5   : > { %v799_v32 = vmax.f32 %v767_v20, 0.0  ;;  %v731_v34 = vld [vmem:[#allocation2 + $0x98] sm:$0xff]  ;;  %v666_v36 = vadd.f32 %v595_v28, %v278_v18  ;;  %816 = vst.msk [vmem:[%s1302_s30 + $0x8] sm:$0xff] %vm223_vm0, %v784_v23  ;;  %v754_v38 = vadd.f32 %v1289_v0, %v715_v33  ;;  %v714_v40 = vld [vmem:[#allocation2 + $0x10] sm:$0xff]  ;;  %684 = vst.msk [vmem:[#allocation2 + $0x38] sm:$0xff] %vm223_vm0, %v651_v25 }
  0xf6   : > { %832 = vst.msk [vmem:[%s1302_s30 + $0x88] sm:$0xff] %vm223_vm0, %v800_v24  ;;  %v770_v39 = vadd.f32 %v1289_v0, %v731_v34  ;;  %v730_v41 = vld [vmem:[#allocation2 + $0x90] sm:$0xff]  ;;  %700 = vst.msk [vmem:[#allocation2 + $0xb8] sm:$0xff] %vm223_vm0, %v667_v26  ;;  %v753_v43 = vadd.f32 %v1289_v0, %v714_v40  ;;  %v1027_v45 = vpop.f32.mrb[8].mxu0  ;;  %v284_v27 = vld [vmem:[#allocation2 + $0xe0] sm:$0xff] }
  0xf7   : > { %815 = vst.msk [vmem:[%s1302_s30] sm:$0xff] %vm223_vm0, %v783_v31  ;;  %831 = vst.msk [vmem:[%s1302_s30 + $0x80] sm:$0xff] %vm223_vm0, %v799_v32  ;;  %v769_v44 = vadd.f32 %v1289_v0, %v730_v41  ;;  %v1051_v46 = vpop.f32.mrb[8].mxu1  ;;  %v786_v47 = vmax.f32 %v754_v38, 0.0  ;;  %v653_v49 = vadd.f32 %v1027_v45, %v265_v29  ;;  %v525_v51 = vpop.f32.mrb[9].mxu0  ;;  %v271_v38 = vld [vmem:[#allocation2 + $0x78] sm:$0xff] }
  0xf8   : > { %683 = vst.msk [vmem:[#allocation2 + $0x30] sm:$0xff] %vm223_vm0, %v650_v35  ;;  %699 = vst.msk [vmem:[#allocation2 + $0xb0] sm:$0xff] %vm223_vm0, %v666_v36  ;;  %v802_v48 = vmax.f32 %v770_v39, 0.0  ;;  %v669_v50 = vadd.f32 %v1051_v46, %v281_v30  ;;  %v605_v52 = vpop.f32.mrb[9].mxu1  ;;  %v785_v55 = vmax.f32 %v753_v43, 0.0  ;;  %v717_v57 = vld [vmem:[#allocation2 + $0x28] sm:$0xff]  ;;  %v652_v59 = vadd.f32 %v525_v51, %v264_v37 }
  0xf9   : > { %v801_v56 = vmax.f32 %v769_v44, 0.0  ;;  %v733_v58 = vld [vmem:[#allocation2 + $0xa8] sm:$0xff]  ;;  %v668_v60 = vadd.f32 %v605_v52, %v280_v42  ;;  %818 = vst.msk [vmem:[%s1302_s30 + $0x18] sm:$0xff] %vm223_vm0, %v786_v47  ;;  %v756_v62 = vadd.f32 %v1289_v0, %v717_v57  ;;  %v716_v1 = vld [vmem:[#allocation2 + $0x20] sm:$0xff]  ;;  %686 = vst.msk [vmem:[#allocation2 + $0x48] sm:$0xff] %vm223_vm0, %v653_v49 }
  0xfa   : > { %834 = vst.msk [vmem:[%s1302_s30 + $0x98] sm:$0xff] %vm223_vm0, %v802_v48  ;;  %v772_v63 = vadd.f32 %v1289_v0, %v733_v58  ;;  %v732_v2 = vld [vmem:[#allocation2 + $0xa0] sm:$0xff]  ;;  %702 = vst.msk [vmem:[#allocation2 + $0xc8] sm:$0xff] %vm223_vm0, %v669_v50  ;;  %v755_v4 = vadd.f32 %v1289_v0, %v716_v1  ;;  %v1030_v6 = vpop.f32.mrb[10].mxu0  ;;  %v287_v39 = vld [vmem:[#allocation2 + $0xf8] sm:$0xff] }
  0xfb   : > { %817 = vst.msk [vmem:[%s1302_s30 + $0x10] sm:$0xff] %vm223_vm0, %v785_v55  ;;  %833 = vst.msk [vmem:[%s1302_s30 + $0x90] sm:$0xff] %vm223_vm0, %v801_v56  ;;  %v771_v5 = vadd.f32 %v1289_v0, %v732_v2  ;;  %v1054_v7 = vpop.f32.mrb[10].mxu1  ;;  %v788_v8 = vmax.f32 %v756_v62, 0.0  ;;  %v655_v10 = vadd.f32 %v1030_v6, %v267_v53  ;;  %v535_v12 = vpop.f32.mrb[11].mxu0  ;;  %v270_v46 = vld [vmem:[#allocation2 + $0x70] sm:$0xff] }
  0xfc   : > { %685 = vst.msk [vmem:[#allocation2 + $0x40] sm:$0xff] %vm223_vm0, %v652_v59  ;;  %701 = vst.msk [vmem:[#allocation2 + $0xc0] sm:$0xff] %vm223_vm0, %v668_v60  ;;  %v804_v9 = vmax.f32 %v772_v63, 0.0  ;;  %v671_v11 = vadd.f32 %v1054_v7, %v283_v54  ;;  %v615_v13 = vpop.f32.mrb[11].mxu1  ;;  %v787_v16 = vmax.f32 %v755_v4, 0.0  ;;  %v719_v18 = vld [vmem:[#allocation2 + $0x38] sm:$0xff]  ;;  %v654_v20 = vadd.f32 %v535_v12, %v266_v61 }
  0xfd   : > { %v803_v17 = vmax.f32 %v771_v5, 0.0  ;;  %v735_v19 = vld [vmem:[#allocation2 + $0xb8] sm:$0xff]  ;;  %v670_v21 = vadd.f32 %v615_v13, %v282_v3  ;;  %820 = vst.msk [vmem:[%s1302_s30 + $0x28] sm:$0xff] %vm223_vm0, %v788_v8  ;;  %v758_v23 = vadd.f32 %v1289_v0, %v719_v18  ;;  %688 = vst.msk [vmem:[#allocation2 + $0x58] sm:$0xff] %vm223_vm0, %v655_v10  ;;  %v286_v51 = vld [vmem:[#allocation2 + $0xf0] sm:$0xff] }
  0xfe   : > { %836 = vst.msk [vmem:[%s1302_s30 + $0xa8] sm:$0xff] %vm223_vm0, %v804_v9  ;;  %v774_v24 = vadd.f32 %v1289_v0, %v735_v19  ;;  %704 = vst.msk [vmem:[#allocation2 + $0xd8] sm:$0xff] %vm223_vm0, %v671_v11  ;;  %v1033_v30 = vpop.f32.mrb[12].mxu0 }
  0xff   : > { %v718_v25 = vld [vmem:[#allocation2 + $0x30] sm:$0xff]  ;;  %819 = vst.msk [vmem:[%s1302_s30 + $0x20] sm:$0xff] %vm223_vm0, %v787_v16  ;;  %835 = vst.msk [vmem:[%s1302_s30 + $0xa0] sm:$0xff] %vm223_vm0, %v803_v17  ;;  %v1057_v31 = vpop.f32.mrb[12].mxu1  ;;  %v790_v32 = vmax.f32 %v758_v23, 0.0  ;;  %v657_v34 = vadd.f32 %v1033_v30, %v269_v14  ;;  %v545_v36 = vpop.f32.mrb[13].mxu0 }
 0x100   : > { %v734_v26 = vld [vmem:[#allocation2 + $0xb0] sm:$0xff]  ;;  %v757_v28 = vadd.f32 %v1289_v0, %v718_v25  ;;  %687 = vst.msk [vmem:[#allocation2 + $0x50] sm:$0xff] %vm223_vm0, %v654_v20  ;;  %703 = vst.msk [vmem:[#allocation2 + $0xd0] sm:$0xff] %vm223_vm0, %v670_v21  ;;  %v806_v33 = vmax.f32 %v774_v24, 0.0  ;;  %v673_v35 = vadd.f32 %v1057_v31, %v285_v15  ;;  %v625_v37 = vpop.f32.mrb[13].mxu1  ;;  %v721_v42 = vld [vmem:[#allocation2 + $0x48] sm:$0xff]  ;;  %v656_v44 = vadd.f32 %v545_v36, %v268_v22 }
 0x101   : > { %v773_v29 = vadd.f32 %v1289_v0, %v734_v26  ;;  %v737_v43 = vld [vmem:[#allocation2 + $0xc8] sm:$0xff]  ;;  %v672_v45 = vadd.f32 %v625_v37, %v284_v27  ;;  %822 = vst.msk [vmem:[%s1302_s30 + $0x38] sm:$0xff] %vm223_vm0, %v790_v32  ;;  %v760_v47 = vadd.f32 %v1289_v0, %v721_v42  ;;  %690 = vst.msk [vmem:[#allocation2 + $0x68] sm:$0xff] %vm223_vm0, %v657_v34 }
 0x102   : > { %v789_v40 = vmax.f32 %v757_v28, 0.0  ;;  %838 = vst.msk [vmem:[%s1302_s30 + $0xb8] sm:$0xff] %vm223_vm0, %v806_v33  ;;  %v776_v48 = vadd.f32 %v1289_v0, %v737_v43  ;;  %706 = vst.msk [vmem:[#allocation2 + $0xe8] sm:$0xff] %vm223_vm0, %v673_v35  ;;  %v1036_v54 = vpop.f32.mrb[14].mxu0 }
 0x103   : > { %v805_v41 = vmax.f32 %v773_v29, 0.0  ;;  %v720_v49 = vld [vmem:[#allocation2 + $0x40] sm:$0xff]  ;;  %689 = vst.msk [vmem:[#allocation2 + $0x60] sm:$0xff] %vm223_vm0, %v656_v44  ;;  %705 = vst.msk [vmem:[#allocation2 + $0xe0] sm:$0xff] %vm223_vm0, %v672_v45  ;;  %v1060_v55 = vpop.f32.mrb[14].mxu1  ;;  %v792_v56 = vmax.f32 %v760_v47, 0.0  ;;  %v659_v58 = vadd.f32 %v1036_v54, %v271_v38 }
 0x104   : > { %v736_v50 = vld [vmem:[#allocation2 + $0xc0] sm:$0xff]  ;;  %821 = vst.msk [vmem:[%s1302_s30 + $0x30] sm:$0xff] %vm223_vm0, %v789_v40  ;;  %v759_v52 = vadd.f32 %v1289_v0, %v720_v49  ;;  %v808_v57 = vmax.f32 %v776_v48, 0.0  ;;  %v675_v59 = vadd.f32 %v1060_v55, %v287_v39  ;;  %v555_v60 = vpop.f32.mrb[15].mxu0  ;;  %v635_v61 = vpop.f32.mrb[15].mxu1  ;;  %v723_v1 = vld [vmem:[#allocation2 + $0x58] sm:$0xff] }
 0x105   : > { %837 = vst.msk [vmem:[%s1302_s30 + $0xb0] sm:$0xff] %vm223_vm0, %v805_v41  ;;  %v775_v53 = vadd.f32 %v1289_v0, %v736_v50  ;;  %v739_v2 = vld [vmem:[#allocation2 + $0xd8] sm:$0xff]  ;;  %v658_v3 = vadd.f32 %v555_v60, %v270_v46  ;;  %v674_v4 = vadd.f32 %v635_v61, %v286_v51  ;;  %824 = vst.msk [vmem:[%s1302_s30 + $0x48] sm:$0xff] %vm223_vm0, %v792_v56 }
 0x106   : > { %v791_v62 = vmax.f32 %v759_v52, 0.0  ;;  %840 = vst.msk [vmem:[%s1302_s30 + $0xc8] sm:$0xff] %vm223_vm0, %v808_v57  ;;  %v762_v5 = vadd.f32 %v1289_v0, %v723_v1  ;;  %v778_v6 = vadd.f32 %v1289_v0, %v739_v2  ;;  %692 = vst.msk [vmem:[#allocation2 + $0x78] sm:$0xff] %vm223_vm0, %v659_v58 }
 0x107   : > { %v807_v63 = vmax.f32 %v775_v53, 0.0  ;;  %v722_v7 = vld [vmem:[#allocation2 + $0x50] sm:$0xff]  ;;  %708 = vst.msk [vmem:[#allocation2 + $0xf8] sm:$0xff] %vm223_vm0, %v675_v59  ;;  %691 = vst.msk [vmem:[#allocation2 + $0x70] sm:$0xff] %vm223_vm0, %v658_v3 }
 0x108   : > { %v738_v8 = vld [vmem:[#allocation2 + $0xd0] sm:$0xff]  ;;  %823 = vst.msk [vmem:[%s1302_s30 + $0x40] sm:$0xff] %vm223_vm0, %v791_v62  ;;  %v761_v9 = vadd.f32 %v1289_v0, %v722_v7  ;;  %707 = vst.msk [vmem:[#allocation2 + $0xf0] sm:$0xff] %vm223_vm0, %v674_v4  ;;  %v794_v11 = vmax.f32 %v762_v5, 0.0  ;;  %v810_v12 = vmax.f32 %v778_v6, 0.0  ;;  %v725_v15 = vld [vmem:[#allocation2 + $0x68] sm:$0xff] }
 0x109   : > { %839 = vst.msk [vmem:[%s1302_s30 + $0xc0] sm:$0xff] %vm223_vm0, %v807_v63  ;;  %v777_v10 = vadd.f32 %v1289_v0, %v738_v8  ;;  %v741_v16 = vld [vmem:[#allocation2 + $0xe8] sm:$0xff]  ;;  %v764_v17 = vadd.f32 %v1289_v0, %v725_v15 }
 0x10a   : > { %v793_v13 = vmax.f32 %v761_v9, 0.0  ;;  %826 = vst.msk [vmem:[%s1302_s30 + $0x58] sm:$0xff] %vm223_vm0, %v794_v11  ;;  %842 = vst.msk [vmem:[%s1302_s30 + $0xd8] sm:$0xff] %vm223_vm0, %v810_v12  ;;  %v780_v18 = vadd.f32 %v1289_v0, %v741_v16  ;;  %v724_v19 = vld [vmem:[#allocation2 + $0x60] sm:$0xff] }
 0x10b   : > { %v809_v14 = vmax.f32 %v777_v10, 0.0  ;;  %v740_v20 = vld [vmem:[#allocation2 + $0xe0] sm:$0xff]  ;;  %v763_v21 = vadd.f32 %v1289_v0, %v724_v19  ;;  %v796_v23 = vmax.f32 %v764_v17, 0.0 }
 0x10c   : > { %825 = vst.msk [vmem:[%s1302_s30 + $0x50] sm:$0xff] %vm223_vm0, %v793_v13  ;;  %v779_v22 = vadd.f32 %v1289_v0, %v740_v20  ;;  %v812_v24 = vmax.f32 %v780_v18, 0.0 }
 0x10d   : > { %841 = vst.msk [vmem:[%s1302_s30 + $0xd0] sm:$0xff] %vm223_vm0, %v809_v14  ;;  %v795_v25 = vmax.f32 %v763_v21, 0.0  ;;  %v727_v27 = vld [vmem:[#allocation2 + $0x78] sm:$0xff]  ;;  %828 = vst.msk [vmem:[%s1302_s30 + $0x68] sm:$0xff] %vm223_vm0, %v796_v23 }
 0x10e   : > { %v811_v26 = vmax.f32 %v779_v22, 0.0  ;;  %v743_v28 = vld [vmem:[#allocation2 + $0xf8] sm:$0xff]  ;;  %844 = vst.msk [vmem:[%s1302_s30 + $0xe8] sm:$0xff] %vm223_vm0, %v812_v24  ;;  %v766_v29 = vadd.f32 %v1289_v0, %v727_v27  ;;  %v726_v31 = vld [vmem:[#allocation2 + $0x70] sm:$0xff] }
 0x10f   : > { %v782_v30 = vadd.f32 %v1289_v0, %v743_v28  ;;  %v742_v32 = vld [vmem:[#allocation2 + $0xf0] sm:$0xff]  ;;  %827 = vst.msk [vmem:[%s1302_s30 + $0x60] sm:$0xff] %vm223_vm0, %v795_v25  ;;  %v765_v33 = vadd.f32 %v1289_v0, %v726_v31 }
 0x110   : > { %843 = vst.msk [vmem:[%s1302_s30 + $0xe0] sm:$0xff] %vm223_vm0, %v811_v26  ;;  %v781_v34 = vadd.f32 %v1289_v0, %v742_v32  ;;  %v798_v35 = vmax.f32 %v766_v29, 0.0 }
 0x111   : > { %v814_v36 = vmax.f32 %v782_v30, 0.0  ;;  %v797_v37 = vmax.f32 %v765_v33, 0.0 }
 0x112   : > { %v813_v38 = vmax.f32 %v781_v34, 0.0  ;;  %830 = vst.msk [vmem:[%s1302_s30 + $0x78] sm:$0xff] %vm223_vm0, %v798_v35 }
 0x113   : > { %846 = vst.msk [vmem:[%s1302_s30 + $0xf8] sm:$0xff] %vm223_vm0, %v814_v36  ;;  %829 = vst.msk [vmem:[%s1302_s30 + $0x70] sm:$0xff] %vm223_vm0, %v797_v37 }
 0x114   : > { %845 = vst.msk [vmem:[%s1302_s30 + $0xf0] sm:$0xff] %vm223_vm0, %v813_v38 }
 0x115 PF: > { %s13_s14 = sadd.s32 1, %s1114_s14   ;;  %s1434_s12 = smov %s1110_s13 }
 0x116   : > { %p10_p5 = scmp.ge.s32.totalorder %s13_s14, 4   ;;  %s1435_s13 = smov %s1437_s15 }
 0x118   :  { %12 = sbr.rel (!%p10_p5) target bundleno = 2 (0x2), region = 73 }

// kernel: _lambda_.7
= control target key start
LH: loop header
LB: loop body
LE: loop exit
PB: predicated region body
PF: predicated region fallthrough
CT: control target
= control target key end

     0   :  { %9 = vsyncpa [#allocation4], 0  ;;  %s1004_s0 = inlined_call_operand.vmem [shape: f32[128,8], index: 0, kind: input, shape index: {}]   ;;  %s1005_s1 = inlined_call_operand.vmem [shape: f32[8,32], index: 1, kind: input, shape index: {}]   ;;  %s1006_s2 = inlined_call_operand.vmem [shape: f32[1,32], index: 2, kind: input, shape index: {}]   ;;  %s1007_s3 = inlined_call_operand.vmem [shape: f32[128,32], index: 3, kind: input, shape index: {}]   ;;  %s1008_s4 = inlined_call_operand.hbm [shape: f32[128,32], index: 4, kind: output, shape index: {}]  }
   0x1   :  { %11 = vsyncpa [#allocation4 + $0x1], 0  ;;  %s828_s15 = smov 0   ;;  %s830_s16 = smov 0  }
   0x2   :  { %s832_s17 = smov 0   ;;  %s834_s18 = smov 0  }
   0x3   :  { %s836_s19 = smov 0   ;;  %s838_s20 = smov 0  }
   0x4 LB: > { %s610_s21 = sadd.s32 4294967295, %s797_s20   ;;  %s611_s22 = sadd.s32 4294967294, %s797_s20   ;;  %s797_s20 = sphi %s838_s20, %s17_s20   ;;  %s793_s19 = sphi %s836_s19, %s1015_s19   ;;  %s789_s18 = sphi %s834_s18, %s1014_s18   ;;  %s785_s17 = sphi %s832_s17, %s1013_s17   ;;  %s781_s16 = sphi %s830_s16, %s1012_s16   ;;  %s777_s15 = sphi %s828_s15, %s1011_s15  }
   0x5   : > { %s29_s23 = sadd.s32 1, %s793_s19  ;;  %s137_s24 = sadd.s32 1, %s785_s17 }
   0x6   : > { %p31_p0 = scmp.ge.s32.totalorder %s29_s23, 2  ;;  %p147_p1 = scmp.ne.s32.totalorder %s785_s17, %s781_s16 }
   0x7   : > { %p148_p2 = scmp.eq.s32.totalorder %s610_s21, 1  ;;  %p153_p3 = scmp.ne.s32.totalorder %s781_s16, %s777_s15 }
   0x8   : > { %s1017_s23 = smov (%p31_p0, %s29_s23), 0  ;;  %p154_p5 = scmp.eq.s32.totalorder %s611_s22, 1 }
   0x9   : > { %p868_p4 = por %p148_p2, %p147_p1  ;;  %s134_s26 = ssub.s32 %s793_s19, %s1017_s23 }
   0xa   : > { %p615_p6 = scmp.ge.s32.totalorder %s797_s20, 1  ;;  %p135_p7 = scmp.eq.s32.totalorder %s134_s26, 0 }
   0xb   : > { %p875_p8 = por %p154_p5, %p153_p3  ;;  %p203_p9 = scmp.lt.s32.totalorder %s797_s20, 3 }
   0xc   : > { %s881_s28 = scalar_select %p135_p7, %s785_s17, %s137_s24  }
   0xd   : > { %p204_p10 = pnand %p615_p6, %p203_p9 }
   0xe   : > { %v290_v0 = vld [vmem:[%s1005_s1] sm:$0xff] (!%p204_p10)  ;;  %s617_s5 = sshll.u32 (!%p204_p10), %s789_s18, 3  ;;  %vm265_vm0 = vcmask (!%p204_p10), 261120   ;;  %v799_v1 = vmov (!%p204_p10), 0.0   ;;  %vm291_vm1 = vcmask (!%p204_p10), 64512   ;;  %s238_s21 = sand.u32 (!%p204_p10), 1, %s781_s16  }
   0xf   : > { %207 = sbr.rel (%p204_p10) target bundleno = 276 (0x114), region = 36  ;;  %645 = vmatprep.subr.mxu0 (!%p204_p10), %v290_v0  ;;  %659 = vmatprep.subr.mxu1 (!%p204_p10), %v290_v0  ;;  %p242_p11 = scmp.lt.s32.totalorder (!%p204_p10), %s617_s5, 15  ;;  %267 = vst.msk [vmem:[#allocation2 + $0x8] sm:$0xff] (!%p204_p10), %vm265_vm0, %v799_v1  ;;  %266 = vst.msk [vmem:[#allocation2] sm:$0xff] (!%p204_p10), %vm265_vm0, %v799_v1  ;;  %v629_v34 = vld [vmem:[%s1006_s2] ss:$0 sm:$0xff] (!%p204_p10) }
  0x10   : > { %268 = vst.msk [vmem:[#allocation2 + $0x10] sm:$0xff] (!%p204_p10), %vm265_vm0, %v799_v1  ;;  %269 = vst.msk [vmem:[#allocation2 + $0x18] sm:$0xff] (!%p204_p10), %vm265_vm0, %v799_v1  ;;  %646 = vmatpush3.msra.mxu0 (!%p204_p10), %v290_v0  ;;  %660 = vmatpush3.msra.mxu1 (!%p204_p10), %v290_v0  ;;  %s616_s22 = sshll.u32 (!%p204_p10), %s238_s21, 6  ;;  %s635_s26 = sshll.u32 (!%p204_p10), %s789_s18, 10 }
  0x11   : > { %270 = vst.msk [vmem:[#allocation2 + $0x20] sm:$0xff] (!%p204_p10), %vm265_vm0, %v799_v1  ;;  %271 = vst.msk [vmem:[#allocation2 + $0x28] sm:$0xff] (!%p204_p10), %vm265_vm0, %v799_v1  ;;  %s240_s24 = scalar_lea.vmem (!%p204_p10), [#allocation3], %s616_s22  ;;  %s958_s18 = scalar_lea.sflag (!%p204_p10), [#allocation4], %s238_s21 }
  0x12   : > { %272 = vst.msk [vmem:[#allocation2 + $0x30] sm:$0xff] (!%p204_p10), %vm265_vm0, %v799_v1  ;;  %273 = vst.msk [vmem:[#allocation2 + $0x38] sm:$0xff] (!%p204_p10), %vm265_vm0, %v799_v1  ;;  %s510_s29 = sshll.u32 (!%p204_p10), %s240_s24, 4  ;;  %s800_s8 = smov (!%p204_p10), [#allocation3]   ;;  %s950_s29 = int_to_ptr.vmem [resolvable:$true] %s510_s29 }
  0x13   : > { %s719_s7 = scalar_lea.vmem (!%p204_p10), %s950_s29, 1024 }
  0x14   : > { %p720_p12 = scmp.ne.s32.totalorder (!%p204_p10), %s950_s29, %s719_s7 }
  0x16   : > { %s1019_s5 = smov (!%p242_p11, %s617_s5), 15  ;;  %v275_v10 = vld [vmem:[#allocation2 + $0x8] sm:$0xff]  ;;  %v274_v12 = vld [vmem:[#allocation2] sm:$0xff]  ;;  %p721_p13 = pnand %p720_p12, %p868_p4 }
  0x17   : > { %s618_s6 = sshll.u32 %s1019_s5, 3  ;;  %v277_v21 = vld [vmem:[#allocation2 + $0x18] sm:$0xff]  ;;  %v276_v24 = vld [vmem:[#allocation2 + $0x10] sm:$0xff] }
  0x18   : > { %s248_s9 = scalar_lea.vmem %s1004_s0, %s618_s6  ;;  %v279_v11 = vld [vmem:[#allocation2 + $0x28] sm:$0xff]  ;;  %v278_v14 = vld [vmem:[#allocation2 + $0x20] sm:$0xff]  ;;  %s920_s12 = scalar_lea.vmem %s1007_s3, %s618_s6 }
  0x19   : > { %v282_v2 = vld [vmem:[%s248_s9] sm:$0xff]  ;;  %v283_v4 = vld [vmem:[%s248_s9 + $0x8] sm:$0xff]  ;;  %v284_v6 = vld [vmem:[%s248_s9 + $0x10] sm:$0xff]  ;;  %s948_s6 = scalar_lea.hbm %s1008_s4, %s635_s26  ;;  %p722_p0 = pneg %p721_p13 }
  0x1a   : > { %647 = vmatprep.mubr.msk.f32.mxu0 %vm291_vm1, %v282_v2  ;;  %v286_v3 = vld [vmem:[%s248_s9 + $0x20] sm:$0xff]  ;;  %v287_v5 = vld [vmem:[%s248_s9 + $0x28] sm:$0xff]  ;;  %v288_v7 = vld [vmem:[%s248_s9 + $0x30] sm:$0xff] }
  0x1b   : > { %653 = vmatprep.mubr.msk.f32.mxu1 %vm291_vm1, %v286_v3  ;;  %648 = vmatmul.mubr.msk.f32.vlgmr.msra.gmra.mrb[0].mxu0 %vm291_vm1, %v283_v4  ;;  %v285_v8 = vld [vmem:[%s248_s9 + $0x18] sm:$0xff]  ;;  %v280_v26 = vld [vmem:[#allocation2 + $0x30] sm:$0xff]  ;;  %v464_v35 = vld [vmem:[%s920_s12] sm:$0xff] }
  0x1c   : > { %654 = vmatmul.mubr.msk.f32.vlgmr.msra.gmra.mrb[0].mxu1 %vm291_vm1, %v287_v5  ;;  %650 = vmatprep.mubr.msk.f32.mxu0 %vm291_vm1, %v284_v6  ;;  %v289_v9 = vld [vmem:[%s248_s9 + $0x38] sm:$0xff]  ;;  %v465_v36 = vld [vmem:[%s920_s12 + $0x8] sm:$0xff]  ;;  %v468_v42 = vld [vmem:[%s920_s12 + $0x20] sm:$0xff]  ;;  %s723_s9 = sshll.u32 %s800_s8, 4  ;;  %s724_s9 = int_to_ptr.vmem [resolvable:$false] %s723_s9 }
  0x1d   : > { %656 = vmatprep.mubr.msk.f32.mxu1 %vm291_vm1, %v288_v7  ;;  %v281_v23 = vld [vmem:[#allocation2 + $0x38] sm:$0xff]  ;;  %v469_v38 = vld [vmem:[%s920_s12 + $0x28] sm:$0xff]  ;;  %v466_v48 = vld [vmem:[%s920_s12 + $0x10] sm:$0xff]  ;;  %s725_s10 = scalar_lea.vmem %s724_s9, 2048  ;;  %p726_p1 = scmp.lt.s32.totalorder %s950_s29, %s724_s9 }
  0x1e   : > { %v467_v49 = vld [vmem:[%s920_s12 + $0x18] sm:$0xff]  ;;  %v470_v59 = vld [vmem:[%s920_s12 + $0x30] sm:$0xff]  ;;  %p727_p2 = scmp.lt.s32.totalorder %s725_s10, %s719_s7 }
  0x1f   : > { %651 = vmatmul.mubr.msk.f32.gmra.mrb[2].mxu0 %vm291_vm1, %v285_v8  ;;  %v471_v53 = vld [vmem:[%s920_s12 + $0x38] sm:$0xff] }
  0x20   : > { %657 = vmatmul.mubr.msk.f32.gmra.mrb[2].mxu1 %vm291_vm1, %v289_v9  ;;  %p728_p3 = por %p727_p2, %p726_p1 }
  0x22   : > { %p729_p5 = pnand %p728_p3, %p722_p0 }
  0xee   : > { %v649_v13 = vpop.f32.mrb[0].mxu0 }
  0xef   : > { %v422_v15 = vadd.f32 %v649_v13, %v275_v10  ;;  %v655_v16 = vpop.f32.mrb[0].mxu1  ;;  %v382_v17 = vpop.f32.mrb[1].mxu0 }
  0xf0   : > { %v426_v18 = vadd.f32 %v655_v16, %v279_v11  ;;  %v421_v19 = vadd.f32 %v382_v17, %v274_v12  ;;  %v402_v20 = vpop.f32.mrb[1].mxu1 }
  0xf1   : > { %431 = vst.msk [vmem:[#allocation2 + $0x8] sm:$0xff] %vm265_vm0, %v422_v15  ;;  %v425_v22 = vadd.f32 %v402_v20, %v278_v14 }
  0xf2   : > { %435 = vst.msk [vmem:[#allocation2 + $0x28] sm:$0xff] %vm265_vm0, %v426_v18  ;;  %430 = vst.msk [vmem:[#allocation2] sm:$0xff] %vm265_vm0, %v421_v19  ;;  %v652_v25 = vpop.f32.mrb[2].mxu0 }
  0xf3   : > { %434 = vst.msk [vmem:[#allocation2 + $0x20] sm:$0xff] %vm265_vm0, %v425_v22  ;;  %v424_v27 = vadd.f32 %v652_v25, %v277_v21  ;;  %v658_v28 = vpop.f32.mrb[2].mxu1  ;;  %v392_v29 = vpop.f32.mrb[3].mxu0 }
  0xf4   : > { %v428_v30 = vadd.f32 %v658_v28, %v281_v23  ;;  %v423_v31 = vadd.f32 %v392_v29, %v276_v24  ;;  %v412_v32 = vpop.f32.mrb[3].mxu1 }
  0xf5   : > { %433 = vst.msk [vmem:[#allocation2 + $0x18] sm:$0xff] %vm265_vm0, %v424_v27  ;;  %v427_v33 = vadd.f32 %v412_v32, %v280_v26 }
  0xf6   : > { %437 = vst.msk [vmem:[#allocation2 + $0x38] sm:$0xff] %vm265_vm0, %v428_v30  ;;  %432 = vst.msk [vmem:[#allocation2 + $0x10] sm:$0xff] %vm265_vm0, %v423_v31 }
  0xf7   : > { %436 = vst.msk [vmem:[#allocation2 + $0x30] sm:$0xff] %vm265_vm0, %v427_v33 }
  0xf8   : > { %v442_v37 = vld [vmem:[#allocation2 + $0x8] sm:$0xff] }
  0xf9   : > { %v457_v39 = vadd.f32 %v629_v34, %v442_v37  ;;  %v446_v40 = vld [vmem:[#allocation2 + $0x28] sm:$0xff]  ;;  %v441_v41 = vld [vmem:[#allocation2] sm:$0xff] }
  0xfa   : > { %v461_v43 = vadd.f32 %v629_v34, %v446_v40  ;;  %v456_v44 = vadd.f32 %v629_v34, %v441_v41  ;;  %v445_v45 = vld [vmem:[#allocation2 + $0x20] sm:$0xff] }
  0xfb   : > { %v473_v46 = vadd.f32 %v465_v36, %v457_v39  ;;  %v460_v47 = vadd.f32 %v629_v34, %v445_v45 }
  0xfc   : > { %v477_v50 = vadd.f32 %v469_v38, %v461_v43  ;;  %v472_v51 = vadd.f32 %v464_v35, %v456_v44  ;;  %v444_v52 = vld [vmem:[#allocation2 + $0x18] sm:$0xff] }
  0xfd   : > { %v481_v54 = vmax.f32 %v473_v46, 0.0  ;;  %v476_v55 = vadd.f32 %v468_v42, %v460_v47  ;;  %v459_v56 = vadd.f32 %v629_v34, %v444_v52  ;;  %v448_v57 = vld [vmem:[#allocation2 + $0x38] sm:$0xff]  ;;  %v443_v58 = vld [vmem:[#allocation2 + $0x10] sm:$0xff] }
  0xfe   : > { %v485_v60 = vmax.f32 %v477_v50, 0.0  ;;  %v480_v61 = vmax.f32 %v472_v51, 0.0  ;;  %v463_v62 = vadd.f32 %v629_v34, %v448_v57  ;;  %v458_v63 = vadd.f32 %v629_v34, %v443_v58  ;;  %v447_v0 = vld [vmem:[#allocation2 + $0x30] sm:$0xff] }
  0xff   : > { %v484_v1 = vmax.f32 %v476_v55, 0.0  ;;  %v475_v2 = vadd.f32 %v467_v49, %v459_v56  ;;  %v462_v3 = vadd.f32 %v629_v34, %v447_v0  ;;  %489 = vst.msk [vmem:[%s240_s24 + $0x8] sm:$0xff] %vm265_vm0, %v481_v54 }
 0x100   : > { %v479_v4 = vadd.f32 %v471_v53, %v463_v62  ;;  %v474_v5 = vadd.f32 %v466_v48, %v458_v63  ;;  %488 = vst.msk [vmem:[%s240_s24] sm:$0xff] %vm265_vm0, %v480_v61  ;;  %493 = vst.msk [vmem:[%s240_s24 + $0x28] sm:$0xff] %vm265_vm0, %v485_v60 }
 0x101   : > { %v483_v6 = vmax.f32 %v475_v2, 0.0  ;;  %v478_v7 = vadd.f32 %v470_v59, %v462_v3  ;;  %492 = vst.msk [vmem:[%s240_s24 + $0x20] sm:$0xff] %vm265_vm0, %v484_v1 }
 0x102   : > { %v487_v8 = vmax.f32 %v479_v4, 0.0  ;;  %v482_v9 = vmax.f32 %v474_v5, 0.0 }
 0x103   : > { %v486_v10 = vmax.f32 %v478_v7, 0.0  ;;  %491 = vst.msk [vmem:[%s240_s24 + $0x18] sm:$0xff] %vm265_vm0, %v483_v6 }
 0x104   : > { %490 = vst.msk [vmem:[%s240_s24 + $0x10] sm:$0xff] %vm265_vm0, %v482_v9  ;;  %495 = vst.msk [vmem:[%s240_s24 + $0x38] sm:$0xff] %vm265_vm0, %v487_v8 }
 0x105   : > { %494 = vst.msk [vmem:[%s240_s24 + $0x30] sm:$0xff] %vm265_vm0, %v486_v10 }
 0x106   : > { %732 = shalt.err (!%p729_p5)
}
 0x107   : > { %s733_s11 = scalar_lea.hbm %s948_s6, 1024  ;;  %s737_s14 = scalar_lea.hbm %s1008_s4, 2048 }
 0x108   : > { %p734_p6 = scmp.ne.s32.totalorder %s948_s6, %s733_s11  ;;  %p738_p10 = scmp.lt.u32.totalorder %s948_s6, %s1008_s4 }
 0x109   : > { %p739_p11 = scmp.lt.u32.totalorder %s737_s14, %s733_s11  ;;  %p741_p13 = scmp.lt.u32.totalorder %s733_s11, %s948_s6 }
 0x10a   : > { %p735_p7 = pnand %p734_p6, %p868_p4 }
 0x10b   : > { %p740_p12 = por %p739_p11, %p738_p10 }
 0x10c   : > { %p736_p9 = pneg %p735_p7 }
 0x10d   : > { %p742_p0 = por %p741_p13, %p740_p12 }
 0x10f   : > { %p743_p1 = pnand %p742_p0, %p736_p9 }
 0x111   : > { %746 = shalt.err (!%p743_p1)
}
 0x112   : > { %s801_s24 = smov 128   ;;  %s802_s26 = smov 8  }
 0x113   : > { %661 = dma.vmem_to_hbm [thread:$0]  (%p868_p4), %s950_s29, 1024, %s948_s6, %s958_s18, %s801_s24, %s801_s24, %s802_s26  }
 0x114 PF: > { %p667_p2 = scmp.ge.s32.totalorder %s797_s20, 2  ;;  %s525_s30 = sand.u32 1, %s777_s15  }
 0x115   : > { %s526_s5 = scalar_lea.sflag [#allocation4], %s525_s30 }
 0x116   : > { %p664_p3 = pnand %p667_p2, %p875_p8 }
 0x118   : > { %772 = dma.done.wait (!%p664_p3), %s526_s5, 1024  }
 0x119   : > { %774 = vsyncadd (!%p664_p3), %s526_s5, 4294966272  ;;  %s17_s20 = sadd.s32 1, %s797_s20   ;;  %s1011_s15 = smov %s781_s16 }
 0x11a   : > { %p14_p5 = scmp.ge.s32.totalorder %s17_s20, 4   ;;  %s1012_s16 = smov %s785_s17 }
 0x11b   : > { %s1013_s17 = smov %s881_s28  ;;  %s1014_s18 = smov %s793_s19 }
 0x11c   : > { %s1015_s19 = smov %s1017_s23  ;;  %16 = sbr.rel (!%p14_p5) target bundleno = 4 (0x4), region = 85 }
 0x123   :  { %531 = vsyncpa [#allocation4], 1 }
 0x124   :  { %533 = vsyncpa [#allocation4 + $0x1], 1 }

// kernel: _lambda_.5
= control target key start
LH: loop header
LB: loop body
LE: loop exit
PB: predicated region body
PF: predicated region fallthrough
CT: control target
= control target key end

     0   :  { %s5292_s12 = smov 0   ;;  %s6335_s0 = inlined_call_operand.vmem [shape: f32[2,18,18,8], index: 0, kind: input, shape index: {}]   ;;  %s6336_s1 = inlined_call_operand.vmem [shape: f32[9,8,8], index: 1, kind: input, shape index: {}]   ;;  %s6337_s2 = inlined_call_operand.vmem [shape: f32[1,8], index: 2, kind: input, shape index: {}]   ;;  %s6338_s3 = inlined_call_operand.vmem [shape: f32[2,256,8], index: 3, kind: output, shape index: {}]  }
   0x1 LB: > { %s3750_s13 = sadd.s32 4294967295, %s5270_s12   ;;  %p3754_p0 = scmp.ge.s32.totalorder %s5270_s12, 1  ;;  %s5270_s12 = sphi %s5292_s12, %s13_s12  }
   0x2   : > { %p137_p1 = scmp.lt.s32.totalorder %s5270_s12, 3 }
   0x4   : > { %p138_p2 = pnand %p3754_p0, %p137_p1 }
   0x6   : > { %141 = sbr.rel (%p138_p2) target bundleno = 525 (0x20d), region = 32 }
   0xd   : > { %v3758_v0 = vld [vmem:[%s6336_s1 + $0x8] sm:$0xff]  ;;  %v5306_v1 = vld [vmem:[%s6336_s1 + $0x20] sm:$0xff]  ;;  %p161_p3 = scmp.lt.s32.totalorder %s3750_s13, 1  ;;  %vm238_vm0 = vcmask 64512   ;;  %v4083_v9 = vld [vmem:[%s6336_s1 + $0x30] sm:$0xff] }
   0xe   : > { %v203_v2 = vld [vmem:[%s6336_s1] sm:$0xff]  ;;  %4547 = vmatprep.subr.mxu1 %v3758_v0  ;;  %4747 = vmatprep.subr.mxu0 %v5306_v1  ;;  %v4018_v3 = vld [vmem:[%s6336_s1 + $0x28] sm:$0xff]  ;;  %v5341_v10 = vld [vmem:[%s6336_s1 + $0x10] sm:$0xff] }
   0xf   : > { %4548 = vmatpush3.msra.mxu1 %v3758_v0  ;;  %4748 = vmatpush3.msra.mxu0 %v5306_v1  ;;  %s6449_s13 = smov (!%p161_p3, %s3750_s13), 1  ;;  %v5456_v28 = vld [vmem:[%s6336_s1 + $0x38] sm:$0xff] }
  0x10   : > { %4597 = vmatprep.subr.mxu1 %v203_v2  ;;  %4797 = vmatprep.subr.mxu0 %v4018_v3  ;;  %s5255_s22 = smul.u32 432, %s6449_s13  ;;  %v5617_v61 = vld [vmem:[%s6336_s1 + $0x18] sm:$0xff]  ;;  %s4249_s11 = sshll.u32 %s6449_s13, 8 }
  0x11   : > { %s6231_s16 = scalar_lea.vmem %s6338_s3, %s4249_s11 }
  0x12   : > { %s5322_s25 = scalar_lea.vmem %s6335_s0, %s5255_s22 }
  0x13   : > { %v204_v4 = vld [vmem:[%s5322_s25 + $0x1] sm:$0xff]  ;;  %v3921_v5 = vld [vmem:[%s5322_s25 + $0x19] sm:$0xff]  ;;  %v205_v6 = vld [vmem:[%s5322_s25 + $0x9] sm:$0xff] }
  0x14   : > { %4549 = vmatprep.mubr.msk.f32.mxu1 %vm238_vm0, %v204_v4  ;;  %4749 = vmatprep.mubr.msk.f32.mxu0 %vm238_vm0, %v3921_v5  ;;  %v3922_v7 = vld [vmem:[%s5322_s25 + $0x21] sm:$0xff]  ;;  %v5331_v8 = vld [vmem:[%s5322_s25 + $0x31] sm:$0xff]  ;;  %v5344_v11 = vld [vmem:[%s5322_s25 + $0x39] sm:$0xff] }
  0x15   : > { %4550 = vmatmul.mubr.msk.f32.vlgmr.msra.gmra.mrb[0].mxu1 %vm238_vm0, %v205_v6  ;;  %4750 = vmatmul.mubr.msk.f32.vlgmr.msra.gmra.mrb[0].mxu0 %vm238_vm0, %v3922_v7  ;;  %v5350_v12 = vld [vmem:[%s5322_s25 + $0x49] sm:$0xff]  ;;  %v5361_v13 = vld [vmem:[%s5322_s25 + $0x51] sm:$0xff]  ;;  %v5364_v14 = vld [vmem:[%s5322_s25 + $0x61] sm:$0xff] }
  0x16   : > { %4598 = vmatpush3.msra.mxu1 %v203_v2  ;;  %4798 = vmatpush3.msra.mxu0 %v4018_v3  ;;  %v5375_v15 = vld [vmem:[%s5322_s25 + $0x69] sm:$0xff]  ;;  %v5378_v16 = vld [vmem:[%s5322_s25 + $0x79] sm:$0xff]  ;;  %v5389_v17 = vld [vmem:[%s5322_s25 + $0x81] sm:$0xff] }
  0x17   : > { %4552 = vmatprep.mubr.msk.f32.mxu1 %vm238_vm0, %v3921_v5  ;;  %4752 = vmatprep.mubr.msk.f32.mxu0 %vm238_vm0, %v5331_v8  ;;  %v5392_v18 = vld [vmem:[%s5322_s25 + $0x91] sm:$0xff]  ;;  %v5403_v19 = vld [vmem:[%s5322_s25 + $0x99] sm:$0xff]  ;;  %v5406_v20 = vld [vmem:[%s5322_s25 + $0xa9] sm:$0xff] }
  0x18   : > { %4847 = vmatprep.subr.mxu0 %v4083_v9  ;;  %4647 = vmatprep.subr.mxu1 %v5341_v10  ;;  %v5417_v21 = vld [vmem:[%s5322_s25 + $0xb1] sm:$0xff]  ;;  %v5420_v22 = vld [vmem:[%s5322_s25 + $0xc1] sm:$0xff]  ;;  %v5431_v23 = vld [vmem:[%s5322_s25 + $0xc9] sm:$0xff] }
  0x19   : > { %4553 = vmatmul.mubr.msk.f32.gmra.mrb[2].mxu1 %vm238_vm0, %v3922_v7  ;;  %4753 = vmatmul.mubr.msk.f32.gmra.mrb[2].mxu0 %vm238_vm0, %v5344_v11  ;;  %v5434_v24 = vld [vmem:[%s5322_s25 + $0x1a] sm:$0xff]  ;;  %v5445_v25 = vld [vmem:[%s5322_s25 + $0x22] sm:$0xff]  ;;  %v5451_v27 = vld [vmem:[%s5322_s25 + $0x32] sm:$0xff] }
  0x1a   : > { %4555 = vmatprep.mubr.msk.f32.mxu1 %vm238_vm0, %v5331_v8  ;;  %4755 = vmatprep.mubr.msk.f32.mxu0 %vm238_vm0, %v5350_v12  ;;  %v5448_v26 = vld [vmem:[%s5322_s25 + $0xd9] sm:$0xff]  ;;  %v5465_v29 = vld [vmem:[%s5322_s25 + $0xe1] sm:$0xff]  ;;  %v5473_v31 = vld [vmem:[%s5322_s25 + $0xf1] sm:$0xff] }
  0x1b   : > { %6384 = vst [vmem:[#allocation2_spill] sm:$0xff] %v5465_v29  ;;  %v5468_v30 = vld [vmem:[%s5322_s25 + $0x3a] sm:$0xff]  ;;  %6385 = vst [vmem:[#allocation3_spill] sm:$0xff] %v5473_v31  ;;  %v5476_v32 = vld [vmem:[%s5322_s25 + $0x4a] sm:$0xff] }
  0x1c   : > { %v5488_v33 = vld [vmem:[%s5322_s25 + $0xf9] sm:$0xff]  ;;  %v5494_v35 = vld [vmem:[%s5322_s25 + $0x109] sm:$0xff]  ;;  %v5508_v37 = vld [vmem:[%s5322_s25 + $0x111] sm:$0xff] }
  0x1d   : > { %4556 = vmatmul.mubr.msk.f32.gmra.mrb[4].mxu1 %vm238_vm0, %v5344_v11  ;;  %4756 = vmatmul.mubr.msk.f32.gmra.mrb[4].mxu0 %vm238_vm0, %v5361_v13  ;;  %6386 = vst [vmem:[#allocation4_spill] sm:$0xff] %v5488_v33  ;;  %v5491_v34 = vld [vmem:[%s5322_s25 + $0x52] sm:$0xff]  ;;  %6387 = vst [vmem:[#allocation5_spill] sm:$0xff] %v5494_v35  ;;  %v5497_v36 = vld [vmem:[%s5322_s25 + $0x62] sm:$0xff] }
  0x1e   : > { %4558 = vmatprep.mubr.msk.f32.mxu1 %vm238_vm0, %v5350_v12  ;;  %4758 = vmatprep.mubr.msk.f32.mxu0 %vm238_vm0, %v5364_v14  ;;  %6388 = vst [vmem:[#allocation6_spill] sm:$0xff] %v5508_v37  ;;  %v5511_v38 = vld [vmem:[%s5322_s25 + $0x6a] sm:$0xff]  ;;  %v5514_v39 = vld [vmem:[%s5322_s25 + $0x121] sm:$0xff]  ;;  %v5534_v43 = vld [vmem:[%s5322_s25 + $0x139] sm:$0xff] }
  0x1f   : > { %6389 = vst [vmem:[#allocation7_spill] sm:$0xff] %v5514_v39  ;;  %v5517_v40 = vld [vmem:[%s5322_s25 + $0x7a] sm:$0xff]  ;;  %v5528_v41 = vld [vmem:[%s5322_s25 + $0x129] sm:$0xff]  ;;  %6391 = vst [vmem:[#allocation9_spill] sm:$0xff] %v5534_v43 }
  0x20   : > { %6390 = vst [vmem:[#allocation8_spill] sm:$0xff] %v5528_v41  ;;  %v5531_v42 = vld [vmem:[%s5322_s25 + $0x82] sm:$0xff]  ;;  %v5537_v44 = vld [vmem:[%s5322_s25 + $0x92] sm:$0xff]  ;;  %v5551_v46 = vld [vmem:[%s5322_s25 + $0x9a] sm:$0xff] }
  0x21   : > { %4559 = vmatmul.mubr.msk.f32.gmra.mrb[6].mxu1 %vm238_vm0, %v5361_v13  ;;  %4759 = vmatmul.mubr.msk.f32.gmra.mrb[6].mxu0 %vm238_vm0, %v5375_v15  ;;  %v5548_v45 = vld [vmem:[%s5322_s25 + $0x141] sm:$0xff]  ;;  %v5554_v47 = vld [vmem:[%s5322_s25 + $0x151] sm:$0xff]  ;;  %v5568_v49 = vld [vmem:[%s5322_s25 + $0x159] sm:$0xff] }
  0x22   : > { %4561 = vmatprep.mubr.msk.f32.mxu1 %vm238_vm0, %v5364_v14  ;;  %4761 = vmatprep.mubr.msk.f32.mxu0 %vm238_vm0, %v5378_v16  ;;  %6392 = vst [vmem:[#allocation10_spill] sm:$0xff] %v5548_v45  ;;  %6393 = vst [vmem:[#allocation11_spill] sm:$0xff] %v5554_v47  ;;  %v5557_v48 = vld [vmem:[%s5322_s25 + $0xaa] sm:$0xff]  ;;  %v5571_v50 = vld [vmem:[%s5322_s25 + $0xb2] sm:$0xff] }
  0x23   : > { %6394 = vst [vmem:[#allocation12_spill] sm:$0xff] %v5568_v49  ;;  %v5574_v51 = vld [vmem:[%s5322_s25 + $0x169] sm:$0xff]  ;;  %v5588_v53 = vld [vmem:[%s5322_s25 + $0x171] sm:$0xff]  ;;  %v171_v55 = vld [vmem:[%s5322_s25] sm:$0xff] }
  0x24   : > { %6395 = vst [vmem:[#allocation13_spill] sm:$0xff] %v5574_v51  ;;  %v5577_v52 = vld [vmem:[%s5322_s25 + $0xc2] sm:$0xff]  ;;  %6396 = vst [vmem:[#allocation14_spill] sm:$0xff] %v5588_v53  ;;  %v5591_v54 = vld [vmem:[%s5322_s25 + $0xca] sm:$0xff] }
  0x25   : > { %4562 = vmatmul.mubr.msk.f32.gmra.mrb[8].mxu1 %vm238_vm0, %v5375_v15  ;;  %4762 = vmatmul.mubr.msk.f32.gmra.mrb[8].mxu0 %vm238_vm0, %v5389_v17  ;;  %v5595_v56 = vld [vmem:[%s5322_s25 + $0xda] sm:$0xff]  ;;  %v172_v57 = vld [vmem:[%s5322_s25 + $0x8] sm:$0xff]  ;;  %v5612_v60 = vld [vmem:[%s5322_s25 + $0xf2] sm:$0xff] }
  0x26   : > { %4564 = vmatprep.mubr.msk.f32.mxu1 %vm238_vm0, %v5378_v16  ;;  %4764 = vmatprep.mubr.msk.f32.mxu0 %vm238_vm0, %v5392_v18  ;;  %v5606_v58 = vld [vmem:[%s5322_s25 + $0xe2] sm:$0xff]  ;;  %v5609_v59 = vld [vmem:[%s5322_s25 + $0x18] sm:$0xff]  ;;  %v5634_v0 = vld [vmem:[%s5322_s25 + $0x30] sm:$0xff] }
  0x27   : > { %6397 = vst [vmem:[#allocation15_spill] sm:$0xff] %v5609_v59  ;;  %v5626_v62 = vld [vmem:[%s5322_s25 + $0x20] sm:$0xff]  ;;  %6399 = vst [vmem:[#allocation17_spill] sm:$0xff] %v5634_v0  ;;  %v5637_v2 = vld [vmem:[%s5322_s25 + $0x10a] sm:$0xff] }
  0x28   : > { %6398 = vst [vmem:[#allocation16_spill] sm:$0xff] %v5626_v62  ;;  %v5629_v63 = vld [vmem:[%s5322_s25 + $0xfa] sm:$0xff]  ;;  %v5652_v4 = vld [vmem:[%s5322_s25 + $0x112] sm:$0xff]  ;;  %v5655_v5 = vld [vmem:[%s5322_s25 + $0x48] sm:$0xff] }
  0x29   : > { %4565 = vmatmul.mubr.msk.f32.gmra.mrb[10].mxu1 %vm238_vm0, %v5389_v17  ;;  %4765 = vmatmul.mubr.msk.f32.gmra.mrb[10].mxu0 %vm238_vm0, %v5403_v19  ;;  %v5649_v3 = vld [vmem:[%s5322_s25 + $0x38] sm:$0xff]  ;;  %6401 = vst [vmem:[#allocation19_spill] sm:$0xff] %v5655_v5  ;;  %v5658_v6 = vld [vmem:[%s5322_s25 + $0x122] sm:$0xff]  ;;  %v5669_v7 = vld [vmem:[%s5322_s25 + $0x50] sm:$0xff] }
  0x2a   : > { %4567 = vmatprep.mubr.msk.f32.mxu1 %vm238_vm0, %v5392_v18  ;;  %4767 = vmatprep.mubr.msk.f32.mxu0 %vm238_vm0, %v5406_v20  ;;  %6400 = vst [vmem:[#allocation18_spill] sm:$0xff] %v5649_v3  ;;  %6402 = vst [vmem:[#allocation20_spill] sm:$0xff] %v5669_v7 }
  0x2d   : > { %4568 = vmatmul.mubr.msk.f32.gmra.mrb[12].mxu1 %vm238_vm0, %v5403_v19  ;;  %4768 = vmatmul.mubr.msk.f32.gmra.mrb[12].mxu0 %vm238_vm0, %v5417_v21 }
  0x2e   : > { %4570 = vmatprep.mubr.msk.f32.mxu1 %vm238_vm0, %v5406_v20  ;;  %4770 = vmatprep.mubr.msk.f32.mxu0 %vm238_vm0, %v5420_v22 }
  0x31   : > { %4571 = vmatmul.mubr.msk.f32.gmra.mrb[14].mxu1 %vm238_vm0, %v5417_v21  ;;  %4771 = vmatmul.mubr.msk.f32.gmra.mrb[14].mxu0 %vm238_vm0, %v5431_v23 }
  0x32   : > { %4573 = vmatprep.mubr.msk.f32.mxu1 %vm238_vm0, %v5420_v22  ;;  %4799 = vmatprep.mubr.msk.f32.mxu0 %vm238_vm0, %v5434_v24 }
  0x35   : > { %4574 = vmatmul.mubr.msk.f32.gmra.mrb[16].mxu1 %vm238_vm0, %v5431_v23  ;;  %4800 = vmatmul.mubr.msk.f32.vlgmr.msra.gmra.mrb[0].mxu0 %vm238_vm0, %v5445_v25 }
  0x36   : > { %4848 = vmatpush3.msra.mxu0 %v4083_v9  ;;  %4576 = vmatprep.mubr.msk.f32.mxu1 %vm238_vm0, %v5448_v26  ;;  %v5672_v9 = vld [vmem:[%s5322_s25 + $0x12a] sm:$0xff] }
  0x37   : > { %4802 = vmatprep.mubr.msk.f32.mxu0 %vm238_vm0, %v5451_v27  ;;  %4897 = vmatprep.subr.mxu0 %v5456_v28 }
  0x39   : > { %4577 = vmatmul.mubr.msk.f32.gmra.mrb[18].mxu1 %vm238_vm0, %v5465_v29  ;;  %4803 = vmatmul.mubr.msk.f32.gmra.mrb[2].mxu0 %vm238_vm0, %v5468_v30  ;;  %v5769_v29 = vld [vmem:[%s5322_s25 + $0xd8] sm:$0xff] }
  0x3a   : > { %4579 = vmatprep.mubr.msk.f32.mxu1 %vm238_vm0, %v5473_v31  ;;  %4805 = vmatprep.mubr.msk.f32.mxu0 %vm238_vm0, %v5476_v32  ;;  %v5752_v31 = vld [vmem:[%s5322_s25 + $0x18a] sm:$0xff] }
  0x3b   : > { %6413 = vst [vmem:[#allocation31_spill] sm:$0xff] %v5752_v31 }
  0x3d   : > { %4580 = vmatmul.mubr.msk.f32.gmra.mrb[20].mxu1 %vm238_vm0, %v5488_v33  ;;  %4806 = vmatmul.mubr.msk.f32.gmra.mrb[4].mxu0 %vm238_vm0, %v5491_v34  ;;  %v5738_v33 = vld [vmem:[%s5322_s25 + $0x182] sm:$0xff] }
  0x3e   : > { %4582 = vmatprep.mubr.msk.f32.mxu1 %vm238_vm0, %v5494_v35  ;;  %4808 = vmatprep.mubr.msk.f32.mxu0 %vm238_vm0, %v5497_v36  ;;  %v5735_v35 = vld [vmem:[%s5322_s25 + $0xa8] sm:$0xff]  ;;  %6411 = vst [vmem:[#allocation29_spill] sm:$0xff] %v5738_v33 }
  0x3f   : > { %6410 = vst [vmem:[#allocation28_spill] sm:$0xff] %v5735_v35 }
  0x41   : > { %4583 = vmatmul.mubr.msk.f32.gmra.mrb[22].mxu1 %vm238_vm0, %v5508_v37  ;;  %4809 = vmatmul.mubr.msk.f32.gmra.mrb[6].mxu0 %vm238_vm0, %v5511_v38  ;;  %v5732_v37 = vld [vmem:[%s5322_s25 + $0x172] sm:$0xff] }
  0x42   : > { %4585 = vmatprep.mubr.msk.f32.mxu1 %vm238_vm0, %v5514_v39  ;;  %4811 = vmatprep.mubr.msk.f32.mxu0 %vm238_vm0, %v5517_v40  ;;  %v5729_v39 = vld [vmem:[%s5322_s25 + $0x98] sm:$0xff]  ;;  %6409 = vst [vmem:[#allocation27_spill] sm:$0xff] %v5732_v37 }
  0x43   : > { %6408 = vst [vmem:[#allocation26_spill] sm:$0xff] %v5729_v39 }
  0x45   : > { %4586 = vmatmul.mubr.msk.f32.gmra.mrb[24].mxu1 %vm238_vm0, %v5528_v41  ;;  %4812 = vmatmul.mubr.msk.f32.gmra.mrb[8].mxu0 %vm238_vm0, %v5531_v42  ;;  %v5718_v41 = vld [vmem:[%s5322_s25 + $0x16a] sm:$0xff] }
  0x46   : > { %4588 = vmatprep.mubr.msk.f32.mxu1 %vm238_vm0, %v5534_v43  ;;  %4814 = vmatprep.mubr.msk.f32.mxu0 %vm238_vm0, %v5537_v44  ;;  %v5715_v43 = vld [vmem:[%s5322_s25 + $0x90] sm:$0xff] }
  0x47   : > { %6407 = vst [vmem:[#allocation25_spill] sm:$0xff] %v5715_v43 }
  0x49   : > { %4589 = vmatmul.mubr.msk.f32.gmra.mrb[26].mxu1 %vm238_vm0, %v5548_v45  ;;  %4815 = vmatmul.mubr.msk.f32.gmra.mrb[10].mxu0 %vm238_vm0, %v5551_v46  ;;  %v5712_v45 = vld [vmem:[%s5322_s25 + $0x15a] sm:$0xff] }
  0x4a   : > { %4591 = vmatprep.mubr.msk.f32.mxu1 %vm238_vm0, %v5554_v47  ;;  %4817 = vmatprep.mubr.msk.f32.mxu0 %vm238_vm0, %v5557_v48  ;;  %v5709_v47 = vld [vmem:[%s5322_s25 + $0x80] sm:$0xff] }
  0x4b   : > { %6406 = vst [vmem:[#allocation24_spill] sm:$0xff] %v5709_v47 }
  0x4d   : > { %4592 = vmatmul.mubr.msk.f32.gmra.mrb[28].mxu1 %vm238_vm0, %v5568_v49  ;;  %4818 = vmatmul.mubr.msk.f32.gmra.mrb[12].mxu0 %vm238_vm0, %v5571_v50  ;;  %v5698_v49 = vld [vmem:[%s5322_s25 + $0x152] sm:$0xff] }
  0x4e   : > { %4594 = vmatprep.mubr.msk.f32.mxu1 %vm238_vm0, %v5574_v51  ;;  %4820 = vmatprep.mubr.msk.f32.mxu0 %vm238_vm0, %v5577_v52  ;;  %v5695_v51 = vld [vmem:[%s5322_s25 + $0x78] sm:$0xff] }
  0x4f   : > { %6405 = vst [vmem:[#allocation23_spill] sm:$0xff] %v5695_v51 }
  0x51   : > { %4595 = vmatmul.mubr.msk.f32.gmra.mrb[30].mxu1 %vm238_vm0, %v5588_v53  ;;  %4821 = vmatmul.mubr.msk.f32.gmra.mrb[14].mxu0 %vm238_vm0, %v5591_v54  ;;  %v5692_v53 = vld [vmem:[%s5322_s25 + $0x142] sm:$0xff] }
  0x52   : > { %4599 = vmatprep.mubr.msk.f32.mxu1 %vm238_vm0, %v171_v55  ;;  %4823 = vmatprep.mubr.msk.f32.mxu0 %vm238_vm0, %v5595_v56  ;;  %v5678_v55 = vld [vmem:[%s5322_s25 + $0x13a] sm:$0xff] }
  0x55   : > { %4600 = vmatmul.mubr.msk.f32.vlgmr.msra.gmra.mrb[0].mxu1 %vm238_vm0, %v172_v57  ;;  %4824 = vmatmul.mubr.msk.f32.gmra.mrb[16].mxu0 %vm238_vm0, %v5606_v58  ;;  %v5689_v57 = vld [vmem:[%s5322_s25 + $0x68] sm:$0xff] }
  0x56   : > { %4648 = vmatpush3.msra.mxu1 %v5341_v10  ;;  %4602 = vmatprep.mubr.msk.f32.mxu1 %vm238_vm0, %v5609_v59  ;;  %v5675_v10 = vld [vmem:[%s5322_s25 + $0x60] sm:$0xff]  ;;  %6404 = vst [vmem:[#allocation22_spill] sm:$0xff] %v5689_v57 }
  0x57   : > { %4826 = vmatprep.mubr.msk.f32.mxu0 %vm238_vm0, %v5612_v60  ;;  %4697 = vmatprep.subr.mxu1 %v5617_v61  ;;  %6403 = vst [vmem:[#allocation21_spill] sm:$0xff] %v5675_v10  ;;  %v5755_v59 = vld [vmem:[%s5322_s25 + $0xc0] sm:$0xff] }
  0x59   : > { %4603 = vmatmul.mubr.msk.f32.gmra.mrb[2].mxu1 %vm238_vm0, %v5626_v62  ;;  %4827 = vmatmul.mubr.msk.f32.gmra.mrb[18].mxu0 %vm238_vm0, %v5629_v63  ;;  %v5749_v62 = vld [vmem:[%s5322_s25 + $0xb0] sm:$0xff] }
  0x5a   : > { %4605 = vmatprep.mubr.msk.f32.mxu1 %vm238_vm0, %v5634_v0  ;;  %4829 = vmatprep.mubr.msk.f32.mxu0 %vm238_vm0, %v5637_v2  ;;  %6412 = vst [vmem:[#allocation30_spill] sm:$0xff] %v5749_v62 }
  0x5d   : > { %4606 = vmatmul.mubr.msk.f32.gmra.mrb[4].mxu1 %vm238_vm0, %v5649_v3  ;;  %4830 = vmatmul.mubr.msk.f32.gmra.mrb[20].mxu0 %vm238_vm0, %v5652_v4 }
  0x5e   : > { %4608 = vmatprep.mubr.msk.f32.mxu1 %vm238_vm0, %v5655_v5  ;;  %4832 = vmatprep.mubr.msk.f32.mxu0 %vm238_vm0, %v5658_v6 }
  0x61   : > { %4609 = vmatmul.mubr.msk.f32.gmra.mrb[6].mxu1 %vm238_vm0, %v5669_v7  ;;  %4833 = vmatmul.mubr.msk.f32.gmra.mrb[22].mxu0 %vm238_vm0, %v5672_v9 }
  0x62   : > { %4611 = vmatprep.mubr.msk.f32.mxu1 %vm238_vm0, %v5675_v10  ;;  %4835 = vmatprep.mubr.msk.f32.mxu0 %vm238_vm0, %v5678_v55 }
  0x65   : > { %4612 = vmatmul.mubr.msk.f32.gmra.mrb[8].mxu1 %vm238_vm0, %v5689_v57  ;;  %4836 = vmatmul.mubr.msk.f32.gmra.mrb[24].mxu0 %vm238_vm0, %v5692_v53 }
  0x66   : > { %4614 = vmatprep.mubr.msk.f32.mxu1 %vm238_vm0, %v5695_v51  ;;  %4838 = vmatprep.mubr.msk.f32.mxu0 %vm238_vm0, %v5698_v49 }
  0x69   : > { %4615 = vmatmul.mubr.msk.f32.gmra.mrb[10].mxu1 %vm238_vm0, %v5709_v47  ;;  %4839 = vmatmul.mubr.msk.f32.gmra.mrb[26].mxu0 %vm238_vm0, %v5712_v45 }
  0x6a   : > { %4617 = vmatprep.mubr.msk.f32.mxu1 %vm238_vm0, %v5715_v43  ;;  %4841 = vmatprep.mubr.msk.f32.mxu0 %vm238_vm0, %v5718_v41 }
  0x6d   : > { %4618 = vmatmul.mubr.msk.f32.gmra.mrb[12].mxu1 %vm238_vm0, %v5729_v39  ;;  %4842 = vmatmul.mubr.msk.f32.gmra.mrb[28].mxu0 %vm238_vm0, %v5732_v37  ;;  %v5774_v37 = vld [vmem:[%s6336_s1 + $0x40] sm:$0xff] }
  0x6e   : > { %4620 = vmatprep.mubr.msk.f32.mxu1 %vm238_vm0, %v5735_v35  ;;  %4844 = vmatprep.mubr.msk.f32.mxu0 %vm238_vm0, %v5738_v33  ;;  %v5766_v33 = vld [vmem:[%s5322_s25 + $0xc8] sm:$0xff] }
  0x6f   : > { %6414 = vst [vmem:[#allocation32_spill] sm:$0xff] %v5766_v33 }
  0x71   : > { %4621 = vmatmul.mubr.msk.f32.gmra.mrb[14].mxu1 %vm238_vm0, %v5749_v62  ;;  %4845 = vmatmul.mubr.msk.f32.gmra.mrb[30].mxu0 %vm238_vm0, %v5752_v31  ;;  %v5784_v31 = vld [vmem:[%s5322_s25 + $0xe0] sm:$0xff] }
  0x72   : > { %4623 = vmatprep.mubr.msk.f32.mxu1 %vm238_vm0, %v5755_v59  ;;  %4849 = vmatprep.mubr.msk.f32.mxu0 %vm238_vm0, %v5634_v0  ;;  %v5789_v0 = vld [vmem:[%s5322_s25 + $0xf0] sm:$0xff] }
  0x75   : > { %4624 = vmatmul.mubr.msk.f32.gmra.mrb[16].mxu1 %vm238_vm0, %v5766_v33  ;;  %4850 = vmatmul.mubr.msk.f32.vlgmr.msra.gmra.mrb[0].mxu0 %vm238_vm0, %v5649_v3  ;;  %v881_v3 = vld [vmem:[%s5322_s25 + $0x2] sm:$0xff] }
  0x76   : > { %4898 = vmatpush3.msra.mxu0 %v5456_v28  ;;  %4626 = vmatprep.mubr.msk.f32.mxu1 %vm238_vm0, %v5769_v29  ;;  %v5801_v28 = vld [vmem:[%s5322_s25 + $0xf8] sm:$0xff] }
  0x77   : > { %4852 = vmatprep.mubr.msk.f32.mxu0 %vm238_vm0, %v5655_v5  ;;  %4947 = vmatprep.subr.mxu0 %v5774_v37  ;;  %v5804_v5 = vld [vmem:[%s5322_s25 + $0x108] sm:$0xff] }
  0x79   : > { %4627 = vmatmul.mubr.msk.f32.gmra.mrb[18].mxu1 %vm238_vm0, %v5784_v31  ;;  %4853 = vmatmul.mubr.msk.f32.gmra.mrb[2].mxu0 %vm238_vm0, %v5669_v7  ;;  %v5815_v7 = vld [vmem:[%s5322_s25 + $0x110] sm:$0xff] }
  0x7a   : > { %4629 = vmatprep.mubr.msk.f32.mxu1 %vm238_vm0, %v5789_v0  ;;  %4855 = vmatprep.mubr.msk.f32.mxu0 %vm238_vm0, %v5675_v10  ;;  %v5818_v10 = vld [vmem:[%s5322_s25 + $0x120] sm:$0xff] }
  0x7d   : > { %4630 = vmatmul.mubr.msk.f32.gmra.mrb[20].mxu1 %vm238_vm0, %v5801_v28  ;;  %4856 = vmatmul.mubr.msk.f32.gmra.mrb[4].mxu0 %vm238_vm0, %v5689_v57  ;;  %v5829_v57 = vld [vmem:[%s5322_s25 + $0x128] sm:$0xff] }
  0x7e   : > { %4632 = vmatprep.mubr.msk.f32.mxu1 %vm238_vm0, %v5804_v5  ;;  %4858 = vmatprep.mubr.msk.f32.mxu0 %vm238_vm0, %v5695_v51  ;;  %v5832_v51 = vld [vmem:[%s5322_s25 + $0x138] sm:$0xff] }
  0x81   : > { %4633 = vmatmul.mubr.msk.f32.gmra.mrb[22].mxu1 %vm238_vm0, %v5815_v7  ;;  %4859 = vmatmul.mubr.msk.f32.gmra.mrb[6].mxu0 %vm238_vm0, %v5709_v47  ;;  %v5843_v47 = vld [vmem:[%s5322_s25 + $0x140] sm:$0xff] }
  0x82   : > { %4635 = vmatprep.mubr.msk.f32.mxu1 %vm238_vm0, %v5818_v10  ;;  %4861 = vmatprep.mubr.msk.f32.mxu0 %vm238_vm0, %v5715_v43  ;;  %v5846_v43 = vld [vmem:[%s5322_s25 + $0x150] sm:$0xff] }
  0x85   : > { %4636 = vmatmul.mubr.msk.f32.gmra.mrb[24].mxu1 %vm238_vm0, %v5829_v57  ;;  %4862 = vmatmul.mubr.msk.f32.gmra.mrb[8].mxu0 %vm238_vm0, %v5729_v39  ;;  %v5857_v39 = vld [vmem:[%s5322_s25 + $0x158] sm:$0xff] }
  0x86   : > { %4638 = vmatprep.mubr.msk.f32.mxu1 %vm238_vm0, %v5832_v51  ;;  %4864 = vmatprep.mubr.msk.f32.mxu0 %vm238_vm0, %v5735_v35  ;;  %v5860_v35 = vld [vmem:[%s5322_s25 + $0x168] sm:$0xff] }
  0x89   : > { %4639 = vmatmul.mubr.msk.f32.gmra.mrb[26].mxu1 %vm238_vm0, %v5843_v47  ;;  %4865 = vmatmul.mubr.msk.f32.gmra.mrb[10].mxu0 %vm238_vm0, %v5749_v62  ;;  %v5871_v62 = vld [vmem:[%s5322_s25 + $0x170] sm:$0xff] }
  0x8a   : > { %4641 = vmatprep.mubr.msk.f32.mxu1 %vm238_vm0, %v5846_v43  ;;  %4867 = vmatprep.mubr.msk.f32.mxu0 %vm238_vm0, %v5755_v59 }
  0x8d   : > { %4642 = vmatmul.mubr.msk.f32.gmra.mrb[28].mxu1 %vm238_vm0, %v5857_v39  ;;  %4868 = vmatmul.mubr.msk.f32.gmra.mrb[12].mxu0 %vm238_vm0, %v5766_v33  ;;  %v882_v33 = vld [vmem:[%s5322_s25 + $0xa] sm:$0xff] }
  0x8e   : > { %4644 = vmatprep.mubr.msk.f32.mxu1 %vm238_vm0, %v5860_v35  ;;  %4870 = vmatprep.mubr.msk.f32.mxu0 %vm238_vm0, %v5769_v29 }
  0x91   : > { %4645 = vmatmul.mubr.msk.f32.gmra.mrb[30].mxu1 %vm238_vm0, %v5871_v62  ;;  %4871 = vmatmul.mubr.msk.f32.gmra.mrb[14].mxu0 %vm238_vm0, %v5784_v31 }
  0x92   : > { %4649 = vmatprep.mubr.msk.f32.mxu1 %vm238_vm0, %v881_v3  ;;  %4873 = vmatprep.mubr.msk.f32.mxu0 %vm238_vm0, %v5789_v0  ;;  %v6431_v3 = vld [vmem:[#allocation22_spill] sm:$0xff] }
  0x95   : > { %4650 = vmatmul.mubr.msk.f32.vlgmr.msra.gmra.mrb[0].mxu1 %vm238_vm0, %v882_v33  ;;  %4874 = vmatmul.mubr.msk.f32.gmra.mrb[16].mxu0 %vm238_vm0, %v5801_v28  ;;  %v4081_v33 = vld [vmem:[%s5322_s25 + $0x198] sm:$0xff] }
  0x96   : > { %4698 = vmatpush3.msra.mxu1 %v5617_v61  ;;  %4652 = vmatprep.mubr.msk.f32.mxu1 %vm238_vm0, %v5434_v24  ;;  %v5924_v24 = vld [vmem:[%s5322_s25 + $0x180] sm:$0xff] }
  0x97   : > { %4876 = vmatprep.mubr.msk.f32.mxu0 %vm238_vm0, %v5804_v5  ;;  %4997 = vmatprep.subr.mxu1 %v5306_v1  ;;  %v4082_v61 = vld [vmem:[%s5322_s25 + $0x1a0] sm:$0xff] }
  0x99   : > { %4653 = vmatmul.mubr.msk.f32.gmra.mrb[2].mxu1 %vm238_vm0, %v5445_v25  ;;  %4877 = vmatmul.mubr.msk.f32.gmra.mrb[18].mxu0 %vm238_vm0, %v5815_v7  ;;  %v5935_v25 = vld [vmem:[%s5322_s25 + $0x188] sm:$0xff] }
  0x9a   : > { %4655 = vmatprep.mubr.msk.f32.mxu1 %vm238_vm0, %v5451_v27  ;;  %4879 = vmatprep.mubr.msk.f32.mxu0 %vm238_vm0, %v5818_v10 }
  0x9d   : > { %4656 = vmatmul.mubr.msk.f32.gmra.mrb[4].mxu1 %vm238_vm0, %v5468_v30  ;;  %4880 = vmatmul.mubr.msk.f32.gmra.mrb[20].mxu0 %vm238_vm0, %v5829_v57 }
  0x9e   : > { %4658 = vmatprep.mubr.msk.f32.mxu1 %vm238_vm0, %v5476_v32  ;;  %4882 = vmatprep.mubr.msk.f32.mxu0 %vm238_vm0, %v5832_v51 }
  0xa1   : > { %4659 = vmatmul.mubr.msk.f32.gmra.mrb[6].mxu1 %vm238_vm0, %v5491_v34  ;;  %4883 = vmatmul.mubr.msk.f32.gmra.mrb[22].mxu0 %vm238_vm0, %v5843_v47 }
  0xa2   : > { %4661 = vmatprep.mubr.msk.f32.mxu1 %vm238_vm0, %v5497_v36  ;;  %4885 = vmatprep.mubr.msk.f32.mxu0 %vm238_vm0, %v5846_v43 }
  0xa5   : > { %4662 = vmatmul.mubr.msk.f32.gmra.mrb[8].mxu1 %vm238_vm0, %v5511_v38  ;;  %4886 = vmatmul.mubr.msk.f32.gmra.mrb[24].mxu0 %vm238_vm0, %v5857_v39 }
  0xa6   : > { %4664 = vmatprep.mubr.msk.f32.mxu1 %vm238_vm0, %v5517_v40  ;;  %4888 = vmatprep.mubr.msk.f32.mxu0 %vm238_vm0, %v5860_v35 }
  0xa9   : > { %4665 = vmatmul.mubr.msk.f32.gmra.mrb[10].mxu1 %vm238_vm0, %v5531_v42  ;;  %4889 = vmatmul.mubr.msk.f32.gmra.mrb[26].mxu0 %vm238_vm0, %v5871_v62 }
  0xaa   : > { %4667 = vmatprep.mubr.msk.f32.mxu1 %vm238_vm0, %v5537_v44  ;;  %4891 = vmatprep.mubr.msk.f32.mxu0 %vm238_vm0, %v5924_v24 }
  0xad   : > { %4668 = vmatmul.mubr.msk.f32.gmra.mrb[12].mxu1 %vm238_vm0, %v5551_v46  ;;  %4892 = vmatmul.mubr.msk.f32.gmra.mrb[28].mxu0 %vm238_vm0, %v5935_v25 }
  0xae   : > { %4670 = vmatprep.mubr.msk.f32.mxu1 %vm238_vm0, %v5557_v48  ;;  %4894 = vmatprep.mubr.msk.f32.mxu0 %vm238_vm0, %v4081_v33  ;;  %v6432_v33 = vld [vmem:[#allocation10_spill] sm:$0xff] }
  0xb1   : > { %4671 = vmatmul.mubr.msk.f32.gmra.mrb[14].mxu1 %vm238_vm0, %v5571_v50  ;;  %4895 = vmatmul.mubr.msk.f32.gmra.mrb[30].mxu0 %vm238_vm0, %v4082_v61  ;;  %v6433_v61 = vld [vmem:[#allocation23_spill] sm:$0xff] }
  0xb2   : > { %4673 = vmatprep.mubr.msk.f32.mxu1 %vm238_vm0, %v5577_v52  ;;  %4899 = vmatprep.mubr.msk.f32.mxu0 %vm238_vm0, %v5331_v8  ;;  %v6415_v8 = vld [vmem:[#allocation27_spill] sm:$0xff] }
  0xb5   : > { %4674 = vmatmul.mubr.msk.f32.gmra.mrb[16].mxu1 %vm238_vm0, %v5591_v54  ;;  %4900 = vmatmul.mubr.msk.f32.vlgmr.msra.gmra.mrb[0].mxu0 %vm238_vm0, %v5344_v11  ;;  %v6416_v11 = vld [vmem:[#allocation2_spill] sm:$0xff] }
  0xb6   : > { %4948 = vmatpush3.msra.mxu0 %v5774_v37  ;;  %4676 = vmatprep.mubr.msk.f32.mxu1 %vm238_vm0, %v5595_v56  ;;  %v6430_v37 = vld [vmem:[#allocation9_spill] sm:$0xff] }
  0xb7   : > { %4902 = vmatprep.mubr.msk.f32.mxu0 %vm238_vm0, %v5350_v12  ;;  %v6417_v12 = vld [vmem:[#allocation15_spill] sm:$0xff] }
  0xb9   : > { %4677 = vmatmul.mubr.msk.f32.gmra.mrb[18].mxu1 %vm238_vm0, %v5606_v58  ;;  %4903 = vmatmul.mubr.msk.f32.gmra.mrb[2].mxu0 %vm238_vm0, %v5361_v13  ;;  %v6418_v13 = vld [vmem:[#allocation3_spill] sm:$0xff] }
  0xba   : > { %4679 = vmatprep.mubr.msk.f32.mxu1 %vm238_vm0, %v5612_v60  ;;  %4905 = vmatprep.mubr.msk.f32.mxu0 %vm238_vm0, %v5364_v14  ;;  %v6419_v14 = vld [vmem:[#allocation16_spill] sm:$0xff] }
  0xbd   : > { %4680 = vmatmul.mubr.msk.f32.gmra.mrb[20].mxu1 %vm238_vm0, %v5629_v63  ;;  %4906 = vmatmul.mubr.msk.f32.gmra.mrb[4].mxu0 %vm238_vm0, %v5375_v15  ;;  %v6420_v15 = vld [vmem:[#allocation4_spill] sm:$0xff] }
  0xbe   : > { %4682 = vmatprep.mubr.msk.f32.mxu1 %vm238_vm0, %v5637_v2  ;;  %4908 = vmatprep.mubr.msk.f32.mxu0 %vm238_vm0, %v5378_v16  ;;  %v6421_v16 = vld [vmem:[#allocation17_spill] sm:$0xff] }
  0xc1   : > { %4683 = vmatmul.mubr.msk.f32.gmra.mrb[22].mxu1 %vm238_vm0, %v5652_v4  ;;  %4909 = vmatmul.mubr.msk.f32.gmra.mrb[6].mxu0 %vm238_vm0, %v5389_v17  ;;  %v6422_v17 = vld [vmem:[#allocation5_spill] sm:$0xff] }
  0xc2   : > { %4685 = vmatprep.mubr.msk.f32.mxu1 %vm238_vm0, %v5658_v6  ;;  %4911 = vmatprep.mubr.msk.f32.mxu0 %vm238_vm0, %v5392_v18  ;;  %v6423_v18 = vld [vmem:[#allocation18_spill] sm:$0xff] }
  0xc5   : > { %4686 = vmatmul.mubr.msk.f32.gmra.mrb[24].mxu1 %vm238_vm0, %v5672_v9  ;;  %4912 = vmatmul.mubr.msk.f32.gmra.mrb[8].mxu0 %vm238_vm0, %v5403_v19  ;;  %v6424_v19 = vld [vmem:[#allocation6_spill] sm:$0xff] }
  0xc6   : > { %4688 = vmatprep.mubr.msk.f32.mxu1 %vm238_vm0, %v5678_v55  ;;  %4914 = vmatprep.mubr.msk.f32.mxu0 %vm238_vm0, %v5406_v20  ;;  %v6425_v20 = vld [vmem:[#allocation19_spill] sm:$0xff] }
  0xc9   : > { %4689 = vmatmul.mubr.msk.f32.gmra.mrb[26].mxu1 %vm238_vm0, %v5692_v53  ;;  %4915 = vmatmul.mubr.msk.f32.gmra.mrb[10].mxu0 %vm238_vm0, %v5417_v21  ;;  %v6426_v21 = vld [vmem:[#allocation7_spill] sm:$0xff] }
  0xca   : > { %4691 = vmatprep.mubr.msk.f32.mxu1 %vm238_vm0, %v5698_v49  ;;  %4917 = vmatprep.mubr.msk.f32.mxu0 %vm238_vm0, %v5420_v22  ;;  %v6428_v22 = vld [vmem:[#allocation8_spill] sm:$0xff] }
  0xcd   : > { %4692 = vmatmul.mubr.msk.f32.gmra.mrb[28].mxu1 %vm238_vm0, %v5712_v45  ;;  %4918 = vmatmul.mubr.msk.f32.gmra.mrb[12].mxu0 %vm238_vm0, %v5431_v23  ;;  %v6429_v23 = vld [vmem:[#allocation21_spill] sm:$0xff] }
  0xce   : > { %4694 = vmatprep.mubr.msk.f32.mxu1 %vm238_vm0, %v5718_v41  ;;  %4920 = vmatprep.mubr.msk.f32.mxu0 %vm238_vm0, %v5448_v26 }
  0xd1   : > { %4695 = vmatmul.mubr.msk.f32.gmra.mrb[30].mxu1 %vm238_vm0, %v6415_v8  ;;  %4921 = vmatmul.mubr.msk.f32.gmra.mrb[14].mxu0 %vm238_vm0, %v6416_v11  ;;  %v6442_v8 = vld [vmem:[#allocation30_spill] sm:$0xff] }
  0xd2   : > { %4699 = vmatprep.mubr.msk.f32.mxu1 %vm238_vm0, %v6417_v12  ;;  %4923 = vmatprep.mubr.msk.f32.mxu0 %vm238_vm0, %v6418_v13  ;;  %v6434_v12 = vld [vmem:[#allocation11_spill] sm:$0xff] }
  0xd5   : > { %4700 = vmatmul.mubr.msk.f32.vlgmr.msra.gmra.mrb[0].mxu1 %vm238_vm0, %v6419_v14  ;;  %4924 = vmatmul.mubr.msk.f32.gmra.mrb[16].mxu0 %vm238_vm0, %v6420_v15  ;;  %v6435_v14 = vld [vmem:[#allocation24_spill] sm:$0xff] }
  0xd6   : > { %4998 = vmatpush3.msra.mxu1 %v5306_v1  ;;  %4702 = vmatprep.mubr.msk.f32.mxu1 %vm238_vm0, %v6421_v16  ;;  %v6427_v1 = vld [vmem:[#allocation20_spill] sm:$0xff] }
  0xd7   : > { %4926 = vmatprep.mubr.msk.f32.mxu0 %vm238_vm0, %v6422_v17  ;;  %v6436_v16 = vld [vmem:[#allocation12_spill] sm:$0xff] }
  0xd9   : > { %4703 = vmatmul.mubr.msk.f32.gmra.mrb[2].mxu1 %vm238_vm0, %v6423_v18  ;;  %4927 = vmatmul.mubr.msk.f32.gmra.mrb[18].mxu0 %vm238_vm0, %v6424_v19  ;;  %v6437_v18 = vld [vmem:[#allocation25_spill] sm:$0xff] }
  0xda   : > { %4705 = vmatprep.mubr.msk.f32.mxu1 %vm238_vm0, %v6425_v20  ;;  %4929 = vmatprep.mubr.msk.f32.mxu0 %vm238_vm0, %v6426_v21  ;;  %v6438_v20 = vld [vmem:[#allocation13_spill] sm:$0xff] }
  0xdd   : > { %4706 = vmatmul.mubr.msk.f32.gmra.mrb[4].mxu1 %vm238_vm0, %v6427_v1  ;;  %4930 = vmatmul.mubr.msk.f32.gmra.mrb[20].mxu0 %vm238_vm0, %v6428_v22  ;;  %v6060_v1 = vld [vmem:[%s5322_s25 + $0x181] sm:$0xff] }
  0xde   : > { %4708 = vmatprep.mubr.msk.f32.mxu1 %vm238_vm0, %v6429_v23  ;;  %4932 = vmatprep.mubr.msk.f32.mxu0 %vm238_vm0, %v6430_v37  ;;  %v6439_v23 = vld [vmem:[#allocation26_spill] sm:$0xff] }
  0xe1   : > { %4709 = vmatmul.mubr.msk.f32.gmra.mrb[6].mxu1 %vm238_vm0, %v6431_v3  ;;  %4933 = vmatmul.mubr.msk.f32.gmra.mrb[22].mxu0 %vm238_vm0, %v6432_v33  ;;  %v6440_v3 = vld [vmem:[#allocation14_spill] sm:$0xff] }
  0xe2   : > { %4711 = vmatprep.mubr.msk.f32.mxu1 %vm238_vm0, %v6433_v61  ;;  %4935 = vmatprep.mubr.msk.f32.mxu0 %vm238_vm0, %v6434_v12  ;;  %v6441_v61 = vld [vmem:[#allocation28_spill] sm:$0xff] }
  0xe5   : > { %4712 = vmatmul.mubr.msk.f32.gmra.mrb[8].mxu1 %vm238_vm0, %v6435_v14  ;;  %4936 = vmatmul.mubr.msk.f32.gmra.mrb[24].mxu0 %vm238_vm0, %v6436_v16  ;;  %v6071_v14 = vld [vmem:[%s5322_s25 + $0x189] sm:$0xff] }
  0xe6   : > { %4714 = vmatprep.mubr.msk.f32.mxu1 %vm238_vm0, %v6437_v18  ;;  %4938 = vmatprep.mubr.msk.f32.mxu0 %vm238_vm0, %v6438_v20  ;;  %v4146_v18 = vld [vmem:[%s5322_s25 + $0x199] sm:$0xff] }
  0xe9   : > { %4715 = vmatmul.mubr.msk.f32.gmra.mrb[10].mxu1 %vm238_vm0, %v6439_v23  ;;  %4939 = vmatmul.mubr.msk.f32.gmra.mrb[26].mxu0 %vm238_vm0, %v6440_v3  ;;  %v4147_v23 = vld [vmem:[%s5322_s25 + $0x1a1] sm:$0xff]  ;;  %v6443_v3 = vld [vmem:[#allocation32_spill] sm:$0xff] }
  0xea   : > { %4717 = vmatprep.mubr.msk.f32.mxu1 %vm238_vm0, %v6441_v61  ;;  %4941 = vmatprep.mubr.msk.f32.mxu0 %vm238_vm0, %v6060_v1 }
  0xed   : > { %4718 = vmatmul.mubr.msk.f32.gmra.mrb[12].mxu1 %vm238_vm0, %v6442_v8  ;;  %4942 = vmatmul.mubr.msk.f32.gmra.mrb[28].mxu0 %vm238_vm0, %v6071_v14 }
  0xee   : > { %4720 = vmatprep.mubr.msk.f32.mxu1 %vm238_vm0, %v5755_v59  ;;  %4944 = vmatprep.mubr.msk.f32.mxu0 %vm238_vm0, %v4146_v18 }
  0xf1   : > { %4721 = vmatmul.mubr.msk.f32.gmra.mrb[14].mxu1 %vm238_vm0, %v6443_v3  ;;  %4945 = vmatmul.mubr.msk.f32.gmra.mrb[30].mxu0 %vm238_vm0, %v4147_v23 }
  0xf2   : > { %4723 = vmatprep.mubr.msk.f32.mxu1 %vm238_vm0, %v5769_v29  ;;  %4949 = vmatprep.mubr.msk.f32.mxu0 %vm238_vm0, %v5451_v27  ;;  %v6445_v27 = vld [vmem:[#allocation29_spill] sm:$0xff] }
  0xf3   : > { %v4211_v29 = vld [vmem:[%s5322_s25 + $0x19a] sm:$0xff] }
  0xf5   : > { %4724 = vmatmul.mubr.msk.f32.gmra.mrb[16].mxu1 %vm238_vm0, %v5784_v31  ;;  %4950 = vmatmul.mubr.msk.f32.vlgmr.msra.gmra.mrb[0].mxu0 %vm238_vm0, %v5468_v30  ;;  %v6446_v30 = vld [vmem:[#allocation14_spill] sm:$0xff]  ;;  %v6447_v31 = vld [vmem:[#allocation31_spill] sm:$0xff] }
  0xf6   : > { %4726 = vmatprep.mubr.msk.f32.mxu1 %vm238_vm0, %v5789_v0  ;;  %4952 = vmatprep.mubr.msk.f32.mxu0 %vm238_vm0, %v5476_v32  ;;  %v4212_v32 = vld [vmem:[%s5322_s25 + $0x1a2] sm:$0xff] }
  0xf9   : > { %4727 = vmatmul.mubr.msk.f32.gmra.mrb[18].mxu1 %vm238_vm0, %v5801_v28  ;;  %4953 = vmatmul.mubr.msk.f32.gmra.mrb[2].mxu0 %vm238_vm0, %v5491_v34 }
  0xfa   : > { %4729 = vmatprep.mubr.msk.f32.mxu1 %vm238_vm0, %v5804_v5  ;;  %4955 = vmatprep.mubr.msk.f32.mxu0 %vm238_vm0, %v5497_v36 }
  0xfd   : > { %4730 = vmatmul.mubr.msk.f32.gmra.mrb[20].mxu1 %vm238_vm0, %v5815_v7  ;;  %4956 = vmatmul.mubr.msk.f32.gmra.mrb[4].mxu0 %vm238_vm0, %v5511_v38 }
  0xfe   : > { %4732 = vmatprep.mubr.msk.f32.mxu1 %vm238_vm0, %v5818_v10  ;;  %4958 = vmatprep.mubr.msk.f32.mxu0 %vm238_vm0, %v5517_v40 }
 0x101   : > { %4733 = vmatmul.mubr.msk.f32.gmra.mrb[22].mxu1 %vm238_vm0, %v5829_v57  ;;  %4959 = vmatmul.mubr.msk.f32.gmra.mrb[6].mxu0 %vm238_vm0, %v5531_v42 }
 0x102   : > { %4735 = vmatprep.mubr.msk.f32.mxu1 %vm238_vm0, %v5832_v51  ;;  %4961 = vmatprep.mubr.msk.f32.mxu0 %vm238_vm0, %v5537_v44 }
 0x105   : > { %4736 = vmatmul.mubr.msk.f32.gmra.mrb[24].mxu1 %vm238_vm0, %v5843_v47  ;;  %4962 = vmatmul.mubr.msk.f32.gmra.mrb[8].mxu0 %vm238_vm0, %v5551_v46 }
 0x106   : > { %4738 = vmatprep.mubr.msk.f32.mxu1 %vm238_vm0, %v5846_v43  ;;  %4964 = vmatprep.mubr.msk.f32.mxu0 %vm238_vm0, %v5557_v48 }
 0x109   : > { %4739 = vmatmul.mubr.msk.f32.gmra.mrb[26].mxu1 %vm238_vm0, %v5857_v39  ;;  %4965 = vmatmul.mubr.msk.f32.gmra.mrb[10].mxu0 %vm238_vm0, %v5571_v50 }
 0x10a   : > { %4741 = vmatprep.mubr.msk.f32.mxu1 %vm238_vm0, %v5860_v35  ;;  %4967 = vmatprep.mubr.msk.f32.mxu0 %vm238_vm0, %v5577_v52  ;;  %v6224_v52 = vld [vmem:[%s6337_s2] ss:$0 sm:$0xff] }
 0x10d   : > { %4742 = vmatmul.mubr.msk.f32.gmra.mrb[28].mxu1 %vm238_vm0, %v5871_v62  ;;  %4968 = vmatmul.mubr.msk.f32.gmra.mrb[12].mxu0 %vm238_vm0, %v5591_v54 }
 0x10e   : > { %4744 = vmatprep.mubr.msk.f32.mxu1 %vm238_vm0, %v5924_v24  ;;  %4970 = vmatprep.mubr.msk.f32.mxu0 %vm238_vm0, %v5595_v56 }
 0x111   : > { %4745 = vmatmul.mubr.msk.f32.gmra.mrb[30].mxu1 %vm238_vm0, %v5935_v25  ;;  %4971 = vmatmul.mubr.msk.f32.gmra.mrb[14].mxu0 %vm238_vm0, %v5606_v58 }
 0x112   : > { %4773 = vmatprep.mubr.msk.f32.mxu1 %vm238_vm0, %v5448_v26  ;;  %4973 = vmatprep.mubr.msk.f32.mxu0 %vm238_vm0, %v5612_v60  ;;  %v6444_v26 = vld [vmem:[#allocation27_spill] sm:$0xff] }
 0x115   : > { %4774 = vmatmul.mubr.msk.f32.vlgmr.msra.gmra.mrb[16].mxu1 %vm238_vm0, %v6416_v11  ;;  %4974 = vmatmul.mubr.msk.f32.gmra.mrb[16].mxu0 %vm238_vm0, %v5629_v63 }
 0x116   : > { %4776 = vmatprep.mubr.msk.f32.mxu1 %vm238_vm0, %v6418_v13  ;;  %4976 = vmatprep.mubr.msk.f32.mxu0 %vm238_vm0, %v5637_v2 }
 0x119   : > { %4777 = vmatmul.mubr.msk.f32.gmra.mrb[18].mxu1 %vm238_vm0, %v6420_v15  ;;  %4977 = vmatmul.mubr.msk.f32.gmra.mrb[18].mxu0 %vm238_vm0, %v5652_v4 }
 0x11a   : > { %4779 = vmatprep.mubr.msk.f32.mxu1 %vm238_vm0, %v6422_v17  ;;  %4979 = vmatprep.mubr.msk.f32.mxu0 %vm238_vm0, %v5658_v6 }
 0x11d   : > { %4780 = vmatmul.mubr.msk.f32.gmra.mrb[20].mxu1 %vm238_vm0, %v6424_v19  ;;  %4980 = vmatmul.mubr.msk.f32.gmra.mrb[20].mxu0 %vm238_vm0, %v5672_v9 }
 0x11e   : > { %4782 = vmatprep.mubr.msk.f32.mxu1 %vm238_vm0, %v6426_v21  ;;  %4982 = vmatprep.mubr.msk.f32.mxu0 %vm238_vm0, %v5678_v55 }
 0x121   : > { %4783 = vmatmul.mubr.msk.f32.gmra.mrb[22].mxu1 %vm238_vm0, %v6428_v22  ;;  %4983 = vmatmul.mubr.msk.f32.gmra.mrb[22].mxu0 %vm238_vm0, %v5692_v53 }
 0x122   : > { %4785 = vmatprep.mubr.msk.f32.mxu1 %vm238_vm0, %v6430_v37  ;;  %4985 = vmatprep.mubr.msk.f32.mxu0 %vm238_vm0, %v5698_v49 }
 0x125   : > { %4786 = vmatmul.mubr.msk.f32.gmra.mrb[24].mxu1 %vm238_vm0, %v6432_v33  ;;  %4986 = vmatmul.mubr.msk.f32.gmra.mrb[24].mxu0 %vm238_vm0, %v5712_v45 }
 0x126   : > { %4788 = vmatprep.mubr.msk.f32.mxu1 %vm238_vm0, %v6434_v12  ;;  %4988 = vmatprep.mubr.msk.f32.mxu0 %vm238_vm0, %v5718_v41 }
 0x129   : > { %4789 = vmatmul.mubr.msk.f32.gmra.mrb[26].mxu1 %vm238_vm0, %v6436_v16  ;;  %4989 = vmatmul.mubr.msk.f32.gmra.mrb[26].mxu0 %vm238_vm0, %v6444_v26 }
 0x12a   : > { %4791 = vmatprep.mubr.msk.f32.mxu1 %vm238_vm0, %v6438_v20  ;;  %4991 = vmatprep.mubr.msk.f32.mxu0 %vm238_vm0, %v6445_v27 }
 0x12d   : > { %4792 = vmatmul.mubr.msk.f32.gmra.mrb[28].mxu1 %vm238_vm0, %v6446_v30  ;;  %4992 = vmatmul.mubr.msk.f32.gmra.mrb[28].mxu0 %vm238_vm0, %v6447_v31 }
 0x12e   : > { %4794 = vmatprep.mubr.msk.f32.mxu1 %vm238_vm0, %v6060_v1  ;;  %4994 = vmatprep.mubr.msk.f32.mxu0 %vm238_vm0, %v4211_v29 }
 0x131   : > { %4795 = vmatmul.mubr.msk.f32.gmra.mrb[30].mxu1 %vm238_vm0, %v6071_v14  ;;  %4995 = vmatmul.mubr.msk.f32.gmra.mrb[30].mxu0 %vm238_vm0, %v4212_v32 }
 0x1a8   : > { %v4701_v34 = vpop.f32.mrb[0].mxu1 }
 0x1a9   : > { %v1465_v35 = vpop.f32.mrb[1].mxu1 }
 0x1ac   : > { %v4704_v36 = vpop.f32.mrb[2].mxu1 }
 0x1ad   : > { %v1475_v38 = vpop.f32.mrb[3].mxu1 }
 0x1b0   : > { %v4707_v39 = vpop.f32.mrb[4].mxu1 }
 0x1b1   : > { %v1485_v40 = vpop.f32.mrb[5].mxu1 }
 0x1b4   : > { %v4710_v41 = vpop.f32.mrb[6].mxu1 }
 0x1b5   : > { %v1495_v42 = vpop.f32.mrb[7].mxu1 }
 0x1b8   : > { %v4713_v43 = vpop.f32.mrb[8].mxu1 }
 0x1b9   : > { %v1505_v44 = vpop.f32.mrb[9].mxu1 }
 0x1bc   : > { %v4716_v45 = vpop.f32.mrb[10].mxu1 }
 0x1bd   : > { %v1515_v46 = vpop.f32.mrb[11].mxu1 }
 0x1c0   : > { %v6213_v47 = vpop.f32.mrb[12].mxu1 }
 0x1c1   : > { %v6215_v48 = vpop.f32.mrb[13].mxu1 }
 0x1c4   : > { %v6217_v49 = vpop.f32.mrb[14].mxu1 }
 0x1c5   : > { %v6219_v50 = vpop.f32.mrb[15].mxu1 }
 0x1c8   : > { %v4951_v51 = vpop.f32.mrb[0].mxu0 }
 0x1c9   : > { %v4999_v53 = vadd.f32 %v4951_v51, %v4701_v34  ;;  %v3401_v54 = vpop.f32.mrb[1].mxu0 }
 0x1ca   : > { %v5000_v56 = vadd.f32 %v3401_v54, %v1465_v35 }
 0x1cb   : > { %v3600_v58 = vadd.f32 %v4999_v53, %v6224_v52 }
 0x1cc   : > { %v3599_v59 = vadd.f32 %v5000_v56, %v6224_v52  ;;  %v4954_v60 = vpop.f32.mrb[2].mxu0 }
 0x1cd   : > { %v3632_v62 = vmax.f32 %v3600_v58, 0.0  ;;  %v5001_v63 = vadd.f32 %v4954_v60, %v4704_v36  ;;  %v3411_v0 = vpop.f32.mrb[3].mxu0 }
 0x1ce   : > { %v3631_v2 = vmax.f32 %v3599_v59, 0.0  ;;  %v5002_v4 = vadd.f32 %v3411_v0, %v1475_v38 }
 0x1cf   : > { %3664 = vst.msk [vmem:[%s6231_s16 + $0x8] sm:$0xff] %vm238_vm0, %v3632_v62  ;;  %v3602_v5 = vadd.f32 %v5001_v63, %v6224_v52 }
 0x1d0   : > { %3663 = vst.msk [vmem:[%s6231_s16] sm:$0xff] %vm238_vm0, %v3631_v2  ;;  %v3601_v6 = vadd.f32 %v5002_v4, %v6224_v52  ;;  %v4957_v7 = vpop.f32.mrb[4].mxu0 }
 0x1d1   : > { %v3634_v9 = vmax.f32 %v3602_v5, 0.0  ;;  %v5003_v10 = vadd.f32 %v4957_v7, %v4707_v39  ;;  %v3421_v55 = vpop.f32.mrb[5].mxu0 }
 0x1d2   : > { %v3633_v57 = vmax.f32 %v3601_v6, 0.0  ;;  %v5004_v28 = vadd.f32 %v3421_v55, %v1485_v40 }
 0x1d3   : > { %3666 = vst.msk [vmem:[%s6231_s16 + $0x18] sm:$0xff] %vm238_vm0, %v3634_v9  ;;  %v3604_v24 = vadd.f32 %v5003_v10, %v6224_v52 }
 0x1d4   : > { %3665 = vst.msk [vmem:[%s6231_s16 + $0x10] sm:$0xff] %vm238_vm0, %v3633_v57  ;;  %v3603_v25 = vadd.f32 %v5004_v28, %v6224_v52  ;;  %v4960_v8 = vpop.f32.mrb[6].mxu0 }
 0x1d5   : > { %v3636_v11 = vmax.f32 %v3604_v24, 0.0  ;;  %v5005_v13 = vadd.f32 %v4960_v8, %v4710_v41  ;;  %v3431_v15 = vpop.f32.mrb[7].mxu0 }
 0x1d6   : > { %v3635_v17 = vmax.f32 %v3603_v25, 0.0  ;;  %v5006_v19 = vadd.f32 %v3431_v15, %v1495_v42 }
 0x1d7   : > { %3668 = vst.msk [vmem:[%s6231_s16 + $0x28] sm:$0xff] %vm238_vm0, %v3636_v11  ;;  %v3606_v21 = vadd.f32 %v5005_v13, %v6224_v52 }
 0x1d8   : > { %3667 = vst.msk [vmem:[%s6231_s16 + $0x20] sm:$0xff] %vm238_vm0, %v3635_v17  ;;  %v3605_v22 = vadd.f32 %v5006_v19, %v6224_v52  ;;  %v4963_v37 = vpop.f32.mrb[8].mxu0 }
 0x1d9   : > { %v3638_v33 = vmax.f32 %v3606_v21, 0.0  ;;  %v5007_v12 = vadd.f32 %v4963_v37, %v4713_v43  ;;  %v3441_v16 = vpop.f32.mrb[9].mxu0 }
 0x1da   : > { %v3637_v20 = vmax.f32 %v3605_v22, 0.0  ;;  %v5008_v1 = vadd.f32 %v3441_v16, %v1505_v44 }
 0x1db   : > { %3670 = vst.msk [vmem:[%s6231_s16 + $0x38] sm:$0xff] %vm238_vm0, %v3638_v33  ;;  %v3608_v3 = vadd.f32 %v5007_v12, %v6224_v52 }
 0x1dc   : > { %3669 = vst.msk [vmem:[%s6231_s16 + $0x30] sm:$0xff] %vm238_vm0, %v3637_v20  ;;  %v3607_v61 = vadd.f32 %v5008_v1, %v6224_v52  ;;  %v4966_v14 = vpop.f32.mrb[10].mxu0 }
 0x1dd   : > { %v3640_v18 = vmax.f32 %v3608_v3, 0.0  ;;  %v5009_v23 = vadd.f32 %v4966_v14, %v4716_v45  ;;  %v3451_v26 = vpop.f32.mrb[11].mxu0 }
 0x1de   : > { %v3639_v27 = vmax.f32 %v3607_v61, 0.0  ;;  %v5010_v29 = vadd.f32 %v3451_v26, %v1515_v46 }
 0x1df   : > { %3672 = vst.msk [vmem:[%s6231_s16 + $0x48] sm:$0xff] %vm238_vm0, %v3640_v18  ;;  %v3610_v30 = vadd.f32 %v5009_v23, %v6224_v52 }
 0x1e0   : > { %3671 = vst.msk [vmem:[%s6231_s16 + $0x40] sm:$0xff] %vm238_vm0, %v3639_v27  ;;  %v3609_v31 = vadd.f32 %v5010_v29, %v6224_v52  ;;  %v4969_v32 = vpop.f32.mrb[12].mxu0 }
 0x1e1   : > { %v3642_v34 = vmax.f32 %v3610_v30, 0.0  ;;  %v5011_v35 = vadd.f32 %v4969_v32, %v6213_v47  ;;  %v3461_v36 = vpop.f32.mrb[13].mxu0 }
 0x1e2   : > { %v3641_v38 = vmax.f32 %v3609_v31, 0.0  ;;  %v5012_v39 = vadd.f32 %v3461_v36, %v6215_v48 }
 0x1e3   : > { %3674 = vst.msk [vmem:[%s6231_s16 + $0x58] sm:$0xff] %vm238_vm0, %v3642_v34  ;;  %v3612_v40 = vadd.f32 %v5011_v35, %v6224_v52 }
 0x1e4   : > { %3673 = vst.msk [vmem:[%s6231_s16 + $0x50] sm:$0xff] %vm238_vm0, %v3641_v38  ;;  %v3611_v41 = vadd.f32 %v5012_v39, %v6224_v52  ;;  %v4972_v42 = vpop.f32.mrb[14].mxu0 }
 0x1e5   : > { %v3644_v43 = vmax.f32 %v3612_v40, 0.0  ;;  %v5013_v44 = vadd.f32 %v4972_v42, %v6217_v49  ;;  %v3471_v45 = vpop.f32.mrb[15].mxu0 }
 0x1e6   : > { %v3643_v46 = vmax.f32 %v3611_v41, 0.0  ;;  %v5014_v47 = vadd.f32 %v3471_v45, %v6219_v50 }
 0x1e7   : > { %3676 = vst.msk [vmem:[%s6231_s16 + $0x68] sm:$0xff] %vm238_vm0, %v3644_v43  ;;  %v3614_v48 = vadd.f32 %v5013_v44, %v6224_v52 }
 0x1e8   : > { %3675 = vst.msk [vmem:[%s6231_s16 + $0x60] sm:$0xff] %vm238_vm0, %v3643_v46  ;;  %v3613_v51 = vadd.f32 %v5014_v47, %v6224_v52  ;;  %v4775_v53 = vpop.f32.mrb[16].mxu1  ;;  %v4975_v54 = vpop.f32.mrb[16].mxu0 }
 0x1e9   : > { %v3646_v56 = vmax.f32 %v3614_v48, 0.0  ;;  %v5015_v58 = vadd.f32 %v4975_v54, %v4775_v53  ;;  %v1932_v59 = vpop.f32.mrb[17].mxu1  ;;  %v3481_v49 = vpop.f32.mrb[17].mxu0 }
 0x1ea   : > { %v3645_v60 = vmax.f32 %v3613_v51, 0.0  ;;  %v5016_v62 = vadd.f32 %v3481_v49, %v1932_v59 }
 0x1eb   : > { %3678 = vst.msk [vmem:[%s6231_s16 + $0x78] sm:$0xff] %vm238_vm0, %v3646_v56  ;;  %v3616_v50 = vadd.f32 %v5015_v58, %v6224_v52 }
 0x1ec   : > { %3677 = vst.msk [vmem:[%s6231_s16 + $0x70] sm:$0xff] %vm238_vm0, %v3645_v60  ;;  %v3615_v63 = vadd.f32 %v5016_v62, %v6224_v52  ;;  %v4778_v0 = vpop.f32.mrb[18].mxu1  ;;  %v4978_v2 = vpop.f32.mrb[18].mxu0 }
 0x1ed   : > { %v3648_v4 = vmax.f32 %v3616_v50, 0.0  ;;  %v5017_v5 = vadd.f32 %v4978_v2, %v4778_v0  ;;  %v1942_v6 = vpop.f32.mrb[19].mxu1  ;;  %v3491_v7 = vpop.f32.mrb[19].mxu0 }
 0x1ee   : > { %v3647_v9 = vmax.f32 %v3615_v63, 0.0  ;;  %v5018_v10 = vadd.f32 %v3491_v7, %v1942_v6 }
 0x1ef   : > { %3680 = vst.msk [vmem:[%s6231_s16 + $0x88] sm:$0xff] %vm238_vm0, %v3648_v4  ;;  %v3618_v55 = vadd.f32 %v5017_v5, %v6224_v52 }
 0x1f0   : > { %3679 = vst.msk [vmem:[%s6231_s16 + $0x80] sm:$0xff] %vm238_vm0, %v3647_v9  ;;  %v3617_v57 = vadd.f32 %v5018_v10, %v6224_v52  ;;  %v4781_v28 = vpop.f32.mrb[20].mxu1  ;;  %v4981_v24 = vpop.f32.mrb[20].mxu0 }
 0x1f1   : > { %v3650_v25 = vmax.f32 %v3618_v55, 0.0  ;;  %v5019_v8 = vadd.f32 %v4981_v24, %v4781_v28  ;;  %v1952_v11 = vpop.f32.mrb[21].mxu1  ;;  %v3501_v13 = vpop.f32.mrb[21].mxu0 }
 0x1f2   : > { %v3649_v15 = vmax.f32 %v3617_v57, 0.0  ;;  %v5020_v17 = vadd.f32 %v3501_v13, %v1952_v11 }
 0x1f3   : > { %3682 = vst.msk [vmem:[%s6231_s16 + $0x98] sm:$0xff] %vm238_vm0, %v3650_v25  ;;  %v3620_v19 = vadd.f32 %v5019_v8, %v6224_v52 }
 0x1f4   : > { %3681 = vst.msk [vmem:[%s6231_s16 + $0x90] sm:$0xff] %vm238_vm0, %v3649_v15  ;;  %v3619_v21 = vadd.f32 %v5020_v17, %v6224_v52  ;;  %v4784_v22 = vpop.f32.mrb[22].mxu1  ;;  %v4984_v37 = vpop.f32.mrb[22].mxu0 }
 0x1f5   : > { %v3652_v33 = vmax.f32 %v3620_v19, 0.0  ;;  %v5021_v12 = vadd.f32 %v4984_v37, %v4784_v22  ;;  %v1962_v16 = vpop.f32.mrb[23].mxu1  ;;  %v3511_v20 = vpop.f32.mrb[23].mxu0 }
 0x1f6   : > { %v3651_v1 = vmax.f32 %v3619_v21, 0.0  ;;  %v5022_v3 = vadd.f32 %v3511_v20, %v1962_v16 }
 0x1f7   : > { %3684 = vst.msk [vmem:[%s6231_s16 + $0xa8] sm:$0xff] %vm238_vm0, %v3652_v33  ;;  %v3622_v61 = vadd.f32 %v5021_v12, %v6224_v52 }
 0x1f8   : > { %3683 = vst.msk [vmem:[%s6231_s16 + $0xa0] sm:$0xff] %vm238_vm0, %v3651_v1  ;;  %v3621_v14 = vadd.f32 %v5022_v3, %v6224_v52  ;;  %v4787_v18 = vpop.f32.mrb[24].mxu1  ;;  %v4987_v23 = vpop.f32.mrb[24].mxu0 }
 0x1f9   : > { %v3654_v26 = vmax.f32 %v3622_v61, 0.0  ;;  %v5023_v27 = vadd.f32 %v4987_v23, %v4787_v18  ;;  %v1972_v29 = vpop.f32.mrb[25].mxu1  ;;  %v3521_v30 = vpop.f32.mrb[25].mxu0 }
 0x1fa   : > { %v3653_v31 = vmax.f32 %v3621_v14, 0.0  ;;  %v5024_v32 = vadd.f32 %v3521_v30, %v1972_v29 }
 0x1fb   : > { %3686 = vst.msk [vmem:[%s6231_s16 + $0xb8] sm:$0xff] %vm238_vm0, %v3654_v26  ;;  %v3624_v34 = vadd.f32 %v5023_v27, %v6224_v52 }
 0x1fc   : > { %3685 = vst.msk [vmem:[%s6231_s16 + $0xb0] sm:$0xff] %vm238_vm0, %v3653_v31  ;;  %v3623_v35 = vadd.f32 %v5024_v32, %v6224_v52  ;;  %v4790_v36 = vpop.f32.mrb[26].mxu1  ;;  %v4990_v38 = vpop.f32.mrb[26].mxu0 }
 0x1fd   : > { %v3656_v39 = vmax.f32 %v3624_v34, 0.0  ;;  %v5025_v40 = vadd.f32 %v4990_v38, %v4790_v36  ;;  %v1982_v41 = vpop.f32.mrb[27].mxu1  ;;  %v3531_v42 = vpop.f32.mrb[27].mxu0 }
 0x1fe   : > { %v3655_v43 = vmax.f32 %v3623_v35, 0.0  ;;  %v5026_v44 = vadd.f32 %v3531_v42, %v1982_v41 }
 0x1ff   : > { %3688 = vst.msk [vmem:[%s6231_s16 + $0xc8] sm:$0xff] %vm238_vm0, %v3656_v39  ;;  %v3626_v45 = vadd.f32 %v5025_v40, %v6224_v52 }
 0x200   : > { %3687 = vst.msk [vmem:[%s6231_s16 + $0xc0] sm:$0xff] %vm238_vm0, %v3655_v43  ;;  %v3625_v46 = vadd.f32 %v5026_v44, %v6224_v52  ;;  %v4793_v47 = vpop.f32.mrb[28].mxu1  ;;  %v4993_v48 = vpop.f32.mrb[28].mxu0 }
 0x201   : > { %v3658_v51 = vmax.f32 %v3626_v45, 0.0  ;;  %v5027_v53 = vadd.f32 %v4993_v48, %v4793_v47  ;;  %v1992_v54 = vpop.f32.mrb[29].mxu1  ;;  %v3541_v56 = vpop.f32.mrb[29].mxu0 }
 0x202   : > { %v3657_v58 = vmax.f32 %v3625_v46, 0.0  ;;  %v5028_v59 = vadd.f32 %v3541_v56, %v1992_v54 }
 0x203   : > { %3690 = vst.msk [vmem:[%s6231_s16 + $0xd8] sm:$0xff] %vm238_vm0, %v3658_v51  ;;  %v3628_v49 = vadd.f32 %v5027_v53, %v6224_v52 }
 0x204   : > { %3689 = vst.msk [vmem:[%s6231_s16 + $0xd0] sm:$0xff] %vm238_vm0, %v3657_v58  ;;  %v3627_v60 = vadd.f32 %v5028_v59, %v6224_v52  ;;  %v4796_v62 = vpop.f32.mrb[30].mxu1  ;;  %v4996_v50 = vpop.f32.mrb[30].mxu0 }
 0x205   : > { %v3660_v63 = vmax.f32 %v3628_v49, 0.0  ;;  %v5029_v0 = vadd.f32 %v4996_v50, %v4796_v62  ;;  %v2002_v2 = vpop.f32.mrb[31].mxu1  ;;  %v3551_v4 = vpop.f32.mrb[31].mxu0 }
 0x206   : > { %v3659_v5 = vmax.f32 %v3627_v60, 0.0  ;;  %v5030_v6 = vadd.f32 %v3551_v4, %v2002_v2 }
 0x207   : > { %3692 = vst.msk [vmem:[%s6231_s16 + $0xe8] sm:$0xff] %vm238_vm0, %v3660_v63  ;;  %v3630_v7 = vadd.f32 %v5029_v0, %v6224_v52 }
 0x208   : > { %3691 = vst.msk [vmem:[%s6231_s16 + $0xe0] sm:$0xff] %vm238_vm0, %v3659_v5  ;;  %v3629_v9 = vadd.f32 %v5030_v6, %v6224_v52 }
 0x209   : > { %v3662_v10 = vmax.f32 %v3630_v7, 0.0 }
 0x20a   : > { %v3661_v55 = vmax.f32 %v3629_v9, 0.0 }
 0x20b   : > { %3694 = vst.msk [vmem:[%s6231_s16 + $0xf8] sm:$0xff] %vm238_vm0, %v3662_v10 }
 0x20c   : > { %3693 = vst.msk [vmem:[%s6231_s16 + $0xf0] sm:$0xff] %vm238_vm0, %v3661_v55 }
 0x20d PF: > { %s13_s12 = sadd.s32 1, %s5270_s12  }
 0x20e   : > { %p10_p4 = scmp.ge.s32.totalorder %s13_s12, 4  }
 0x210   :  { %12 = sbr.rel (!%p10_p4) target bundleno = 1 (0x1), region = 72 }

</bundles_post_ra>
